<compile_context>
chip_gen: v5e
topology: v5e:2x2
jax: 0.10.0
libtpu: 0.0.40
codegen_flags: <defaults>
</compile_context>

<pallas_src>
import functools

import jax
import jax.numpy as jnp
from jax.experimental import pallas as pl
from jax.experimental.pallas import tpu as pltpu


def _round_up(n, m):
    return ((n + m - 1) // m) * m


# ----------------------------- Pallas kernel --------------------------------


def _fused_lstm_kernel(x_ref, wih_ref, whh_ref, b_ref, hw_ref, hb_ref,
                       out_ref, seq_scr, *, num_layers, seq_len, bp, hp):
    """Stacked LSTM + head Linear, fully fused in one kernel invocation.

    x_ref   : (S*Bp, Dp)      time-major flattened, padded input
    wih_ref : (L, Dp, 4*Hp)   input->gate weights (transposed, per-gate padded)
    whh_ref : (L, Hp, 4*Hp)   hidden->gate weights (transposed, per-gate padded)
    b_ref   : (L, 1, 4*Hp)    combined biases (b_ih + b_hh)
    hw_ref  : (Hp, Op)        head Linear weight (transposed, padded)
    hb_ref  : (1, Op)         head Linear bias (padded)
    out_ref : (Bp, Op)        head output
    seq_scr : (S*Bp, Dp)      VMEM scratch holding the inter-layer h sequence
    """
    S, Bp, Hp = seq_len, bp, hp

    # Layer-0 input lives in the same VMEM scratch later layers read from.
    seq_scr[...] = x_ref[...]

    h_last = None
    for l in range(num_layers):
        # --- hoisted input projection: one (S*Bp, Dp)x(Dp, 4Hp) matmul + bias ---
        gates_x = (jnp.dot(seq_scr[...], wih_ref[l],
                           preferred_element_type=jnp.float32)
                   + b_ref[l])                                   # (S*Bp, 4Hp)

        w_hh = whh_ref[l]                                        # (Hp, 4Hp)
        h = jnp.zeros((Bp, Hp), jnp.float32)
        c = jnp.zeros((Bp, Hp), jnp.float32)

        # --- recurrence: only h @ W_hh left in the time loop (S small, static) ---
        for t in range(S):
            g = gates_x[t * Bp:(t + 1) * Bp, :] + jnp.dot(
                h, w_hh, preferred_element_type=jnp.float32)     # (Bp, 4Hp)
            i_g = jax.nn.sigmoid(g[:, 0 * Hp:1 * Hp])
            f_g = jax.nn.sigmoid(g[:, 1 * Hp:2 * Hp])
            g_g = jnp.tanh(g[:, 2 * Hp:3 * Hp])
            o_g = jax.nn.sigmoid(g[:, 3 * Hp:4 * Hp])
            c = f_g * c + i_g * g_g
            h = o_g * jnp.tanh(c)
            if l < num_layers - 1:          # final layer's h sequence is unused
                seq_scr[pl.ds(t * Bp, Bp), pl.ds(0, Hp)] = h
        h_last = h

    # --- head Linear on the last layer's final hidden state ---
    out_ref[...] = (jnp.dot(h_last, hw_ref[...],
                            preferred_element_type=jnp.float32)
                    + hb_ref[...])


# ----------------------------- wrappers --------------------------------------


def pack_params(params, input_size, hidden_size, output_size, lane=128):
    """Transpose, per-gate zero-pad and stack PyTorch-layout LSTM weights."""
    H = hidden_size
    L = len(params["lstm"])
    Hp = _round_up(H, lane)
    Dp = max(_round_up(input_size, lane), Hp)
    Op = _round_up(output_size, lane)

    wih = jnp.zeros((L, Dp, 4 * Hp), jnp.float32)
    whh = jnp.zeros((L, Hp, 4 * Hp), jnp.float32)
    b = jnp.zeros((L, 1, 4 * Hp), jnp.float32)
    for l, layer in enumerate(params["lstm"]):
        w_ih, w_hh = layer["w_ih"], layer["w_hh"]        # (4H, in_l), (4H, H)
        bias = layer["b_ih"] + layer["b_hh"]             # (4H,)
        in_l = w_ih.shape[1]
        for g in range(4):                               # PyTorch order i,f,g,o
            wih = wih.at[l, :in_l, g * Hp:g * Hp + H].set(
                w_ih[g * H:(g + 1) * H, :].T)
            whh = whh.at[l, :H, g * Hp:g * Hp + H].set(
                w_hh[g * H:(g + 1) * H, :].T)
            b = b.at[l, 0, g * Hp:g * Hp + H].set(bias[g * H:(g + 1) * H])

    head_w = jnp.zeros((Hp, Op), jnp.float32).at[:H, :output_size].set(
        params["head_w"].T)
    head_b = jnp.zeros((1, Op), jnp.float32).at[0, :output_size].set(
        params["head_b"])
    return dict(wih=wih, whh=whh, b=b, head_w=head_w, head_b=head_b,
                dims=dict(Hp=Hp, Dp=Dp, Op=Op, H=H, O=output_size))


def lstm_forward(x, packed):
    """x: (S, B, input_size) -> (B, output_size). Single fused pallas_call."""
    S, B, I = x.shape
    dims = packed["dims"]
    Hp, Dp, Op, O = dims["Hp"], dims["Dp"], dims["Op"], dims["O"]
    L = packed["wih"].shape[0]
    Bp = max(_round_up(B, 8), 8)

    # Pad batch to a sublane multiple, features to a lane multiple, flatten
    # time-major so the kernel only sees 2-D, (8,128)-aligned slabs.
    xp = jnp.zeros((S, Bp, Dp), jnp.float32).at[:, :B, :I].set(x)
    xp = xp.reshape(S * Bp, Dp)

    kernel = functools.partial(_fused_lstm_kernel, num_layers=L,
                               seq_len=S, bp=Bp, hp=Hp)
    out = pl.pallas_call(
        kernel,
        out_shape=jax.ShapeDtypeStruct((Bp, Op), jnp.float32),
        grid=(1,),
        in_specs=[pl.BlockSpec((S * Bp, Dp), lambda i: (0, 0)),
                  pl.BlockSpec((L, Dp, 4 * Hp), lambda i: (0, 0, 0)),
                  pl.BlockSpec((L, Hp, 4 * Hp), lambda i: (0, 0, 0)),
                  pl.BlockSpec((L, 1, 4 * Hp), lambda i: (0, 0, 0)),
                  pl.BlockSpec((Hp, Op), lambda i: (0, 0)),
                  pl.BlockSpec((1, Op), lambda i: (0, 0))],
        out_specs=pl.BlockSpec((Bp, Op), lambda i: (0, 0)),
        scratch_shapes=[pltpu.VMEM((S * Bp, Dp), jnp.float32)],
        compiler_params=pltpu.CompilerParams(
            dimension_semantics=("arbitrary",)),
    )(xp, packed["wih"], packed["whh"], packed["b"],
      packed["head_w"], packed["head_b"])
    return out[:B, :O]


# ----------------------------- params / reference ---------------------------


def init_params(key, input_size, hidden_size, num_layers, output_size):
    """PyTorch-layout parameters (gate order i, f, g, o)."""
    k = 1.0 / jnp.sqrt(hidden_size)
    layers = []
    for l in range(num_layers):
        in_l = input_size if l == 0 else hidden_size
        key, k1, k2, k3, k4 = jax.random.split(key, 5)
        layers.append(dict(
            w_ih=jax.random.uniform(k1, (4 * hidden_size, in_l), jnp.float32, -k, k),
            w_hh=jax.random.uniform(k2, (4 * hidden_size, hidden_size), jnp.float32, -k, k),
            b_ih=jax.random.uniform(k3, (4 * hidden_size,), jnp.float32, -k, k),
            b_hh=jax.random.uniform(k4, (4 * hidden_size,), jnp.float32, -k, k)))
    key, k5, k6 = jax.random.split(key, 3)
    head_w = jax.random.uniform(k5, (output_size, hidden_size), jnp.float32, -k, k)
    head_b = jax.random.uniform(k6, (output_size,), jnp.float32, -k, k)
    return dict(lstm=layers, head_w=head_w, head_b=head_b)


def reference_forward(x, params, hidden_size):
    """Pure-JAX reference (lax.scan) for correctness check."""
    H = hidden_size

    def layer_ref(xs, w_ih, w_hh, b):
        B = xs.shape[1]
        w_ih_t, w_hh_t = w_ih.T, w_hh.T

        def step(carry, x_t):
            h, c = carry
            g = x_t @ w_ih_t + h @ w_hh_t + b
            i = jax.nn.sigmoid(g[:, 0 * H:1 * H])
            f = jax.nn.sigmoid(g[:, 1 * H:2 * H])
            gg = jnp.tanh(g[:, 2 * H:3 * H])
            o = jax.nn.sigmoid(g[:, 3 * H:4 * H])
            c = f * c + i * gg
            h = o * jnp.tanh(c)
            return (h, c), h

        init = (jnp.zeros((B, H), jnp.float32), jnp.zeros((B, H), jnp.float32))
        (h_last, _), hs = jax.lax.scan(step, init, xs)
        return hs, h_last

    h = x
    h_last = None
    for layer in params["lstm"]:
        h, h_last = layer_ref(h, layer["w_ih"], layer["w_hh"],
                              layer["b_ih"] + layer["b_hh"])
    return h_last @ params["head_w"].T + params["head_b"]


# ----------------------------- main ------------------------------------------


if __name__ == "__main__":
    SEQ, BATCH = 8, 4
    INPUT_SIZE, HIDDEN_SIZE, NUM_LAYERS, OUTPUT_SIZE = 8, 32, 2, 4

    key = jax.random.PRNGKey(0)
    key, kx = jax.random.split(key)
    x = jax.random.normal(kx, (SEQ, BATCH, INPUT_SIZE), jnp.float32)
    params = init_params(key, INPUT_SIZE, HIDDEN_SIZE, NUM_LAYERS, OUTPUT_SIZE)
    packed = pack_params(params, INPUT_SIZE, HIDDEN_SIZE, OUTPUT_SIZE)

    out = lstm_forward(x, packed)
    out = jax.block_until_ready(out)
    assert out.shape == (BATCH, OUTPUT_SIZE), out.shape

    ref = reference_forward(x, params, HIDDEN_SIZE)
    assert jnp.allclose(out, ref, atol=1e-4, rtol=1e-4), (out, ref)

    print("KERNEL_OK")
</pallas_src>

<mosaic_0001>
module attributes {stable_mosaic.version = 11 : i64} {
  func.func @_fused_lstm_kernel(%arg0: i32, %arg1: memref<64x128xf32, #tpu.memory_space<vmem>>, %arg2: memref<2x128x512xf32, #tpu.memory_space<vmem>>, %arg3: memref<2x128x512xf32, #tpu.memory_space<vmem>>, %arg4: memref<2x1x512xf32, #tpu.memory_space<vmem>>, %arg5: memref<128x128xf32, #tpu.memory_space<vmem>>, %arg6: memref<1x128xf32, #tpu.memory_space<vmem>>, %arg7: memref<8x128xf32, #tpu.memory_space<vmem>>, %arg8: memref<64x128xf32, #tpu.memory_space<vmem>>) attributes {dimension_semantics = [#tpu.dimension_semantics<arbitrary>], iteration_bounds = array<i64: 1>, scalar_prefetch = 0 : i64, scratch_operands = 1 : i64, tpu.core_type = #tpu.core_type<tc>, window_params = [{pipeline_mode = #tpu.pipeline_mode<synchronous>, transform_indices = @transform_0, window_bounds = array<i64: 64, 128>}, {pipeline_mode = #tpu.pipeline_mode<synchronous>, transform_indices = @transform_1, window_bounds = array<i64: 2, 128, 512>}, {pipeline_mode = #tpu.pipeline_mode<synchronous>, transform_indices = @transform_2, window_bounds = array<i64: 2, 128, 512>}, {pipeline_mode = #tpu.pipeline_mode<synchronous>, transform_indices = @transform_3, window_bounds = array<i64: 2, 1, 512>}, {pipeline_mode = #tpu.pipeline_mode<synchronous>, transform_indices = @transform_4, window_bounds = array<i64: 128, 128>}, {pipeline_mode = #tpu.pipeline_mode<synchronous>, transform_indices = @transform_5, window_bounds = array<i64: 1, 128>}, {pipeline_mode = #tpu.pipeline_mode<synchronous>, transform_indices = @transform_6, window_bounds = array<i64: 8, 128>}]} {
    %c0 = arith.constant 0 : index
    %c0_0 = arith.constant 0 : index
    %0 = vector.load %arg1[%c0, %c0_0] : memref<64x128xf32, #tpu.memory_space<vmem>>, vector<64x128xf32>
    %c0_1 = arith.constant 0 : index
    %c0_2 = arith.constant 0 : index
    %1 = vector.load %arg8[%c0_1, %c0_2] : memref<64x128xf32, #tpu.memory_space<vmem>>, vector<64x128xf32>
    tpu.vector_store %arg8[%c0_1, %c0_2], %0 {strides = array<i32>} : memref<64x128xf32, #tpu.memory_space<vmem>>, vector<64x128xf32>,
    %c0_3 = arith.constant 0 : index
    %c0_4 = arith.constant 0 : index
    %2 = vector.load %arg8[%c0_3, %c0_4] : memref<64x128xf32, #tpu.memory_space<vmem>>, vector<64x128xf32>
    %c0_5 = arith.constant 0 : index
    %c0_6 = arith.constant 0 : index
    %c0_7 = arith.constant 0 : index
    %3 = vector.load %arg2[%c0_5, %c0_6, %c0_7] : memref<2x128x512xf32, #tpu.memory_space<vmem>>, vector<1x128x512xf32>
    %4 = vector.shape_cast %3 : vector<1x128x512xf32> to vector<128x512xf32>
    %cst = arith.constant dense<0.000000e+00> : vector<64x512xf32>
    %5 = tpu.matmul %2, %4, %cst {dimension_numbers = #tpu.dot_dimension_numbers<[1], [0], [0], [1], [0, 0, 1, 1], [], []>} : vector<64x128xf32>, vector<128x512xf32>, vector<64x512xf32> -> vector<64x512xf32>
    %c0_8 = arith.constant 0 : index
    %c0_9 = arith.constant 0 : index
    %c0_10 = arith.constant 0 : index
    %6 = vector.load %arg4[%c0_8, %c0_9, %c0_10] : memref<2x1x512xf32, #tpu.memory_space<vmem>>, vector<1x1x512xf32>
    %7 = vector.shape_cast %6 : vector<1x1x512xf32> to vector<1x512xf32>
    %8 = vector.broadcast %7 : vector<1x512xf32> to vector<64x512xf32>
    %9 = arith.addf %5, %8 : vector<64x512xf32>
    %c0_11 = arith.constant 0 : index
    %c0_12 = arith.constant 0 : index
    %c0_13 = arith.constant 0 : index
    %10 = vector.load %arg3[%c0_11, %c0_12, %c0_13] : memref<2x128x512xf32, #tpu.memory_space<vmem>>, vector<1x128x512xf32>
    %11 = vector.shape_cast %10 : vector<1x128x512xf32> to vector<128x512xf32>
    %cst_14 = arith.constant 0.000000e+00 : f32
    %12 = vector.broadcast %cst_14 : f32 to vector<8x128xf32>
    %cst_15 = arith.constant 0.000000e+00 : f32
    %13 = vector.broadcast %cst_15 : f32 to vector<8x128xf32>
    %14 = vector.extract_strided_slice %9 {offsets = [0, 0], sizes = [8, 512], strides = [1, 1]} : vector<64x512xf32> to vector<8x512xf32>
    %cst_16 = arith.constant dense<0.000000e+00> : vector<8x512xf32>
    %15 = tpu.matmul %12, %11, %cst_16 {dimension_numbers = #tpu.dot_dimension_numbers<[1], [0], [0], [1], [0, 0, 1, 1], [], []>} : vector<8x128xf32>, vector<128x512xf32>, vector<8x512xf32> -> vector<8x512xf32>
    %16 = arith.addf %14, %15 : vector<8x512xf32>
    %17 = vector.extract_strided_slice %16 {offsets = [0, 0], sizes = [8, 128], strides = [1, 1]} : vector<8x512xf32> to vector<8x128xf32>
    %18 = arith.negf %17 : vector<8x128xf32>
    %19 = math.exp %18 : vector<8x128xf32>
    %cst_17 = arith.constant 1.000000e+00 : f32
    %20 = vector.broadcast %cst_17 : f32 to vector<8x128xf32>
    %21 = arith.addf %20, %19 : vector<8x128xf32>
    %22 = arith.divf %20, %21 : vector<8x128xf32>
    %23 = vector.extract_strided_slice %16 {offsets = [0, 128], sizes = [8, 128], strides = [1, 1]} : vector<8x512xf32> to vector<8x128xf32>
    %24 = arith.negf %23 : vector<8x128xf32>
    %25 = math.exp %24 : vector<8x128xf32>
    %cst_18 = arith.constant 1.000000e+00 : f32
    %26 = vector.broadcast %cst_18 : f32 to vector<8x128xf32>
    %27 = arith.addf %26, %25 : vector<8x128xf32>
    %28 = arith.divf %26, %27 : vector<8x128xf32>
    %29 = vector.extract_strided_slice %16 {offsets = [0, 256], sizes = [8, 128], strides = [1, 1]} : vector<8x512xf32> to vector<8x128xf32>
    %30 = math.tanh %29 : vector<8x128xf32>
    %31 = vector.extract_strided_slice %16 {offsets = [0, 384], sizes = [8, 128], strides = [1, 1]} : vector<8x512xf32> to vector<8x128xf32>
    %32 = arith.negf %31 : vector<8x128xf32>
    %33 = math.exp %32 : vector<8x128xf32>
    %cst_19 = arith.constant 1.000000e+00 : f32
    %34 = vector.broadcast %cst_19 : f32 to vector<8x128xf32>
    %35 = arith.addf %34, %33 : vector<8x128xf32>
    %36 = arith.divf %34, %35 : vector<8x128xf32>
    %37 = arith.mulf %28, %13 : vector<8x128xf32>
    %38 = arith.mulf %22, %30 : vector<8x128xf32>
    %39 = arith.addf %37, %38 : vector<8x128xf32>
    %40 = math.tanh %39 : vector<8x128xf32>
    %41 = arith.mulf %36, %40 : vector<8x128xf32>
    %c0_20 = arith.constant 0 : index
    %c0_21 = arith.constant 0 : index
    %42 = vector.load %arg8[%c0_20, %c0_21] : memref<64x128xf32, #tpu.memory_space<vmem>>, vector<8x128xf32>
    tpu.vector_store %arg8[%c0_20, %c0_21], %41 {strides = array<i32>} : memref<64x128xf32, #tpu.memory_space<vmem>>, vector<8x128xf32>,
    %43 = vector.extract_strided_slice %9 {offsets = [8, 0], sizes = [8, 512], strides = [1, 1]} : vector<64x512xf32> to vector<8x512xf32>
    %cst_22 = arith.constant dense<0.000000e+00> : vector<8x512xf32>
    %44 = tpu.matmul %41, %11, %cst_22 {dimension_numbers = #tpu.dot_dimension_numbers<[1], [0], [0], [1], [0, 0, 1, 1], [], []>} : vector<8x128xf32>, vector<128x512xf32>, vector<8x512xf32> -> vector<8x512xf32>
    %45 = arith.addf %43, %44 : vector<8x512xf32>
    %46 = vector.extract_strided_slice %45 {offsets = [0, 0], sizes = [8, 128], strides = [1, 1]} : vector<8x512xf32> to vector<8x128xf32>
    %47 = arith.negf %46 : vector<8x128xf32>
    %48 = math.exp %47 : vector<8x128xf32>
    %cst_23 = arith.constant 1.000000e+00 : f32
    %49 = vector.broadcast %cst_23 : f32 to vector<8x128xf32>
    %50 = arith.addf %49, %48 : vector<8x128xf32>
    %51 = arith.divf %49, %50 : vector<8x128xf32>
    %52 = vector.extract_strided_slice %45 {offsets = [0, 128], sizes = [8, 128], strides = [1, 1]} : vector<8x512xf32> to vector<8x128xf32>
    %53 = arith.negf %52 : vector<8x128xf32>
    %54 = math.exp %53 : vector<8x128xf32>
    %cst_24 = arith.constant 1.000000e+00 : f32
    %55 = vector.broadcast %cst_24 : f32 to vector<8x128xf32>
    %56 = arith.addf %55, %54 : vector<8x128xf32>
    %57 = arith.divf %55, %56 : vector<8x128xf32>
    %58 = vector.extract_strided_slice %45 {offsets = [0, 256], sizes = [8, 128], strides = [1, 1]} : vector<8x512xf32> to vector<8x128xf32>
    %59 = math.tanh %58 : vector<8x128xf32>
    %60 = vector.extract_strided_slice %45 {offsets = [0, 384], sizes = [8, 128], strides = [1, 1]} : vector<8x512xf32> to vector<8x128xf32>
    %61 = arith.negf %60 : vector<8x128xf32>
    %62 = math.exp %61 : vector<8x128xf32>
    %cst_25 = arith.constant 1.000000e+00 : f32
    %63 = vector.broadcast %cst_25 : f32 to vector<8x128xf32>
    %64 = arith.addf %63, %62 : vector<8x128xf32>
    %65 = arith.divf %63, %64 : vector<8x128xf32>
    %66 = arith.mulf %57, %39 : vector<8x128xf32>
    %67 = arith.mulf %51, %59 : vector<8x128xf32>
    %68 = arith.addf %66, %67 : vector<8x128xf32>
    %69 = math.tanh %68 : vector<8x128xf32>
    %70 = arith.mulf %65, %69 : vector<8x128xf32>
    %c8 = arith.constant 8 : index
    %c0_26 = arith.constant 0 : index
    %71 = vector.load %arg8[%c8, %c0_26] : memref<64x128xf32, #tpu.memory_space<vmem>>, vector<8x128xf32>
    tpu.vector_store %arg8[%c8, %c0_26], %70 {strides = array<i32>} : memref<64x128xf32, #tpu.memory_space<vmem>>, vector<8x128xf32>,
    %72 = vector.extract_strided_slice %9 {offsets = [16, 0], sizes = [8, 512], strides = [1, 1]} : vector<64x512xf32> to vector<8x512xf32>
    %cst_27 = arith.constant dense<0.000000e+00> : vector<8x512xf32>
    %73 = tpu.matmul %70, %11, %cst_27 {dimension_numbers = #tpu.dot_dimension_numbers<[1], [0], [0], [1], [0, 0, 1, 1], [], []>} : vector<8x128xf32>, vector<128x512xf32>, vector<8x512xf32> -> vector<8x512xf32>
    %74 = arith.addf %72, %73 : vector<8x512xf32>
    %75 = vector.extract_strided_slice %74 {offsets = [0, 0], sizes = [8, 128], strides = [1, 1]} : vector<8x512xf32> to vector<8x128xf32>
    %76 = arith.negf %75 : vector<8x128xf32>
    %77 = math.exp %76 : vector<8x128xf32>
    %cst_28 = arith.constant 1.000000e+00 : f32
    %78 = vector.broadcast %cst_28 : f32 to vector<8x128xf32>
    %79 = arith.addf %78, %77 : vector<8x128xf32>
    %80 = arith.divf %78, %79 : vector<8x128xf32>
    %81 = vector.extract_strided_slice %74 {offsets = [0, 128], sizes = [8, 128], strides = [1, 1]} : vector<8x512xf32> to vector<8x128xf32>
    %82 = arith.negf %81 : vector<8x128xf32>
    %83 = math.exp %82 : vector<8x128xf32>
    %cst_29 = arith.constant 1.000000e+00 : f32
    %84 = vector.broadcast %cst_29 : f32 to vector<8x128xf32>
    %85 = arith.addf %84, %83 : vector<8x128xf32>
    %86 = arith.divf %84, %85 : vector<8x128xf32>
    %87 = vector.extract_strided_slice %74 {offsets = [0, 256], sizes = [8, 128], strides = [1, 1]} : vector<8x512xf32> to vector<8x128xf32>
    %88 = math.tanh %87 : vector<8x128xf32>
    %89 = vector.extract_strided_slice %74 {offsets = [0, 384], sizes = [8, 128], strides = [1, 1]} : vector<8x512xf32> to vector<8x128xf32>
    %90 = arith.negf %89 : vector<8x128xf32>
    %91 = math.exp %90 : vector<8x128xf32>
    %cst_30 = arith.constant 1.000000e+00 : f32
    %92 = vector.broadcast %cst_30 : f32 to vector<8x128xf32>
    %93 = arith.addf %92, %91 : vector<8x128xf32>
    %94 = arith.divf %92, %93 : vector<8x128xf32>
    %95 = arith.mulf %86, %68 : vector<8x128xf32>
    %96 = arith.mulf %80, %88 : vector<8x128xf32>
    %97 = arith.addf %95, %96 : vector<8x128xf32>
    %98 = math.tanh %97 : vector<8x128xf32>
    %99 = arith.mulf %94, %98 : vector<8x128xf32>
    %c16 = arith.constant 16 : index
    %c0_31 = arith.constant 0 : index
    %100 = vector.load %arg8[%c16, %c0_31] : memref<64x128xf32, #tpu.memory_space<vmem>>, vector<8x128xf32>
    tpu.vector_store %arg8[%c16, %c0_31], %99 {strides = array<i32>} : memref<64x128xf32, #tpu.memory_space<vmem>>, vector<8x128xf32>,
    %101 = vector.extract_strided_slice %9 {offsets = [24, 0], sizes = [8, 512], strides = [1, 1]} : vector<64x512xf32> to vector<8x512xf32>
    %cst_32 = arith.constant dense<0.000000e+00> : vector<8x512xf32>
    %102 = tpu.matmul %99, %11, %cst_32 {dimension_numbers = #tpu.dot_dimension_numbers<[1], [0], [0], [1], [0, 0, 1, 1], [], []>} : vector<8x128xf32>, vector<128x512xf32>, vector<8x512xf32> -> vector<8x512xf32>
    %103 = arith.addf %101, %102 : vector<8x512xf32>
    %104 = vector.extract_strided_slice %103 {offsets = [0, 0], sizes = [8, 128], strides = [1, 1]} : vector<8x512xf32> to vector<8x128xf32>
    %105 = arith.negf %104 : vector<8x128xf32>
    %106 = math.exp %105 : vector<8x128xf32>
    %cst_33 = arith.constant 1.000000e+00 : f32
    %107 = vector.broadcast %cst_33 : f32 to vector<8x128xf32>
    %108 = arith.addf %107, %106 : vector<8x128xf32>
    %109 = arith.divf %107, %108 : vector<8x128xf32>
    %110 = vector.extract_strided_slice %103 {offsets = [0, 128], sizes = [8, 128], strides = [1, 1]} : vector<8x512xf32> to vector<8x128xf32>
    %111 = arith.negf %110 : vector<8x128xf32>
    %112 = math.exp %111 : vector<8x128xf32>
    %cst_34 = arith.constant 1.000000e+00 : f32
    %113 = vector.broadcast %cst_34 : f32 to vector<8x128xf32>
    %114 = arith.addf %113, %112 : vector<8x128xf32>
    %115 = arith.divf %113, %114 : vector<8x128xf32>
    %116 = vector.extract_strided_slice %103 {offsets = [0, 256], sizes = [8, 128], strides = [1, 1]} : vector<8x512xf32> to vector<8x128xf32>
    %117 = math.tanh %116 : vector<8x128xf32>
    %118 = vector.extract_strided_slice %103 {offsets = [0, 384], sizes = [8, 128], strides = [1, 1]} : vector<8x512xf32> to vector<8x128xf32>
    %119 = arith.negf %118 : vector<8x128xf32>
    %120 = math.exp %119 : vector<8x128xf32>
    %cst_35 = arith.constant 1.000000e+00 : f32
    %121 = vector.broadcast %cst_35 : f32 to vector<8x128xf32>
    %122 = arith.addf %121, %120 : vector<8x128xf32>
    %123 = arith.divf %121, %122 : vector<8x128xf32>
    %124 = arith.mulf %115, %97 : vector<8x128xf32>
    %125 = arith.mulf %109, %117 : vector<8x128xf32>
    %126 = arith.addf %124, %125 : vector<8x128xf32>
    %127 = math.tanh %126 : vector<8x128xf32>
    %128 = arith.mulf %123, %127 : vector<8x128xf32>
    %c24 = arith.constant 24 : index
    %c0_36 = arith.constant 0 : index
    %129 = vector.load %arg8[%c24, %c0_36] : memref<64x128xf32, #tpu.memory_space<vmem>>, vector<8x128xf32>
    tpu.vector_store %arg8[%c24, %c0_36], %128 {strides = array<i32>} : memref<64x128xf32, #tpu.memory_space<vmem>>, vector<8x128xf32>,
    %130 = vector.extract_strided_slice %9 {offsets = [32, 0], sizes = [8, 512], strides = [1, 1]} : vector<64x512xf32> to vector<8x512xf32>
    %cst_37 = arith.constant dense<0.000000e+00> : vector<8x512xf32>
    %131 = tpu.matmul %128, %11, %cst_37 {dimension_numbers = #tpu.dot_dimension_numbers<[1], [0], [0], [1], [0, 0, 1, 1], [], []>} : vector<8x128xf32>, vector<128x512xf32>, vector<8x512xf32> -> vector<8x512xf32>
    %132 = arith.addf %130, %131 : vector<8x512xf32>
    %133 = vector.extract_strided_slice %132 {offsets = [0, 0], sizes = [8, 128], strides = [1, 1]} : vector<8x512xf32> to vector<8x128xf32>
    %134 = arith.negf %133 : vector<8x128xf32>
    %135 = math.exp %134 : vector<8x128xf32>
    %cst_38 = arith.constant 1.000000e+00 : f32
    %136 = vector.broadcast %cst_38 : f32 to vector<8x128xf32>
    %137 = arith.addf %136, %135 : vector<8x128xf32>
    %138 = arith.divf %136, %137 : vector<8x128xf32>
    %139 = vector.extract_strided_slice %132 {offsets = [0, 128], sizes = [8, 128], strides = [1, 1]} : vector<8x512xf32> to vector<8x128xf32>
    %140 = arith.negf %139 : vector<8x128xf32>
    %141 = math.exp %140 : vector<8x128xf32>
    %cst_39 = arith.constant 1.000000e+00 : f32
    %142 = vector.broadcast %cst_39 : f32 to vector<8x128xf32>
    %143 = arith.addf %142, %141 : vector<8x128xf32>
    %144 = arith.divf %142, %143 : vector<8x128xf32>
    %145 = vector.extract_strided_slice %132 {offsets = [0, 256], sizes = [8, 128], strides = [1, 1]} : vector<8x512xf32> to vector<8x128xf32>
    %146 = math.tanh %145 : vector<8x128xf32>
    %147 = vector.extract_strided_slice %132 {offsets = [0, 384], sizes = [8, 128], strides = [1, 1]} : vector<8x512xf32> to vector<8x128xf32>
    %148 = arith.negf %147 : vector<8x128xf32>
    %149 = math.exp %148 : vector<8x128xf32>
    %cst_40 = arith.constant 1.000000e+00 : f32
    %150 = vector.broadcast %cst_40 : f32 to vector<8x128xf32>
    %151 = arith.addf %150, %149 : vector<8x128xf32>
    %152 = arith.divf %150, %151 : vector<8x128xf32>
    %153 = arith.mulf %144, %126 : vector<8x128xf32>
    %154 = arith.mulf %138, %146 : vector<8x128xf32>
    %155 = arith.addf %153, %154 : vector<8x128xf32>
    %156 = math.tanh %155 : vector<8x128xf32>
    %157 = arith.mulf %152, %156 : vector<8x128xf32>
    %c32 = arith.constant 32 : index
    %c0_41 = arith.constant 0 : index
    %158 = vector.load %arg8[%c32, %c0_41] : memref<64x128xf32, #tpu.memory_space<vmem>>, vector<8x128xf32>
    tpu.vector_store %arg8[%c32, %c0_41], %157 {strides = array<i32>} : memref<64x128xf32, #tpu.memory_space<vmem>>, vector<8x128xf32>,
    %159 = vector.extract_strided_slice %9 {offsets = [40, 0], sizes = [8, 512], strides = [1, 1]} : vector<64x512xf32> to vector<8x512xf32>
    %cst_42 = arith.constant dense<0.000000e+00> : vector<8x512xf32>
    %160 = tpu.matmul %157, %11, %cst_42 {dimension_numbers = #tpu.dot_dimension_numbers<[1], [0], [0], [1], [0, 0, 1, 1], [], []>} : vector<8x128xf32>, vector<128x512xf32>, vector<8x512xf32> -> vector<8x512xf32>
    %161 = arith.addf %159, %160 : vector<8x512xf32>
    %162 = vector.extract_strided_slice %161 {offsets = [0, 0], sizes = [8, 128], strides = [1, 1]} : vector<8x512xf32> to vector<8x128xf32>
    %163 = arith.negf %162 : vector<8x128xf32>
    %164 = math.exp %163 : vector<8x128xf32>
    %cst_43 = arith.constant 1.000000e+00 : f32
    %165 = vector.broadcast %cst_43 : f32 to vector<8x128xf32>
    %166 = arith.addf %165, %164 : vector<8x128xf32>
    %167 = arith.divf %165, %166 : vector<8x128xf32>
    %168 = vector.extract_strided_slice %161 {offsets = [0, 128], sizes = [8, 128], strides = [1, 1]} : vector<8x512xf32> to vector<8x128xf32>
    %169 = arith.negf %168 : vector<8x128xf32>
    %170 = math.exp %169 : vector<8x128xf32>
    %cst_44 = arith.constant 1.000000e+00 : f32
    %171 = vector.broadcast %cst_44 : f32 to vector<8x128xf32>
    %172 = arith.addf %171, %170 : vector<8x128xf32>
    %173 = arith.divf %171, %172 : vector<8x128xf32>
    %174 = vector.extract_strided_slice %161 {offsets = [0, 256], sizes = [8, 128], strides = [1, 1]} : vector<8x512xf32> to vector<8x128xf32>
    %175 = math.tanh %174 : vector<8x128xf32>
    %176 = vector.extract_strided_slice %161 {offsets = [0, 384], sizes = [8, 128], strides = [1, 1]} : vector<8x512xf32> to vector<8x128xf32>
    %177 = arith.negf %176 : vector<8x128xf32>
    %178 = math.exp %177 : vector<8x128xf32>
    %cst_45 = arith.constant 1.000000e+00 : f32
    %179 = vector.broadcast %cst_45 : f32 to vector<8x128xf32>
    %180 = arith.addf %179, %178 : vector<8x128xf32>
    %181 = arith.divf %179, %180 : vector<8x128xf32>
    %182 = arith.mulf %173, %155 : vector<8x128xf32>
    %183 = arith.mulf %167, %175 : vector<8x128xf32>
    %184 = arith.addf %182, %183 : vector<8x128xf32>
    %185 = math.tanh %184 : vector<8x128xf32>
    %186 = arith.mulf %181, %185 : vector<8x128xf32>
    %c40 = arith.constant 40 : index
    %c0_46 = arith.constant 0 : index
    %187 = vector.load %arg8[%c40, %c0_46] : memref<64x128xf32, #tpu.memory_space<vmem>>, vector<8x128xf32>
    tpu.vector_store %arg8[%c40, %c0_46], %186 {strides = array<i32>} : memref<64x128xf32, #tpu.memory_space<vmem>>, vector<8x128xf32>,
    %188 = vector.extract_strided_slice %9 {offsets = [48, 0], sizes = [8, 512], strides = [1, 1]} : vector<64x512xf32> to vector<8x512xf32>
    %cst_47 = arith.constant dense<0.000000e+00> : vector<8x512xf32>
    %189 = tpu.matmul %186, %11, %cst_47 {dimension_numbers = #tpu.dot_dimension_numbers<[1], [0], [0], [1], [0, 0, 1, 1], [], []>} : vector<8x128xf32>, vector<128x512xf32>, vector<8x512xf32> -> vector<8x512xf32>
    %190 = arith.addf %188, %189 : vector<8x512xf32>
    %191 = vector.extract_strided_slice %190 {offsets = [0, 0], sizes = [8, 128], strides = [1, 1]} : vector<8x512xf32> to vector<8x128xf32>
    %192 = arith.negf %191 : vector<8x128xf32>
    %193 = math.exp %192 : vector<8x128xf32>
    %cst_48 = arith.constant 1.000000e+00 : f32
    %194 = vector.broadcast %cst_48 : f32 to vector<8x128xf32>
    %195 = arith.addf %194, %193 : vector<8x128xf32>
    %196 = arith.divf %194, %195 : vector<8x128xf32>
    %197 = vector.extract_strided_slice %190 {offsets = [0, 128], sizes = [8, 128], strides = [1, 1]} : vector<8x512xf32> to vector<8x128xf32>
    %198 = arith.negf %197 : vector<8x128xf32>
    %199 = math.exp %198 : vector<8x128xf32>
    %cst_49 = arith.constant 1.000000e+00 : f32
    %200 = vector.broadcast %cst_49 : f32 to vector<8x128xf32>
    %201 = arith.addf %200, %199 : vector<8x128xf32>
    %202 = arith.divf %200, %201 : vector<8x128xf32>
    %203 = vector.extract_strided_slice %190 {offsets = [0, 256], sizes = [8, 128], strides = [1, 1]} : vector<8x512xf32> to vector<8x128xf32>
    %204 = math.tanh %203 : vector<8x128xf32>
    %205 = vector.extract_strided_slice %190 {offsets = [0, 384], sizes = [8, 128], strides = [1, 1]} : vector<8x512xf32> to vector<8x128xf32>
    %206 = arith.negf %205 : vector<8x128xf32>
    %207 = math.exp %206 : vector<8x128xf32>
    %cst_50 = arith.constant 1.000000e+00 : f32
    %208 = vector.broadcast %cst_50 : f32 to vector<8x128xf32>
    %209 = arith.addf %208, %207 : vector<8x128xf32>
    %210 = arith.divf %208, %209 : vector<8x128xf32>
    %211 = arith.mulf %202, %184 : vector<8x128xf32>
    %212 = arith.mulf %196, %204 : vector<8x128xf32>
    %213 = arith.addf %211, %212 : vector<8x128xf32>
    %214 = math.tanh %213 : vector<8x128xf32>
    %215 = arith.mulf %210, %214 : vector<8x128xf32>
    %c48 = arith.constant 48 : index
    %c0_51 = arith.constant 0 : index
    %216 = vector.load %arg8[%c48, %c0_51] : memref<64x128xf32, #tpu.memory_space<vmem>>, vector<8x128xf32>
    tpu.vector_store %arg8[%c48, %c0_51], %215 {strides = array<i32>} : memref<64x128xf32, #tpu.memory_space<vmem>>, vector<8x128xf32>,
    %217 = vector.extract_strided_slice %9 {offsets = [56, 0], sizes = [8, 512], strides = [1, 1]} : vector<64x512xf32> to vector<8x512xf32>
    %cst_52 = arith.constant dense<0.000000e+00> : vector<8x512xf32>
    %218 = tpu.matmul %215, %11, %cst_52 {dimension_numbers = #tpu.dot_dimension_numbers<[1], [0], [0], [1], [0, 0, 1, 1], [], []>} : vector<8x128xf32>, vector<128x512xf32>, vector<8x512xf32> -> vector<8x512xf32>
    %219 = arith.addf %217, %218 : vector<8x512xf32>
    %220 = vector.extract_strided_slice %219 {offsets = [0, 0], sizes = [8, 128], strides = [1, 1]} : vector<8x512xf32> to vector<8x128xf32>
    %221 = arith.negf %220 : vector<8x128xf32>
    %222 = math.exp %221 : vector<8x128xf32>
    %cst_53 = arith.constant 1.000000e+00 : f32
    %223 = vector.broadcast %cst_53 : f32 to vector<8x128xf32>
    %224 = arith.addf %223, %222 : vector<8x128xf32>
    %225 = arith.divf %223, %224 : vector<8x128xf32>
    %226 = vector.extract_strided_slice %219 {offsets = [0, 128], sizes = [8, 128], strides = [1, 1]} : vector<8x512xf32> to vector<8x128xf32>
    %227 = arith.negf %226 : vector<8x128xf32>
    %228 = math.exp %227 : vector<8x128xf32>
    %cst_54 = arith.constant 1.000000e+00 : f32
    %229 = vector.broadcast %cst_54 : f32 to vector<8x128xf32>
    %230 = arith.addf %229, %228 : vector<8x128xf32>
    %231 = arith.divf %229, %230 : vector<8x128xf32>
    %232 = vector.extract_strided_slice %219 {offsets = [0, 256], sizes = [8, 128], strides = [1, 1]} : vector<8x512xf32> to vector<8x128xf32>
    %233 = math.tanh %232 : vector<8x128xf32>
    %234 = vector.extract_strided_slice %219 {offsets = [0, 384], sizes = [8, 128], strides = [1, 1]} : vector<8x512xf32> to vector<8x128xf32>
    %235 = arith.negf %234 : vector<8x128xf32>
    %236 = math.exp %235 : vector<8x128xf32>
    %cst_55 = arith.constant 1.000000e+00 : f32
    %237 = vector.broadcast %cst_55 : f32 to vector<8x128xf32>
    %238 = arith.addf %237, %236 : vector<8x128xf32>
    %239 = arith.divf %237, %238 : vector<8x128xf32>
    %240 = arith.mulf %231, %213 : vector<8x128xf32>
    %241 = arith.mulf %225, %233 : vector<8x128xf32>
    %242 = arith.addf %240, %241 : vector<8x128xf32>
    %243 = math.tanh %242 : vector<8x128xf32>
    %244 = arith.mulf %239, %243 : vector<8x128xf32>
    %c56 = arith.constant 56 : index
    %c0_56 = arith.constant 0 : index
    %245 = vector.load %arg8[%c56, %c0_56] : memref<64x128xf32, #tpu.memory_space<vmem>>, vector<8x128xf32>
    tpu.vector_store %arg8[%c56, %c0_56], %244 {strides = array<i32>} : memref<64x128xf32, #tpu.memory_space<vmem>>, vector<8x128xf32>,
    %c0_57 = arith.constant 0 : index
    %c0_58 = arith.constant 0 : index
    %246 = vector.load %arg8[%c0_57, %c0_58] : memref<64x128xf32, #tpu.memory_space<vmem>>, vector<64x128xf32>
    %c1 = arith.constant 1 : index
    %c0_59 = arith.constant 0 : index
    %c0_60 = arith.constant 0 : index
    %247 = vector.load %arg2[%c1, %c0_59, %c0_60] : memref<2x128x512xf32, #tpu.memory_space<vmem>>, vector<1x128x512xf32>
    %248 = vector.shape_cast %247 : vector<1x128x512xf32> to vector<128x512xf32>
    %cst_61 = arith.constant dense<0.000000e+00> : vector<64x512xf32>
    %249 = tpu.matmul %246, %248, %cst_61 {dimension_numbers = #tpu.dot_dimension_numbers<[1], [0], [0], [1], [0, 0, 1, 1], [], []>} : vector<64x128xf32>, vector<128x512xf32>, vector<64x512xf32> -> vector<64x512xf32>
    %c1_62 = arith.constant 1 : index
    %c0_63 = arith.constant 0 : index
    %c0_64 = arith.constant 0 : index
    %250 = vector.load %arg4[%c1_62, %c0_63, %c0_64] : memref<2x1x512xf32, #tpu.memory_space<vmem>>, vector<1x1x512xf32>
    %251 = vector.shape_cast %250 : vector<1x1x512xf32> to vector<1x512xf32>
    %252 = vector.broadcast %251 : vector<1x512xf32> to vector<64x512xf32>
    %253 = arith.addf %249, %252 : vector<64x512xf32>
    %c1_65 = arith.constant 1 : index
    %c0_66 = arith.constant 0 : index
    %c0_67 = arith.constant 0 : index
    %254 = vector.load %arg3[%c1_65, %c0_66, %c0_67] : memref<2x128x512xf32, #tpu.memory_space<vmem>>, vector<1x128x512xf32>
    %255 = vector.shape_cast %254 : vector<1x128x512xf32> to vector<128x512xf32>
    %cst_68 = arith.constant 0.000000e+00 : f32
    %256 = vector.broadcast %cst_68 : f32 to vector<8x128xf32>
    %cst_69 = arith.constant 0.000000e+00 : f32
    %257 = vector.broadcast %cst_69 : f32 to vector<8x128xf32>
    %258 = vector.extract_strided_slice %253 {offsets = [0, 0], sizes = [8, 512], strides = [1, 1]} : vector<64x512xf32> to vector<8x512xf32>
    %cst_70 = arith.constant dense<0.000000e+00> : vector<8x512xf32>
    %259 = tpu.matmul %256, %255, %cst_70 {dimension_numbers = #tpu.dot_dimension_numbers<[1], [0], [0], [1], [0, 0, 1, 1], [], []>} : vector<8x128xf32>, vector<128x512xf32>, vector<8x512xf32> -> vector<8x512xf32>
    %260 = arith.addf %258, %259 : vector<8x512xf32>
    %261 = vector.extract_strided_slice %260 {offsets = [0, 0], sizes = [8, 128], strides = [1, 1]} : vector<8x512xf32> to vector<8x128xf32>
    %262 = arith.negf %261 : vector<8x128xf32>
    %263 = math.exp %262 : vector<8x128xf32>
    %cst_71 = arith.constant 1.000000e+00 : f32
    %264 = vector.broadcast %cst_71 : f32 to vector<8x128xf32>
    %265 = arith.addf %264, %263 : vector<8x128xf32>
    %266 = arith.divf %264, %265 : vector<8x128xf32>
    %267 = vector.extract_strided_slice %260 {offsets = [0, 128], sizes = [8, 128], strides = [1, 1]} : vector<8x512xf32> to vector<8x128xf32>
    %268 = arith.negf %267 : vector<8x128xf32>
    %269 = math.exp %268 : vector<8x128xf32>
    %cst_72 = arith.constant 1.000000e+00 : f32
    %270 = vector.broadcast %cst_72 : f32 to vector<8x128xf32>
    %271 = arith.addf %270, %269 : vector<8x128xf32>
    %272 = arith.divf %270, %271 : vector<8x128xf32>
    %273 = vector.extract_strided_slice %260 {offsets = [0, 256], sizes = [8, 128], strides = [1, 1]} : vector<8x512xf32> to vector<8x128xf32>
    %274 = math.tanh %273 : vector<8x128xf32>
    %275 = vector.extract_strided_slice %260 {offsets = [0, 384], sizes = [8, 128], strides = [1, 1]} : vector<8x512xf32> to vector<8x128xf32>
    %276 = arith.negf %275 : vector<8x128xf32>
    %277 = math.exp %276 : vector<8x128xf32>
    %cst_73 = arith.constant 1.000000e+00 : f32
    %278 = vector.broadcast %cst_73 : f32 to vector<8x128xf32>
    %279 = arith.addf %278, %277 : vector<8x128xf32>
    %280 = arith.divf %278, %279 : vector<8x128xf32>
    %281 = arith.mulf %272, %257 : vector<8x128xf32>
    %282 = arith.mulf %266, %274 : vector<8x128xf32>
    %283 = arith.addf %281, %282 : vector<8x128xf32>
    %284 = math.tanh %283 : vector<8x128xf32>
    %285 = arith.mulf %280, %284 : vector<8x128xf32>
    %286 = vector.extract_strided_slice %253 {offsets = [8, 0], sizes = [8, 512], strides = [1, 1]} : vector<64x512xf32> to vector<8x512xf32>
    %cst_74 = arith.constant dense<0.000000e+00> : vector<8x512xf32>
    %287 = tpu.matmul %285, %255, %cst_74 {dimension_numbers = #tpu.dot_dimension_numbers<[1], [0], [0], [1], [0, 0, 1, 1], [], []>} : vector<8x128xf32>, vector<128x512xf32>, vector<8x512xf32> -> vector<8x512xf32>
    %288 = arith.addf %286, %287 : vector<8x512xf32>
    %289 = vector.extract_strided_slice %288 {offsets = [0, 0], sizes = [8, 128], strides = [1, 1]} : vector<8x512xf32> to vector<8x128xf32>
    %290 = arith.negf %289 : vector<8x128xf32>
    %291 = math.exp %290 : vector<8x128xf32>
    %cst_75 = arith.constant 1.000000e+00 : f32
    %292 = vector.broadcast %cst_75 : f32 to vector<8x128xf32>
    %293 = arith.addf %292, %291 : vector<8x128xf32>
    %294 = arith.divf %292, %293 : vector<8x128xf32>
    %295 = vector.extract_strided_slice %288 {offsets = [0, 128], sizes = [8, 128], strides = [1, 1]} : vector<8x512xf32> to vector<8x128xf32>
    %296 = arith.negf %295 : vector<8x128xf32>
    %297 = math.exp %296 : vector<8x128xf32>
    %cst_76 = arith.constant 1.000000e+00 : f32
    %298 = vector.broadcast %cst_76 : f32 to vector<8x128xf32>
    %299 = arith.addf %298, %297 : vector<8x128xf32>
    %300 = arith.divf %298, %299 : vector<8x128xf32>
    %301 = vector.extract_strided_slice %288 {offsets = [0, 256], sizes = [8, 128], strides = [1, 1]} : vector<8x512xf32> to vector<8x128xf32>
    %302 = math.tanh %301 : vector<8x128xf32>
    %303 = vector.extract_strided_slice %288 {offsets = [0, 384], sizes = [8, 128], strides = [1, 1]} : vector<8x512xf32> to vector<8x128xf32>
    %304 = arith.negf %303 : vector<8x128xf32>
    %305 = math.exp %304 : vector<8x128xf32>
    %cst_77 = arith.constant 1.000000e+00 : f32
    %306 = vector.broadcast %cst_77 : f32 to vector<8x128xf32>
    %307 = arith.addf %306, %305 : vector<8x128xf32>
    %308 = arith.divf %306, %307 : vector<8x128xf32>
    %309 = arith.mulf %300, %283 : vector<8x128xf32>
    %310 = arith.mulf %294, %302 : vector<8x128xf32>
    %311 = arith.addf %309, %310 : vector<8x128xf32>
    %312 = math.tanh %311 : vector<8x128xf32>
    %313 = arith.mulf %308, %312 : vector<8x128xf32>
    %314 = vector.extract_strided_slice %253 {offsets = [16, 0], sizes = [8, 512], strides = [1, 1]} : vector<64x512xf32> to vector<8x512xf32>
    %cst_78 = arith.constant dense<0.000000e+00> : vector<8x512xf32>
    %315 = tpu.matmul %313, %255, %cst_78 {dimension_numbers = #tpu.dot_dimension_numbers<[1], [0], [0], [1], [0, 0, 1, 1], [], []>} : vector<8x128xf32>, vector<128x512xf32>, vector<8x512xf32> -> vector<8x512xf32>
    %316 = arith.addf %314, %315 : vector<8x512xf32>
    %317 = vector.extract_strided_slice %316 {offsets = [0, 0], sizes = [8, 128], strides = [1, 1]} : vector<8x512xf32> to vector<8x128xf32>
    %318 = arith.negf %317 : vector<8x128xf32>
    %319 = math.exp %318 : vector<8x128xf32>
    %cst_79 = arith.constant 1.000000e+00 : f32
    %320 = vector.broadcast %cst_79 : f32 to vector<8x128xf32>
    %321 = arith.addf %320, %319 : vector<8x128xf32>
    %322 = arith.divf %320, %321 : vector<8x128xf32>
    %323 = vector.extract_strided_slice %316 {offsets = [0, 128], sizes = [8, 128], strides = [1, 1]} : vector<8x512xf32> to vector<8x128xf32>
    %324 = arith.negf %323 : vector<8x128xf32>
    %325 = math.exp %324 : vector<8x128xf32>
    %cst_80 = arith.constant 1.000000e+00 : f32
    %326 = vector.broadcast %cst_80 : f32 to vector<8x128xf32>
    %327 = arith.addf %326, %325 : vector<8x128xf32>
    %328 = arith.divf %326, %327 : vector<8x128xf32>
    %329 = vector.extract_strided_slice %316 {offsets = [0, 256], sizes = [8, 128], strides = [1, 1]} : vector<8x512xf32> to vector<8x128xf32>
    %330 = math.tanh %329 : vector<8x128xf32>
    %331 = vector.extract_strided_slice %316 {offsets = [0, 384], sizes = [8, 128], strides = [1, 1]} : vector<8x512xf32> to vector<8x128xf32>
    %332 = arith.negf %331 : vector<8x128xf32>
    %333 = math.exp %332 : vector<8x128xf32>
    %cst_81 = arith.constant 1.000000e+00 : f32
    %334 = vector.broadcast %cst_81 : f32 to vector<8x128xf32>
    %335 = arith.addf %334, %333 : vector<8x128xf32>
    %336 = arith.divf %334, %335 : vector<8x128xf32>
    %337 = arith.mulf %328, %311 : vector<8x128xf32>
    %338 = arith.mulf %322, %330 : vector<8x128xf32>
    %339 = arith.addf %337, %338 : vector<8x128xf32>
    %340 = math.tanh %339 : vector<8x128xf32>
    %341 = arith.mulf %336, %340 : vector<8x128xf32>
    %342 = vector.extract_strided_slice %253 {offsets = [24, 0], sizes = [8, 512], strides = [1, 1]} : vector<64x512xf32> to vector<8x512xf32>
    %cst_82 = arith.constant dense<0.000000e+00> : vector<8x512xf32>
    %343 = tpu.matmul %341, %255, %cst_82 {dimension_numbers = #tpu.dot_dimension_numbers<[1], [0], [0], [1], [0, 0, 1, 1], [], []>} : vector<8x128xf32>, vector<128x512xf32>, vector<8x512xf32> -> vector<8x512xf32>
    %344 = arith.addf %342, %343 : vector<8x512xf32>
    %345 = vector.extract_strided_slice %344 {offsets = [0, 0], sizes = [8, 128], strides = [1, 1]} : vector<8x512xf32> to vector<8x128xf32>
    %346 = arith.negf %345 : vector<8x128xf32>
    %347 = math.exp %346 : vector<8x128xf32>
    %cst_83 = arith.constant 1.000000e+00 : f32
    %348 = vector.broadcast %cst_83 : f32 to vector<8x128xf32>
    %349 = arith.addf %348, %347 : vector<8x128xf32>
    %350 = arith.divf %348, %349 : vector<8x128xf32>
    %351 = vector.extract_strided_slice %344 {offsets = [0, 128], sizes = [8, 128], strides = [1, 1]} : vector<8x512xf32> to vector<8x128xf32>
    %352 = arith.negf %351 : vector<8x128xf32>
    %353 = math.exp %352 : vector<8x128xf32>
    %cst_84 = arith.constant 1.000000e+00 : f32
    %354 = vector.broadcast %cst_84 : f32 to vector<8x128xf32>
    %355 = arith.addf %354, %353 : vector<8x128xf32>
    %356 = arith.divf %354, %355 : vector<8x128xf32>
    %357 = vector.extract_strided_slice %344 {offsets = [0, 256], sizes = [8, 128], strides = [1, 1]} : vector<8x512xf32> to vector<8x128xf32>
    %358 = math.tanh %357 : vector<8x128xf32>
    %359 = vector.extract_strided_slice %344 {offsets = [0, 384], sizes = [8, 128], strides = [1, 1]} : vector<8x512xf32> to vector<8x128xf32>
    %360 = arith.negf %359 : vector<8x128xf32>
    %361 = math.exp %360 : vector<8x128xf32>
    %cst_85 = arith.constant 1.000000e+00 : f32
    %362 = vector.broadcast %cst_85 : f32 to vector<8x128xf32>
    %363 = arith.addf %362, %361 : vector<8x128xf32>
    %364 = arith.divf %362, %363 : vector<8x128xf32>
    %365 = arith.mulf %356, %339 : vector<8x128xf32>
    %366 = arith.mulf %350, %358 : vector<8x128xf32>
    %367 = arith.addf %365, %366 : vector<8x128xf32>
    %368 = math.tanh %367 : vector<8x128xf32>
    %369 = arith.mulf %364, %368 : vector<8x128xf32>
    %370 = vector.extract_strided_slice %253 {offsets = [32, 0], sizes = [8, 512], strides = [1, 1]} : vector<64x512xf32> to vector<8x512xf32>
    %cst_86 = arith.constant dense<0.000000e+00> : vector<8x512xf32>
    %371 = tpu.matmul %369, %255, %cst_86 {dimension_numbers = #tpu.dot_dimension_numbers<[1], [0], [0], [1], [0, 0, 1, 1], [], []>} : vector<8x128xf32>, vector<128x512xf32>, vector<8x512xf32> -> vector<8x512xf32>
    %372 = arith.addf %370, %371 : vector<8x512xf32>
    %373 = vector.extract_strided_slice %372 {offsets = [0, 0], sizes = [8, 128], strides = [1, 1]} : vector<8x512xf32> to vector<8x128xf32>
    %374 = arith.negf %373 : vector<8x128xf32>
    %375 = math.exp %374 : vector<8x128xf32>
    %cst_87 = arith.constant 1.000000e+00 : f32
    %376 = vector.broadcast %cst_87 : f32 to vector<8x128xf32>
    %377 = arith.addf %376, %375 : vector<8x128xf32>
    %378 = arith.divf %376, %377 : vector<8x128xf32>
    %379 = vector.extract_strided_slice %372 {offsets = [0, 128], sizes = [8, 128], strides = [1, 1]} : vector<8x512xf32> to vector<8x128xf32>
    %380 = arith.negf %379 : vector<8x128xf32>
    %381 = math.exp %380 : vector<8x128xf32>
    %cst_88 = arith.constant 1.000000e+00 : f32
    %382 = vector.broadcast %cst_88 : f32 to vector<8x128xf32>
    %383 = arith.addf %382, %381 : vector<8x128xf32>
    %384 = arith.divf %382, %383 : vector<8x128xf32>
    %385 = vector.extract_strided_slice %372 {offsets = [0, 256], sizes = [8, 128], strides = [1, 1]} : vector<8x512xf32> to vector<8x128xf32>
    %386 = math.tanh %385 : vector<8x128xf32>
    %387 = vector.extract_strided_slice %372 {offsets = [0, 384], sizes = [8, 128], strides = [1, 1]} : vector<8x512xf32> to vector<8x128xf32>
    %388 = arith.negf %387 : vector<8x128xf32>
    %389 = math.exp %388 : vector<8x128xf32>
    %cst_89 = arith.constant 1.000000e+00 : f32
    %390 = vector.broadcast %cst_89 : f32 to vector<8x128xf32>
    %391 = arith.addf %390, %389 : vector<8x128xf32>
    %392 = arith.divf %390, %391 : vector<8x128xf32>
    %393 = arith.mulf %384, %367 : vector<8x128xf32>
    %394 = arith.mulf %378, %386 : vector<8x128xf32>
    %395 = arith.addf %393, %394 : vector<8x128xf32>
    %396 = math.tanh %395 : vector<8x128xf32>
    %397 = arith.mulf %392, %396 : vector<8x128xf32>
    %398 = vector.extract_strided_slice %253 {offsets = [40, 0], sizes = [8, 512], strides = [1, 1]} : vector<64x512xf32> to vector<8x512xf32>
    %cst_90 = arith.constant dense<0.000000e+00> : vector<8x512xf32>
    %399 = tpu.matmul %397, %255, %cst_90 {dimension_numbers = #tpu.dot_dimension_numbers<[1], [0], [0], [1], [0, 0, 1, 1], [], []>} : vector<8x128xf32>, vector<128x512xf32>, vector<8x512xf32> -> vector<8x512xf32>
    %400 = arith.addf %398, %399 : vector<8x512xf32>
    %401 = vector.extract_strided_slice %400 {offsets = [0, 0], sizes = [8, 128], strides = [1, 1]} : vector<8x512xf32> to vector<8x128xf32>
    %402 = arith.negf %401 : vector<8x128xf32>
    %403 = math.exp %402 : vector<8x128xf32>
    %cst_91 = arith.constant 1.000000e+00 : f32
    %404 = vector.broadcast %cst_91 : f32 to vector<8x128xf32>
    %405 = arith.addf %404, %403 : vector<8x128xf32>
    %406 = arith.divf %404, %405 : vector<8x128xf32>
    %407 = vector.extract_strided_slice %400 {offsets = [0, 128], sizes = [8, 128], strides = [1, 1]} : vector<8x512xf32> to vector<8x128xf32>
    %408 = arith.negf %407 : vector<8x128xf32>
    %409 = math.exp %408 : vector<8x128xf32>
    %cst_92 = arith.constant 1.000000e+00 : f32
    %410 = vector.broadcast %cst_92 : f32 to vector<8x128xf32>
    %411 = arith.addf %410, %409 : vector<8x128xf32>
    %412 = arith.divf %410, %411 : vector<8x128xf32>
    %413 = vector.extract_strided_slice %400 {offsets = [0, 256], sizes = [8, 128], strides = [1, 1]} : vector<8x512xf32> to vector<8x128xf32>
    %414 = math.tanh %413 : vector<8x128xf32>
    %415 = vector.extract_strided_slice %400 {offsets = [0, 384], sizes = [8, 128], strides = [1, 1]} : vector<8x512xf32> to vector<8x128xf32>
    %416 = arith.negf %415 : vector<8x128xf32>
    %417 = math.exp %416 : vector<8x128xf32>
    %cst_93 = arith.constant 1.000000e+00 : f32
    %418 = vector.broadcast %cst_93 : f32 to vector<8x128xf32>
    %419 = arith.addf %418, %417 : vector<8x128xf32>
    %420 = arith.divf %418, %419 : vector<8x128xf32>
    %421 = arith.mulf %412, %395 : vector<8x128xf32>
    %422 = arith.mulf %406, %414 : vector<8x128xf32>
    %423 = arith.addf %421, %422 : vector<8x128xf32>
    %424 = math.tanh %423 : vector<8x128xf32>
    %425 = arith.mulf %420, %424 : vector<8x128xf32>
    %426 = vector.extract_strided_slice %253 {offsets = [48, 0], sizes = [8, 512], strides = [1, 1]} : vector<64x512xf32> to vector<8x512xf32>
    %cst_94 = arith.constant dense<0.000000e+00> : vector<8x512xf32>
    %427 = tpu.matmul %425, %255, %cst_94 {dimension_numbers = #tpu.dot_dimension_numbers<[1], [0], [0], [1], [0, 0, 1, 1], [], []>} : vector<8x128xf32>, vector<128x512xf32>, vector<8x512xf32> -> vector<8x512xf32>
    %428 = arith.addf %426, %427 : vector<8x512xf32>
    %429 = vector.extract_strided_slice %428 {offsets = [0, 0], sizes = [8, 128], strides = [1, 1]} : vector<8x512xf32> to vector<8x128xf32>
    %430 = arith.negf %429 : vector<8x128xf32>
    %431 = math.exp %430 : vector<8x128xf32>
    %cst_95 = arith.constant 1.000000e+00 : f32
    %432 = vector.broadcast %cst_95 : f32 to vector<8x128xf32>
    %433 = arith.addf %432, %431 : vector<8x128xf32>
    %434 = arith.divf %432, %433 : vector<8x128xf32>
    %435 = vector.extract_strided_slice %428 {offsets = [0, 128], sizes = [8, 128], strides = [1, 1]} : vector<8x512xf32> to vector<8x128xf32>
    %436 = arith.negf %435 : vector<8x128xf32>
    %437 = math.exp %436 : vector<8x128xf32>
    %cst_96 = arith.constant 1.000000e+00 : f32
    %438 = vector.broadcast %cst_96 : f32 to vector<8x128xf32>
    %439 = arith.addf %438, %437 : vector<8x128xf32>
    %440 = arith.divf %438, %439 : vector<8x128xf32>
    %441 = vector.extract_strided_slice %428 {offsets = [0, 256], sizes = [8, 128], strides = [1, 1]} : vector<8x512xf32> to vector<8x128xf32>
    %442 = math.tanh %441 : vector<8x128xf32>
    %443 = vector.extract_strided_slice %428 {offsets = [0, 384], sizes = [8, 128], strides = [1, 1]} : vector<8x512xf32> to vector<8x128xf32>
    %444 = arith.negf %443 : vector<8x128xf32>
    %445 = math.exp %444 : vector<8x128xf32>
    %cst_97 = arith.constant 1.000000e+00 : f32
    %446 = vector.broadcast %cst_97 : f32 to vector<8x128xf32>
    %447 = arith.addf %446, %445 : vector<8x128xf32>
    %448 = arith.divf %446, %447 : vector<8x128xf32>
    %449 = arith.mulf %440, %423 : vector<8x128xf32>
    %450 = arith.mulf %434, %442 : vector<8x128xf32>
    %451 = arith.addf %449, %450 : vector<8x128xf32>
    %452 = math.tanh %451 : vector<8x128xf32>
    %453 = arith.mulf %448, %452 : vector<8x128xf32>
    %454 = vector.extract_strided_slice %253 {offsets = [56, 0], sizes = [8, 512], strides = [1, 1]} : vector<64x512xf32> to vector<8x512xf32>
    %cst_98 = arith.constant dense<0.000000e+00> : vector<8x512xf32>
    %455 = tpu.matmul %453, %255, %cst_98 {dimension_numbers = #tpu.dot_dimension_numbers<[1], [0], [0], [1], [0, 0, 1, 1], [], []>} : vector<8x128xf32>, vector<128x512xf32>, vector<8x512xf32> -> vector<8x512xf32>
    %456 = arith.addf %454, %455 : vector<8x512xf32>
    %457 = vector.extract_strided_slice %456 {offsets = [0, 0], sizes = [8, 128], strides = [1, 1]} : vector<8x512xf32> to vector<8x128xf32>
    %458 = arith.negf %457 : vector<8x128xf32>
    %459 = math.exp %458 : vector<8x128xf32>
    %cst_99 = arith.constant 1.000000e+00 : f32
    %460 = vector.broadcast %cst_99 : f32 to vector<8x128xf32>
    %461 = arith.addf %460, %459 : vector<8x128xf32>
    %462 = arith.divf %460, %461 : vector<8x128xf32>
    %463 = vector.extract_strided_slice %456 {offsets = [0, 128], sizes = [8, 128], strides = [1, 1]} : vector<8x512xf32> to vector<8x128xf32>
    %464 = arith.negf %463 : vector<8x128xf32>
    %465 = math.exp %464 : vector<8x128xf32>
    %cst_100 = arith.constant 1.000000e+00 : f32
    %466 = vector.broadcast %cst_100 : f32 to vector<8x128xf32>
    %467 = arith.addf %466, %465 : vector<8x128xf32>
    %468 = arith.divf %466, %467 : vector<8x128xf32>
    %469 = vector.extract_strided_slice %456 {offsets = [0, 256], sizes = [8, 128], strides = [1, 1]} : vector<8x512xf32> to vector<8x128xf32>
    %470 = math.tanh %469 : vector<8x128xf32>
    %471 = vector.extract_strided_slice %456 {offsets = [0, 384], sizes = [8, 128], strides = [1, 1]} : vector<8x512xf32> to vector<8x128xf32>
    %472 = arith.negf %471 : vector<8x128xf32>
    %473 = math.exp %472 : vector<8x128xf32>
    %cst_101 = arith.constant 1.000000e+00 : f32
    %474 = vector.broadcast %cst_101 : f32 to vector<8x128xf32>
    %475 = arith.addf %474, %473 : vector<8x128xf32>
    %476 = arith.divf %474, %475 : vector<8x128xf32>
    %477 = arith.mulf %468, %451 : vector<8x128xf32>
    %478 = arith.mulf %462, %470 : vector<8x128xf32>
    %479 = arith.addf %477, %478 : vector<8x128xf32>
    %480 = math.tanh %479 : vector<8x128xf32>
    %481 = arith.mulf %476, %480 : vector<8x128xf32>
    %c0_102 = arith.constant 0 : index
    %c0_103 = arith.constant 0 : index
    %482 = vector.load %arg5[%c0_102, %c0_103] : memref<128x128xf32, #tpu.memory_space<vmem>>, vector<128x128xf32>
    %cst_104 = arith.constant dense<0.000000e+00> : vector<8x128xf32>
    %483 = tpu.matmul %481, %482, %cst_104 {dimension_numbers = #tpu.dot_dimension_numbers<[1], [0], [0], [1], [0, 0, 1, 1], [], []>} : vector<8x128xf32>, vector<128x128xf32>, vector<8x128xf32> -> vector<8x128xf32>
    %c0_105 = arith.constant 0 : index
    %c0_106 = arith.constant 0 : index
    %484 = vector.load %arg6[%c0_105, %c0_106] : memref<1x128xf32, #tpu.memory_space<vmem>>, vector<1x128xf32>
    %485 = vector.broadcast %484 : vector<1x128xf32> to vector<8x128xf32>
    %486 = arith.addf %483, %485 : vector<8x128xf32>
    %c0_107 = arith.constant 0 : index
    %c0_108 = arith.constant 0 : index
    %487 = vector.load %arg7[%c0_107, %c0_108] : memref<8x128xf32, #tpu.memory_space<vmem>>, vector<8x128xf32>
    tpu.vector_store %arg7[%c0_107, %c0_108], %486 {strides = array<i32>} : memref<8x128xf32, #tpu.memory_space<vmem>>, vector<8x128xf32>,
    return
  }
  func.func @transform_0(%arg0: i32) -> (i32, i32) {
    %c0_i32 = arith.constant 0 : i32
    %c0_i32_0 = arith.constant 0 : i32
    %c0_i32_1 = arith.constant 0 : i32
    return %c0_i32, %c0_i32_0 : i32, i32
  }
  func.func @transform_1(%arg0: i32) -> (i32, i32, i32) {
    %c0_i32 = arith.constant 0 : i32
    %c0_i32_0 = arith.constant 0 : i32
    %c0_i32_1 = arith.constant 0 : i32
    %c0_i32_2 = arith.constant 0 : i32
    return %c0_i32, %c0_i32_0, %c0_i32_1 : i32, i32, i32
  }
  func.func @transform_2(%arg0: i32) -> (i32, i32, i32) {
    %c0_i32 = arith.constant 0 : i32
    %c0_i32_0 = arith.constant 0 : i32
    %c0_i32_1 = arith.constant 0 : i32
    %c0_i32_2 = arith.constant 0 : i32
    return %c0_i32, %c0_i32_0, %c0_i32_1 : i32, i32, i32
  }
  func.func @transform_3(%arg0: i32) -> (i32, i32, i32) {
    %c0_i32 = arith.constant 0 : i32
    %c0_i32_0 = arith.constant 0 : i32
    %c0_i32_1 = arith.constant 0 : i32
    %c0_i32_2 = arith.constant 0 : i32
    return %c0_i32, %c0_i32_0, %c0_i32_1 : i32, i32, i32
  }
  func.func @transform_4(%arg0: i32) -> (i32, i32) {
    %c0_i32 = arith.constant 0 : i32
    %c0_i32_0 = arith.constant 0 : i32
    %c0_i32_1 = arith.constant 0 : i32
    return %c0_i32, %c0_i32_0 : i32, i32
  }
  func.func @transform_5(%arg0: i32) -> (i32, i32) {
    %c0_i32 = arith.constant 0 : i32
    %c0_i32_0 = arith.constant 0 : i32
    %c0_i32_1 = arith.constant 0 : i32
    return %c0_i32, %c0_i32_0 : i32, i32
  }
  func.func @transform_6(%arg0: i32) -> (i32, i32) {
    %c0_i32 = arith.constant 0 : i32
    %c0_i32_0 = arith.constant 0 : i32
    %c0_i32_1 = arith.constant 0 : i32
    return %c0_i32, %c0_i32_0 : i32, i32
  }
}

</mosaic_0001>

<bundles_post_ra>
// kernel: tpu_custom_call.1
= control target key start
LH: loop header
LB: loop body
LE: loop exit
PB: predicated region body
PF: predicated region fallthrough
CT: control target
= control target key end

     0   :  { %11 = vsyncpa [#allocation4], 0  ;;  %s5780_s0 = inlined_call_operand.hbm [shape: f32[64,128], index: 0, kind: input, shape index: {}]   ;;  %s5781_s1 = inlined_call_operand.hbm [shape: f32[2,128,512], index: 1, kind: input, shape index: {}]   ;;  %s5782_s2 = inlined_call_operand.hbm [shape: f32[2,128,512], index: 2, kind: input, shape index: {}]   ;;  %s5783_s3 = inlined_call_operand.hbm [shape: f32[2,1,512], index: 3, kind: input, shape index: {}]   ;;  %s5784_s4 = inlined_call_operand.hbm [shape: f32[128,128], index: 4, kind: input, shape index: {}]   ;;  %s5785_s5 = inlined_call_operand.vmem [shape: f32[1,128], index: 5, kind: input, shape index: {}]   ;;  %s5786_s6 = inlined_call_operand.hbm [shape: f32[8,128], index: 6, kind: output, shape index: {}]  }
   0x1   :  { %12 = vsyncpa [#allocation7], 0 }
   0x2   :  { %13 = vsyncpa [#allocation10], 0  ;;  %s32_s23 = sshll.u32 %s5781_s1, 4  ;;  %s33_s23 = int_to_ptr.hbm [resolvable:$true] %s32_s23 }
   0x3   :  { %14 = vsyncpa [#allocation5], 0  ;;  %s3759_s24 = smov [#allocation6]   ;;  %s58_s28 = sshll.u32 %s5783_s3, 4  ;;  %s59_s28 = int_to_ptr.hbm [resolvable:$true] %s58_s28 }
   0x4   :  { %s34_s25 = sshll.u32 %s3759_s24, 4  ;;  %s3760_s29 = smov 512   ;;  %s35_s25 = int_to_ptr.vmem [resolvable:$true] %s34_s25 }
   0x5   :  { %s3761_s30 = smov 32   ;;  %s3762_s7 = smov [#allocation9]  }
   0x6   :  { %40 = dma.hbm_to_vmem [thread:$0]  %s33_s23, 16384, %s35_s25, [#allocation7], %s3760_s29, %s3760_s29, %s3761_s30  }
   0x7   :  { %s60_s8 = sshll.u32 %s3762_s7, 4  ;;  %s3763_s9 = smov 64   ;;  %s61_s8 = int_to_ptr.vmem [resolvable:$true] %s60_s8 }
   0x8   :  { %s3764_s10 = smov 4   ;;  %s19_s12 = sshll.u32 %s5780_s0, 4  ;;  %s20_s12 = int_to_ptr.hbm [resolvable:$true] %s19_s12 }
   0x9   :  { %66 = dma.hbm_to_vmem [thread:$0]  %s59_s28, 128, %s61_s8, [#allocation10], %s3763_s9, %s3763_s9, %s3764_s10  }
   0xa   :  { %s3765_s13 = smov [#allocation3]   ;;  %s45_s16 = sshll.u32 %s5782_s2, 4  ;;  %s46_s16 = int_to_ptr.hbm [resolvable:$true] %s45_s16 }
   0xb   :  { %s21_s14 = sshll.u32 %s3765_s13, 4  ;;  %s3766_s17 = smov 128   ;;  %s22_s14 = int_to_ptr.vmem [resolvable:$true] %s21_s14 }
   0xc   :  { %s3767_s18 = smov 8   ;;  %s3768_s19 = smov [#allocation8]  }
   0xd   :  { %27 = dma.hbm_to_vmem [thread:$0]  %s20_s12, 1024, %s22_s14, [#allocation4], %s3766_s17, %s3766_s17, %s3767_s18  }
   0xe   :  { %s47_s20 = sshll.u32 %s3768_s19, 4  ;;  %s71_s23 = sshll.u32 %s5784_s4, 4  ;;  %s48_s20 = int_to_ptr.vmem [resolvable:$true] %s47_s20  ;;  %s72_s23 = int_to_ptr.hbm [resolvable:$true] %s71_s23 }
   0xf   :  { %53 = dma.hbm_to_vmem [thread:$0]  %s46_s16, 16384, %s48_s20, [#allocation7], %s3760_s29, %s3760_s29, %s3761_s30  }
  0x10   :  { %s3769_s0 = smov [#allocation11]  }
  0x11   :  { %s73_s24 = sshll.u32 %s3769_s0, 4  ;;  %s74_s24 = int_to_ptr.vmem [resolvable:$true] %s73_s24 }
  0x12   :  { %79 = dma.hbm_to_vmem [thread:$0]  %s72_s23, 2048, %s74_s24, [#allocation10], %s3766_s17, %s3766_s17, %s3767_s18  }
  0x13   :  { %3751 = dma.done.wait [#allocation4], 1024  }
  0x14   :  { %3752 = vsyncadd [#allocation4], 4294966272 }
  0x15   :  { %3753 = dma.done.wait [#allocation7], 32768  }
  0x16   :  { %3754 = vsyncadd [#allocation7], 4294934528 }
  0x17   :  { %3755 = dma.done.wait [#allocation10], 2176  }
  0x18   :  { %3756 = vsyncadd [#allocation10], 4294965120  ;;  %v186_v0 = vld [vmem:[#allocation6 + $0x1e0] sm:$0xff]  ;;  %v187_v1 = vld [vmem:[#allocation6 + $0x1e8] sm:$0xff]  ;;  %s3771_s25 = smov [#allocation12]   ;;  %s3149_s29 = sshll.u32 %s5786_s6, 4  ;;  %s3150_s29 = int_to_ptr.hbm [resolvable:$true] %s3149_s29 }
  0x19   :  { %v188_v2 = vld [vmem:[#allocation6 + $0x1f0] sm:$0xff]  ;;  %200 = vmatpush.msra.mxu0 %v186_v0  ;;  %241 = vmatpush.msra.mxu1 %v187_v1  ;;  %v189_v3 = vld [vmem:[#allocation6 + $0x1f8] sm:$0xff]  ;;  %v182_v4 = vld [vmem:[#allocation6 + $0x1c0] sm:$0xff]  ;;  %s3147_s26 = sshll.u32 %s3771_s25, 4  ;;  %s3148_s26 = int_to_ptr.vmem [resolvable:$true] %s3147_s26 }
  0x1a   :  { %v183_v5 = vld [vmem:[#allocation6 + $0x1c8] sm:$0xff]  ;;  %282 = vmatpush.msra.mxu2 %v188_v2  ;;  %323 = vmatpush.msra.mxu3 %v189_v3  ;;  %v184_v6 = vld [vmem:[#allocation6 + $0x1d0] sm:$0xff]  ;;  %v185_v7 = vld [vmem:[#allocation6 + $0x1d8] sm:$0xff] }
  0x1b   :  { %v178_v8 = vld [vmem:[#allocation6 + $0x1a0] sm:$0xff]  ;;  %201 = vmatpush.msra.mxu0 %v182_v4  ;;  %242 = vmatpush.msra.mxu1 %v183_v5  ;;  %v179_v9 = vld [vmem:[#allocation6 + $0x1a8] sm:$0xff]  ;;  %v180_v10 = vld [vmem:[#allocation6 + $0x1b0] sm:$0xff] }
  0x1c   :  { %v181_v11 = vld [vmem:[#allocation6 + $0x1b8] sm:$0xff]  ;;  %283 = vmatpush.msra.mxu2 %v184_v6  ;;  %324 = vmatpush.msra.mxu3 %v185_v7  ;;  %v174_v12 = vld [vmem:[#allocation6 + $0x180] sm:$0xff]  ;;  %v175_v13 = vld [vmem:[#allocation6 + $0x188] sm:$0xff] }
  0x1d   :  { %202 = vmatpush.msra.mxu0 %v178_v8  ;;  %243 = vmatpush.msra.mxu1 %v179_v9  ;;  %v176_v14 = vld [vmem:[#allocation6 + $0x190] sm:$0xff]  ;;  %v177_v15 = vld [vmem:[#allocation6 + $0x198] sm:$0xff]  ;;  %v170_v16 = vld [vmem:[#allocation6 + $0x160] sm:$0xff] }
  0x1e   :  { %284 = vmatpush.msra.mxu2 %v180_v10  ;;  %325 = vmatpush.msra.mxu3 %v181_v11  ;;  %v171_v17 = vld [vmem:[#allocation6 + $0x168] sm:$0xff]  ;;  %v172_v18 = vld [vmem:[#allocation6 + $0x170] sm:$0xff]  ;;  %v173_v19 = vld [vmem:[#allocation6 + $0x178] sm:$0xff] }
  0x1f   :  { %203 = vmatpush.msra.mxu0 %v174_v12  ;;  %244 = vmatpush.msra.mxu1 %v175_v13  ;;  %v166_v20 = vld [vmem:[#allocation6 + $0x140] sm:$0xff]  ;;  %v167_v21 = vld [vmem:[#allocation6 + $0x148] sm:$0xff]  ;;  %v168_v22 = vld [vmem:[#allocation6 + $0x150] sm:$0xff] }
  0x20   :  { %285 = vmatpush.msra.mxu2 %v176_v14  ;;  %326 = vmatpush.msra.mxu3 %v177_v15  ;;  %v169_v23 = vld [vmem:[#allocation6 + $0x158] sm:$0xff]  ;;  %v162_v24 = vld [vmem:[#allocation6 + $0x120] sm:$0xff]  ;;  %v163_v25 = vld [vmem:[#allocation6 + $0x128] sm:$0xff] }
  0x21   :  { %204 = vmatpush.msra.mxu0 %v170_v16  ;;  %245 = vmatpush.msra.mxu1 %v171_v17  ;;  %v164_v26 = vld [vmem:[#allocation6 + $0x130] sm:$0xff]  ;;  %v165_v27 = vld [vmem:[#allocation6 + $0x138] sm:$0xff]  ;;  %v158_v28 = vld [vmem:[#allocation6 + $0x100] sm:$0xff] }
  0x22   :  { %286 = vmatpush.msra.mxu2 %v172_v18  ;;  %327 = vmatpush.msra.mxu3 %v173_v19  ;;  %v159_v29 = vld [vmem:[#allocation6 + $0x108] sm:$0xff]  ;;  %v160_v30 = vld [vmem:[#allocation6 + $0x110] sm:$0xff]  ;;  %v161_v31 = vld [vmem:[#allocation6 + $0x118] sm:$0xff] }
  0x23   :  { %205 = vmatpush.msra.mxu0 %v166_v20  ;;  %246 = vmatpush.msra.mxu1 %v167_v21  ;;  %v154_v32 = vld [vmem:[#allocation6 + $0xe0] sm:$0xff]  ;;  %v155_v33 = vld [vmem:[#allocation6 + $0xe8] sm:$0xff]  ;;  %v156_v34 = vld [vmem:[#allocation6 + $0xf0] sm:$0xff] }
  0x24   :  { %287 = vmatpush.msra.mxu2 %v168_v22  ;;  %328 = vmatpush.msra.mxu3 %v169_v23  ;;  %v157_v35 = vld [vmem:[#allocation6 + $0xf8] sm:$0xff]  ;;  %v150_v36 = vld [vmem:[#allocation6 + $0xc0] sm:$0xff]  ;;  %v151_v37 = vld [vmem:[#allocation6 + $0xc8] sm:$0xff] }
  0x25   :  { %206 = vmatpush.msra.mxu0 %v162_v24  ;;  %247 = vmatpush.msra.mxu1 %v163_v25  ;;  %v152_v38 = vld [vmem:[#allocation6 + $0xd0] sm:$0xff]  ;;  %v153_v39 = vld [vmem:[#allocation6 + $0xd8] sm:$0xff]  ;;  %v146_v40 = vld [vmem:[#allocation6 + $0xa0] sm:$0xff] }
  0x26   :  { %288 = vmatpush.msra.mxu2 %v164_v26  ;;  %329 = vmatpush.msra.mxu3 %v165_v27  ;;  %v147_v41 = vld [vmem:[#allocation6 + $0xa8] sm:$0xff]  ;;  %v148_v42 = vld [vmem:[#allocation6 + $0xb0] sm:$0xff]  ;;  %v149_v43 = vld [vmem:[#allocation6 + $0xb8] sm:$0xff] }
  0x27   :  { %207 = vmatpush.msra.mxu0 %v158_v28  ;;  %248 = vmatpush.msra.mxu1 %v159_v29  ;;  %v142_v44 = vld [vmem:[#allocation6 + $0x80] sm:$0xff]  ;;  %v143_v45 = vld [vmem:[#allocation6 + $0x88] sm:$0xff]  ;;  %v144_v46 = vld [vmem:[#allocation6 + $0x90] sm:$0xff] }
  0x28   :  { %289 = vmatpush.msra.mxu2 %v160_v30  ;;  %330 = vmatpush.msra.mxu3 %v161_v31  ;;  %v145_v47 = vld [vmem:[#allocation6 + $0x98] sm:$0xff]  ;;  %v138_v48 = vld [vmem:[#allocation6 + $0x60] sm:$0xff]  ;;  %v139_v49 = vld [vmem:[#allocation6 + $0x68] sm:$0xff] }
  0x29   :  { %208 = vmatpush.msra.mxu0 %v154_v32  ;;  %249 = vmatpush.msra.mxu1 %v155_v33  ;;  %v140_v50 = vld [vmem:[#allocation6 + $0x70] sm:$0xff]  ;;  %v141_v51 = vld [vmem:[#allocation6 + $0x78] sm:$0xff]  ;;  %v134_v52 = vld [vmem:[#allocation6 + $0x40] sm:$0xff] }
  0x2a   :  { %290 = vmatpush.msra.mxu2 %v156_v34  ;;  %331 = vmatpush.msra.mxu3 %v157_v35  ;;  %v135_v53 = vld [vmem:[#allocation6 + $0x48] sm:$0xff]  ;;  %v136_v54 = vld [vmem:[#allocation6 + $0x50] sm:$0xff]  ;;  %v137_v55 = vld [vmem:[#allocation6 + $0x58] sm:$0xff] }
  0x2b   :  { %209 = vmatpush.msra.mxu0 %v150_v36  ;;  %250 = vmatpush.msra.mxu1 %v151_v37  ;;  %v130_v56 = vld [vmem:[#allocation6 + $0x20] sm:$0xff]  ;;  %v131_v57 = vld [vmem:[#allocation6 + $0x28] sm:$0xff]  ;;  %v132_v58 = vld [vmem:[#allocation6 + $0x30] sm:$0xff] }
  0x2c   :  { %291 = vmatpush.msra.mxu2 %v152_v38  ;;  %332 = vmatpush.msra.mxu3 %v153_v39  ;;  %v133_v59 = vld [vmem:[#allocation6 + $0x38] sm:$0xff]  ;;  %v126_v60 = vld [vmem:[#allocation6] sm:$0xff]  ;;  %v127_v61 = vld [vmem:[#allocation6 + $0x8] sm:$0xff] }
  0x2d   :  { %210 = vmatpush.msra.mxu0 %v146_v40  ;;  %251 = vmatpush.msra.mxu1 %v147_v41  ;;  %v128_v62 = vld [vmem:[#allocation6 + $0x10] sm:$0xff]  ;;  %v129_v63 = vld [vmem:[#allocation6 + $0x18] sm:$0xff]  ;;  %v102_v0 = vld [vmem:[#allocation3] sm:$0xff] }
  0x2e   :  { %292 = vmatpush.msra.mxu2 %v148_v42  ;;  %333 = vmatpush.msra.mxu3 %v149_v43  ;;  %v3822_v1 = vld [vmem:[#allocation8 + $0x1e0] sm:$0xff]  ;;  %v3824_v2 = vld [vmem:[#allocation8 + $0x1e8] sm:$0xff]  ;;  %v3826_v3 = vld [vmem:[#allocation8 + $0x1f8] sm:$0xff] }
  0x2f   :  { %211 = vmatpush.msra.mxu0 %v142_v44  ;;  %252 = vmatpush.msra.mxu1 %v143_v45  ;;  %v3828_v4 = vld [vmem:[#allocation8 + $0x1f0] sm:$0xff]  ;;  %v3830_v5 = vld [vmem:[#allocation8 + $0x1c0] sm:$0xff]  ;;  %v3832_v6 = vld [vmem:[#allocation8 + $0x1c8] sm:$0xff] }
  0x30   :  { %293 = vmatpush.msra.mxu2 %v144_v46  ;;  %334 = vmatpush.msra.mxu3 %v145_v47  ;;  %v3836_v7 = vld [vmem:[#allocation8 + $0x1d8] sm:$0xff]  ;;  %v3838_v8 = vld [vmem:[#allocation8 + $0x1d0] sm:$0xff]  ;;  %v3841_v9 = vld [vmem:[#allocation8 + $0x1a0] sm:$0xff] }
  0x31   :  { %212 = vmatpush.msra.mxu0 %v138_v48  ;;  %253 = vmatpush.msra.mxu1 %v139_v49  ;;  %v3843_v10 = vld [vmem:[#allocation8 + $0x1a8] sm:$0xff]  ;;  %v3848_v11 = vld [vmem:[#allocation8 + $0x1b8] sm:$0xff]  ;;  %v3850_v12 = vld [vmem:[#allocation8 + $0x1b0] sm:$0xff] }
  0x32   :  { %294 = vmatpush.msra.mxu2 %v140_v50  ;;  %335 = vmatpush.msra.mxu3 %v141_v51  ;;  %v103_v13 = vld [vmem:[#allocation3 + $0x8] sm:$0xff]  ;;  %v3856_v14 = vld [vmem:[#allocation8 + $0x180] sm:$0xff]  ;;  %v3862_v16 = vld [vmem:[#allocation8 + $0x198] sm:$0xff] }
  0x33   :  { %213 = vmatpush.msra.mxu0 %v134_v52  ;;  %254 = vmatpush.msra.mxu1 %v135_v53  ;;  %v3858_v15 = vld [vmem:[#allocation8 + $0x188] sm:$0xff]  ;;  %v3864_v17 = vld [vmem:[#allocation8 + $0x190] sm:$0xff]  ;;  %v3866_v18 = vld [vmem:[#allocation8 + $0x160] sm:$0xff] }
  0x34   :  { %295 = vmatpush.msra.mxu2 %v136_v54  ;;  %336 = vmatpush.msra.mxu3 %v137_v55  ;;  %v3868_v19 = vld [vmem:[#allocation8 + $0x168] sm:$0xff]  ;;  %v3872_v20 = vld [vmem:[#allocation8 + $0x178] sm:$0xff]  ;;  %v3874_v21 = vld [vmem:[#allocation8 + $0x170] sm:$0xff] }
  0x35   :  { %214 = vmatpush.msra.mxu0 %v130_v56  ;;  %255 = vmatpush.msra.mxu1 %v131_v57  ;;  %v3877_v22 = vld [vmem:[#allocation8 + $0x140] sm:$0xff]  ;;  %v3879_v23 = vld [vmem:[#allocation8 + $0x148] sm:$0xff]  ;;  %v3884_v24 = vld [vmem:[#allocation8 + $0x158] sm:$0xff] }
  0x36   :  { %296 = vmatpush.msra.mxu2 %v132_v58  ;;  %337 = vmatpush.msra.mxu3 %v133_v59  ;;  %v3886_v25 = vld [vmem:[#allocation8 + $0x150] sm:$0xff]  ;;  %v3892_v27 = vld [vmem:[#allocation8 + $0x120] sm:$0xff]  ;;  %v3894_v28 = vld [vmem:[#allocation8 + $0x128] sm:$0xff] }
  0x37   :  { %215 = vmatpush.msra.mxu0 %v126_v60  ;;  %256 = vmatpush.msra.mxu1 %v127_v61  ;;  %v104_v26 = vld [vmem:[#allocation3 + $0x10] sm:$0xff]  ;;  %v3898_v29 = vld [vmem:[#allocation8 + $0x138] sm:$0xff]  ;;  %v3902_v31 = vld [vmem:[#allocation8 + $0x100] sm:$0xff] }
  0x38   :  { %297 = vmatpush.msra.mxu2 %v128_v62  ;;  %338 = vmatpush.msra.mxu3 %v129_v63  ;;  %v3900_v30 = vld [vmem:[#allocation8 + $0x130] sm:$0xff]  ;;  %v3904_v32 = vld [vmem:[#allocation8 + $0x108] sm:$0xff]  ;;  %v3908_v33 = vld [vmem:[#allocation8 + $0x118] sm:$0xff] }
  0x39   :  { %216 = vmatmul.f32.vlgmr.msra.gmra.mxu0 %v102_v0  ;;  %257 = vmatmul.f32.vlgmr.msra.gmra.mxu1 %v102_v0  ;;  %v3910_v34 = vld [vmem:[#allocation8 + $0x110] sm:$0xff]  ;;  %v3913_v35 = vld [vmem:[#allocation8 + $0xe0] sm:$0xff]  ;;  %v3915_v36 = vld [vmem:[#allocation8 + $0xe8] sm:$0xff] }
  0x3a   :  { %298 = vmatmul.f32.vlgmr.msra.gmra.mxu2 %v102_v0  ;;  %339 = vmatmul.f32.vlgmr.msra.gmra.mxu3 %v102_v0  ;;  %v3920_v37 = vld [vmem:[#allocation8 + $0xf8] sm:$0xff]  ;;  %v3922_v38 = vld [vmem:[#allocation8 + $0xf0] sm:$0xff]  ;;  %v3928_v40 = vld [vmem:[#allocation8 + $0xc0] sm:$0xff] }
  0x3b   :  { %428 = vmatpush.msrb.mxu0 %v3822_v1  ;;  %448 = vmatpush.msrb.mxu1 %v3824_v2  ;;  %v105_v39 = vld [vmem:[#allocation3 + $0x18] sm:$0xff]  ;;  %v3930_v41 = vld [vmem:[#allocation8 + $0xc8] sm:$0xff]  ;;  %v3936_v43 = vld [vmem:[#allocation8 + $0xd0] sm:$0xff] }
  0x3c   :  { %488 = vmatpush.msrb.mxu3 %v3826_v3  ;;  %468 = vmatpush.msrb.mxu2 %v3828_v4  ;;  %v3934_v42 = vld [vmem:[#allocation8 + $0xd8] sm:$0xff]  ;;  %6057 = vst [vmem:[#allocation18_spill] sm:$0xff] %v3936_v43  ;;  %v3938_v44 = vld [vmem:[#allocation8 + $0xa0] sm:$0xff]  ;;  %v3940_v45 = vld [vmem:[#allocation8 + $0xa8] sm:$0xff] }
  0x3d   :  { %429 = vmatpush.msrb.mxu0 %v3830_v5  ;;  %449 = vmatpush.msrb.mxu1 %v3832_v6  ;;  %6056 = vst [vmem:[#allocation17_spill] sm:$0xff] %v3934_v42  ;;  %v3944_v46 = vld [vmem:[#allocation8 + $0xb8] sm:$0xff]  ;;  %v3946_v47 = vld [vmem:[#allocation8 + $0xb0] sm:$0xff]  ;;  %v3949_v48 = vld [vmem:[#allocation8 + $0x80] sm:$0xff] }
  0x3e   :  { %489 = vmatpush.msrb.mxu3 %v3836_v7  ;;  %469 = vmatpush.msrb.mxu2 %v3838_v8  ;;  %6058 = vst [vmem:[#allocation19_spill] sm:$0xff] %v3938_v44  ;;  %v3951_v49 = vld [vmem:[#allocation8 + $0x88] sm:$0xff]  ;;  %v3956_v50 = vld [vmem:[#allocation8 + $0x98] sm:$0xff]  ;;  %v3958_v51 = vld [vmem:[#allocation8 + $0x90] sm:$0xff] }
  0x3f   :  { %430 = vmatpush.msrb.mxu0 %v3841_v9  ;;  %450 = vmatpush.msrb.mxu1 %v3843_v10  ;;  %6059 = vst [vmem:[#allocation20_spill] sm:$0xff] %v3940_v45  ;;  %v106_v52 = vld [vmem:[#allocation3 + $0x20] sm:$0xff]  ;;  %v3966_v54 = vld [vmem:[#allocation8 + $0x68] sm:$0xff]  ;;  %v3970_v55 = vld [vmem:[#allocation8 + $0x78] sm:$0xff] }
  0x40   :  { %490 = vmatpush.msrb.mxu3 %v3848_v11  ;;  %470 = vmatpush.msrb.mxu2 %v3850_v12  ;;  %6060 = vst [vmem:[#allocation21_spill] sm:$0xff] %v3944_v46  ;;  %v3964_v53 = vld [vmem:[#allocation8 + $0x60] sm:$0xff]  ;;  %v3972_v56 = vld [vmem:[#allocation8 + $0x70] sm:$0xff]  ;;  %v3976_v58 = vld [vmem:[#allocation8 + $0x48] sm:$0xff] }
  0x41   :  { %219 = vmatmul.f32.gmra.mxu0 %v103_v13  ;;  %260 = vmatmul.f32.gmra.mxu1 %v103_v13  ;;  %6061 = vst [vmem:[#allocation22_spill] sm:$0xff] %v3946_v47  ;;  %v3974_v57 = vld [vmem:[#allocation8 + $0x40] sm:$0xff]  ;;  %v3980_v59 = vld [vmem:[#allocation8 + $0x58] sm:$0xff]  ;;  %v3982_v60 = vld [vmem:[#allocation8 + $0x50] sm:$0xff] }
  0x42   :  { %301 = vmatmul.f32.gmra.mxu2 %v103_v13  ;;  %342 = vmatmul.f32.gmra.mxu3 %v103_v13  ;;  %6062 = vst [vmem:[#allocation23_spill] sm:$0xff] %v3949_v48  ;;  %v3985_v61 = vld [vmem:[#allocation8 + $0x20] sm:$0xff]  ;;  %v3987_v62 = vld [vmem:[#allocation8 + $0x28] sm:$0xff]  ;;  %v3992_v63 = vld [vmem:[#allocation8 + $0x30] sm:$0xff] }
  0x43   :  { %431 = vmatpush.msrb.mxu0 %v3856_v14  ;;  %451 = vmatpush.msrb.mxu1 %v3858_v15  ;;  %6063 = vst [vmem:[#allocation24_spill] sm:$0xff] %v3951_v49  ;;  %v3994_v0 = vld [vmem:[#allocation8 + $0x38] sm:$0xff]  ;;  %v107_v13 = vld [vmem:[#allocation3 + $0x28] sm:$0xff] }
  0x44   :  { %491 = vmatpush.msrb.mxu3 %v3862_v16  ;;  %471 = vmatpush.msrb.mxu2 %v3864_v17  ;;  %6064 = vst [vmem:[#allocation25_spill] sm:$0xff] %v3956_v50 }
  0x45   :  { %432 = vmatpush.msrb.mxu0 %v3866_v18  ;;  %452 = vmatpush.msrb.mxu1 %v3868_v19  ;;  %6065 = vst [vmem:[#allocation26_spill] sm:$0xff] %v3958_v51 }
  0x46   :  { %492 = vmatpush.msrb.mxu3 %v3872_v20  ;;  %472 = vmatpush.msrb.mxu2 %v3874_v21  ;;  %6066 = vst [vmem:[#allocation27_spill] sm:$0xff] %v3964_v53 }
  0x47   :  { %433 = vmatpush.msrb.mxu0 %v3877_v22  ;;  %453 = vmatpush.msrb.mxu1 %v3879_v23  ;;  %6067 = vst [vmem:[#allocation28_spill] sm:$0xff] %v3966_v54 }
  0x48   :  { %493 = vmatpush.msrb.mxu3 %v3884_v24  ;;  %473 = vmatpush.msrb.mxu2 %v3886_v25  ;;  %6068 = vst [vmem:[#allocation29_spill] sm:$0xff] %v3970_v55 }
  0x49   :  { %222 = vmatmul.f32.gmra.mxu0 %v104_v26  ;;  %263 = vmatmul.f32.gmra.mxu1 %v104_v26  ;;  %6069 = vst [vmem:[#allocation30_spill] sm:$0xff] %v3972_v56 }
  0x4a   :  { %304 = vmatmul.f32.gmra.mxu2 %v104_v26  ;;  %345 = vmatmul.f32.gmra.mxu3 %v104_v26  ;;  %6070 = vst [vmem:[#allocation31_spill] sm:$0xff] %v3974_v57  ;;  %v4000_v26 = vld [vmem:[#allocation8] sm:$0xff] }
  0x4b   :  { %434 = vmatpush.msrb.mxu0 %v3892_v27  ;;  %454 = vmatpush.msrb.mxu1 %v3894_v28  ;;  %6071 = vst [vmem:[#allocation32_spill] sm:$0xff] %v3976_v58 }
  0x4c   :  { %494 = vmatpush.msrb.mxu3 %v3898_v29  ;;  %474 = vmatpush.msrb.mxu2 %v3900_v30  ;;  %6072 = vst [vmem:[#allocation33_spill] sm:$0xff] %v3980_v59 }
  0x4d   :  { %435 = vmatpush.msrb.mxu0 %v3902_v31  ;;  %455 = vmatpush.msrb.mxu1 %v3904_v32  ;;  %6073 = vst [vmem:[#allocation34_spill] sm:$0xff] %v3982_v60 }
  0x4e   :  { %495 = vmatpush.msrb.mxu3 %v3908_v33  ;;  %475 = vmatpush.msrb.mxu2 %v3910_v34  ;;  %6074 = vst [vmem:[#allocation35_spill] sm:$0xff] %v3985_v61 }
  0x4f   :  { %436 = vmatpush.msrb.mxu0 %v3913_v35  ;;  %456 = vmatpush.msrb.mxu1 %v3915_v36  ;;  %6075 = vst [vmem:[#allocation36_spill] sm:$0xff] %v3987_v62 }
  0x50   :  { %496 = vmatpush.msrb.mxu3 %v3920_v37  ;;  %476 = vmatpush.msrb.mxu2 %v3922_v38  ;;  %6076 = vst [vmem:[#allocation37_spill] sm:$0xff] %v3992_v63 }
  0x51   :  { %225 = vmatmul.f32.gmra.mxu0 %v105_v39  ;;  %266 = vmatmul.f32.gmra.mxu1 %v105_v39  ;;  %6077 = vst [vmem:[#allocation38_spill] sm:$0xff] %v3994_v0 }
  0x52   :  { %307 = vmatmul.f32.gmra.mxu2 %v105_v39  ;;  %348 = vmatmul.f32.gmra.mxu3 %v105_v39  ;;  %6078 = vst [vmem:[#allocation39_spill] sm:$0xff] %v4000_v26  ;;  %v4002_v39 = vld [vmem:[#allocation8 + $0x8] sm:$0xff] }
  0x53   :  { %437 = vmatpush.msrb.mxu0 %v3928_v40  ;;  %457 = vmatpush.msrb.mxu1 %v3930_v41  ;;  %6079 = vst [vmem:[#allocation40_spill] sm:$0xff] %v4002_v39 }
  0x54   :  { %497 = vmatpush.msrb.mxu3 %v3934_v42  ;;  %477 = vmatpush.msrb.mxu2 %v3936_v43 }
  0x55   :  { %438 = vmatpush.msrb.mxu0 %v3938_v44  ;;  %458 = vmatpush.msrb.mxu1 %v3940_v45 }
  0x56   :  { %498 = vmatpush.msrb.mxu3 %v3944_v46  ;;  %478 = vmatpush.msrb.mxu2 %v3946_v47 }
  0x57   :  { %439 = vmatpush.msrb.mxu0 %v3949_v48  ;;  %459 = vmatpush.msrb.mxu1 %v3951_v49 }
  0x58   :  { %499 = vmatpush.msrb.mxu3 %v3956_v50  ;;  %479 = vmatpush.msrb.mxu2 %v3958_v51 }
  0x59   :  { %228 = vmatmul.f32.gmra.mxu0 %v106_v52  ;;  %269 = vmatmul.f32.gmra.mxu1 %v106_v52 }
  0x5a   :  { %310 = vmatmul.f32.gmra.mxu2 %v106_v52  ;;  %351 = vmatmul.f32.gmra.mxu3 %v106_v52  ;;  %v4006_v52 = vld [vmem:[#allocation8 + $0x10] sm:$0xff] }
  0x5b   :  { %440 = vmatpush.msrb.mxu0 %v3964_v53  ;;  %460 = vmatpush.msrb.mxu1 %v3966_v54  ;;  %6080 = vst [vmem:[#allocation41_spill] sm:$0xff] %v4006_v52 }
  0x5c   :  { %500 = vmatpush.msrb.mxu3 %v3970_v55  ;;  %480 = vmatpush.msrb.mxu2 %v3972_v56 }
  0x5d   :  { %441 = vmatpush.msrb.mxu0 %v3974_v57  ;;  %461 = vmatpush.msrb.mxu1 %v3976_v58  ;;  %v4008_v58 = vld [vmem:[#allocation8 + $0x18] sm:$0xff] }
  0x5e   :  { %501 = vmatpush.msrb.mxu3 %v3980_v59  ;;  %481 = vmatpush.msrb.mxu2 %v3982_v60  ;;  %6081 = vst [vmem:[#allocation42_spill] sm:$0xff] %v4008_v58 }
  0x5f   :  { %442 = vmatpush.msrb.mxu0 %v3985_v61  ;;  %462 = vmatpush.msrb.mxu1 %v3987_v62 }
  0x60   :  { %482 = vmatpush.msrb.mxu2 %v3992_v63  ;;  %502 = vmatpush.msrb.mxu3 %v3994_v0  ;;  %v108_v0 = vld [vmem:[#allocation3 + $0x30] sm:$0xff] }
  0x61   :  { %231 = vmatmul.f32.gmra.mxu0 %v107_v13  ;;  %272 = vmatmul.f32.gmra.mxu1 %v107_v13 }
  0x62   :  { %313 = vmatmul.f32.gmra.mxu2 %v107_v13  ;;  %354 = vmatmul.f32.gmra.mxu3 %v107_v13  ;;  %v109_v13 = vld [vmem:[#allocation3 + $0x38] sm:$0xff] }
  0x63   :  { %443 = vmatpush.msrb.mxu0 %v4000_v26  ;;  %463 = vmatpush.msrb.mxu1 %v4002_v39 }
  0x64   :  { %483 = vmatpush.msrb.mxu2 %v4006_v52  ;;  %503 = vmatpush.msrb.mxu3 %v4008_v58 }
  0x65   :  { %576 = vmatpush.msra.mxu0 %v3822_v1  ;;  %596 = vmatpush.msra.mxu1 %v3824_v2 }
  0x66   :  { %616 = vmatpush.msra.mxu2 %v3828_v4  ;;  %636 = vmatpush.msra.mxu3 %v3826_v3 }
  0x67   :  { %577 = vmatpush.msra.mxu0 %v3830_v5  ;;  %597 = vmatpush.msra.mxu1 %v3832_v6 }
  0x68   :  { %617 = vmatpush.msra.mxu2 %v3838_v8  ;;  %637 = vmatpush.msra.mxu3 %v3836_v7 }
  0x69   :  { %234 = vmatmul.f32.gmra.mxu0 %v108_v0  ;;  %275 = vmatmul.f32.gmra.mxu1 %v108_v0 }
  0x6a   :  { %316 = vmatmul.f32.gmra.mxu2 %v108_v0  ;;  %357 = vmatmul.f32.gmra.mxu3 %v108_v0  ;;  %v5791_v0 = vmov 0.0  }
  0x6b   :  { %578 = vmatpush.msra.mxu0 %v3841_v9  ;;  %598 = vmatpush.msra.mxu1 %v3843_v10 }
  0x6c   :  { %618 = vmatpush.msra.mxu2 %v3850_v12  ;;  %638 = vmatpush.msra.mxu3 %v3848_v11 }
  0x6d   :  { %579 = vmatpush.msra.mxu0 %v3856_v14  ;;  %599 = vmatpush.msra.mxu1 %v3858_v15 }
  0x6e   :  { %619 = vmatpush.msra.mxu2 %v3864_v17  ;;  %639 = vmatpush.msra.mxu3 %v3862_v16 }
  0x6f   :  { %580 = vmatpush.msra.mxu0 %v3866_v18  ;;  %600 = vmatpush.msra.mxu1 %v3868_v19 }
  0x70   :  { %620 = vmatpush.msra.mxu2 %v3874_v21  ;;  %640 = vmatpush.msra.mxu3 %v3872_v20 }
  0x71   :  { %237 = vmatmul.f32.gmra.mxu0 %v109_v13  ;;  %278 = vmatmul.f32.gmra.mxu1 %v109_v13 }
  0x72   :  { %319 = vmatmul.f32.gmra.mxu2 %v109_v13  ;;  %360 = vmatmul.f32.gmra.mxu3 %v109_v13  ;;  %v6082_v13 = vld [vmem:[#allocation32_spill] sm:$0xff] }
  0x73   :  { %581 = vmatpush.msra.mxu0 %v3877_v22  ;;  %601 = vmatpush.msra.mxu1 %v3879_v23 }
  0x74   :  { %621 = vmatpush.msra.mxu2 %v3886_v25  ;;  %641 = vmatpush.msra.mxu3 %v3884_v24 }
  0x75   :  { %582 = vmatpush.msra.mxu0 %v3892_v27  ;;  %602 = vmatpush.msra.mxu1 %v3894_v28 }
  0x76   :  { %622 = vmatpush.msra.mxu2 %v3900_v30  ;;  %642 = vmatpush.msra.mxu3 %v3898_v29 }
  0x77   :  { %583 = vmatpush.msra.mxu0 %v3902_v31  ;;  %603 = vmatpush.msra.mxu1 %v3904_v32 }
  0x78   :  { %623 = vmatpush.msra.mxu2 %v3910_v34  ;;  %643 = vmatpush.msra.mxu3 %v3908_v33 }
  0x79   :  { %444 = vmatmul.f32.vlgmr.msrb.gmra.mxu0 %v5791_v0  ;;  %464 = vmatmul.f32.vlgmr.msrb.gmra.mxu1 %v5791_v0 }
  0x7a   :  { %484 = vmatmul.f32.vlgmr.msrb.gmra.mxu2 %v5791_v0  ;;  %504 = vmatmul.f32.vlgmr.msrb.gmra.mxu3 %v5791_v0  ;;  %v6083_v0 = vld [vmem:[#allocation38_spill] sm:$0xff] }
  0x7b   :  { %584 = vmatpush.msra.mxu0 %v3913_v35  ;;  %604 = vmatpush.msra.mxu1 %v3915_v36 }
  0x7c   :  { %624 = vmatpush.msra.mxu2 %v3922_v38  ;;  %644 = vmatpush.msra.mxu3 %v3920_v37 }
  0x7d   :  { %585 = vmatpush.msra.mxu0 %v3928_v40  ;;  %605 = vmatpush.msra.mxu1 %v3930_v41 }
  0x7e   :  { %625 = vmatpush.msra.mxu2 %v3936_v43  ;;  %645 = vmatpush.msra.mxu3 %v3934_v42 }
  0x7f   :  { %586 = vmatpush.msra.mxu0 %v3938_v44  ;;  %606 = vmatpush.msra.mxu1 %v3940_v45 }
  0x80   :  { %626 = vmatpush.msra.mxu2 %v3946_v47  ;;  %646 = vmatpush.msra.mxu3 %v3944_v46 }
  0x81   :  { %587 = vmatpush.msra.mxu0 %v3949_v48  ;;  %607 = vmatpush.msra.mxu1 %v3951_v49 }
  0x82   :  { %627 = vmatpush.msra.mxu2 %v3958_v51  ;;  %647 = vmatpush.msra.mxu3 %v3956_v50 }
  0x83   :  { %588 = vmatpush.msra.mxu0 %v3964_v53  ;;  %608 = vmatpush.msra.mxu1 %v3966_v54 }
  0x84   :  { %628 = vmatpush.msra.mxu2 %v3972_v56  ;;  %648 = vmatpush.msra.mxu3 %v3970_v55 }
  0x85   :  { %589 = vmatpush.msra.mxu0 %v3974_v57  ;;  %609 = vmatpush.msra.mxu1 %v6082_v13 }
  0x86   :  { %629 = vmatpush.msra.mxu2 %v3982_v60  ;;  %649 = vmatpush.msra.mxu3 %v3980_v59 }
  0x87   :  { %590 = vmatpush.msra.mxu0 %v3985_v61  ;;  %610 = vmatpush.msra.mxu1 %v3987_v62 }
  0x88   :  { %630 = vmatpush.msra.mxu2 %v3992_v63  ;;  %650 = vmatpush.msra.mxu3 %v6083_v0 }
  0x89   :  { %591 = vmatpush.msra.mxu0 %v4000_v26  ;;  %611 = vmatpush.msra.mxu1 %v4002_v39 }
  0x8a   :  { %631 = vmatpush.msra.mxu2 %v4006_v52  ;;  %651 = vmatpush.msra.mxu3 %v4008_v58 }
  0x8b   :  { %724 = vmatpush.msrb.mxu0 %v3822_v1  ;;  %744 = vmatpush.msrb.mxu1 %v3824_v2 }
  0x8c   :  { %764 = vmatpush.msrb.mxu2 %v3828_v4  ;;  %784 = vmatpush.msrb.mxu3 %v3826_v3 }
  0x8d   :  { %725 = vmatpush.msrb.mxu0 %v3830_v5  ;;  %745 = vmatpush.msrb.mxu1 %v3832_v6 }
  0x8e   :  { %765 = vmatpush.msrb.mxu2 %v3838_v8  ;;  %785 = vmatpush.msrb.mxu3 %v3836_v7 }
  0x8f   :  { %726 = vmatpush.msrb.mxu0 %v3841_v9  ;;  %746 = vmatpush.msrb.mxu1 %v3843_v10 }
  0x90   :  { %766 = vmatpush.msrb.mxu2 %v3850_v12  ;;  %786 = vmatpush.msrb.mxu3 %v3848_v11 }
  0x91   :  { %727 = vmatpush.msrb.mxu0 %v3856_v14  ;;  %747 = vmatpush.msrb.mxu1 %v3858_v15 }
  0x92   :  { %767 = vmatpush.msrb.mxu2 %v3864_v17  ;;  %787 = vmatpush.msrb.mxu3 %v3862_v16 }
  0x93   :  { %728 = vmatpush.msrb.mxu0 %v3866_v18  ;;  %748 = vmatpush.msrb.mxu1 %v3868_v19 }
  0x94   :  { %768 = vmatpush.msrb.mxu2 %v3874_v21  ;;  %788 = vmatpush.msrb.mxu3 %v3872_v20 }
  0x95   :  { %729 = vmatpush.msrb.mxu0 %v3877_v22  ;;  %749 = vmatpush.msrb.mxu1 %v3879_v23 }
  0x96   :  { %769 = vmatpush.msrb.mxu2 %v3886_v25  ;;  %789 = vmatpush.msrb.mxu3 %v3884_v24 }
  0x97   :  { %730 = vmatpush.msrb.mxu0 %v3892_v27  ;;  %750 = vmatpush.msrb.mxu1 %v3894_v28 }
  0x98   :  { %770 = vmatpush.msrb.mxu2 %v3900_v30  ;;  %790 = vmatpush.msrb.mxu3 %v3898_v29 }
  0x99   :  { %731 = vmatpush.msrb.mxu0 %v3902_v31  ;;  %751 = vmatpush.msrb.mxu1 %v3904_v32 }
  0x9a   :  { %771 = vmatpush.msrb.mxu2 %v3910_v34  ;;  %791 = vmatpush.msrb.mxu3 %v3908_v33 }
  0x9b   :  { %732 = vmatpush.msrb.mxu0 %v3913_v35  ;;  %752 = vmatpush.msrb.mxu1 %v3915_v36 }
  0x9c   :  { %772 = vmatpush.msrb.mxu2 %v3922_v38  ;;  %792 = vmatpush.msrb.mxu3 %v3920_v37 }
  0x9d   :  { %733 = vmatpush.msrb.mxu0 %v3928_v40  ;;  %753 = vmatpush.msrb.mxu1 %v3930_v41 }
  0x9e   :  { %773 = vmatpush.msrb.mxu2 %v3936_v43  ;;  %793 = vmatpush.msrb.mxu3 %v3934_v42 }
  0x9f   :  { %734 = vmatpush.msrb.mxu0 %v3938_v44  ;;  %754 = vmatpush.msrb.mxu1 %v3940_v45 }
  0xa0   :  { %774 = vmatpush.msrb.mxu2 %v3946_v47  ;;  %794 = vmatpush.msrb.mxu3 %v3944_v46 }
  0xa1   :  { %735 = vmatpush.msrb.mxu0 %v3949_v48  ;;  %755 = vmatpush.msrb.mxu1 %v3951_v49 }
  0xa2   :  { %775 = vmatpush.msrb.mxu2 %v3958_v51  ;;  %795 = vmatpush.msrb.mxu3 %v3956_v50 }
  0xa3   :  { %736 = vmatpush.msrb.mxu0 %v3964_v53  ;;  %756 = vmatpush.msrb.mxu1 %v3966_v54 }
  0xa4   :  { %776 = vmatpush.msrb.mxu2 %v3972_v56  ;;  %796 = vmatpush.msrb.mxu3 %v3970_v55 }
  0xa5   :  { %737 = vmatpush.msrb.mxu0 %v3974_v57  ;;  %757 = vmatpush.msrb.mxu1 %v6082_v13 }
  0xa6   :  { %777 = vmatpush.msrb.mxu2 %v3982_v60  ;;  %797 = vmatpush.msrb.mxu3 %v3980_v59 }
  0xa7   :  { %738 = vmatpush.msrb.mxu0 %v3985_v61  ;;  %758 = vmatpush.msrb.mxu1 %v3987_v62 }
  0xa8   :  { %778 = vmatpush.msrb.mxu2 %v3992_v63  ;;  %798 = vmatpush.msrb.mxu3 %v6083_v0 }
  0xa9   :  { %739 = vmatpush.msrb.mxu0 %v4000_v26  ;;  %759 = vmatpush.msrb.mxu1 %v4002_v39 }
  0xaa   :  { %779 = vmatpush.msrb.mxu2 %v4006_v52  ;;  %799 = vmatpush.msrb.mxu3 %v4008_v58 }
  0xb6   :  { %v217_v13 = vpop.f32.mrf.mxu0  ;;  %v258_v60 = vpop.f32.mrf.mxu1 }
  0xbd   :  { %v299_v57 = vpop.f32.mrf.mxu2  ;;  %v340_v59 = vpop.f32.mrf.mxu3 }
  0xbe   :  { %v4146_v55 = vpop.f32.mrf.mxu0  ;;  %v4148_v61 = vpop.f32.mrf.mxu1 }
  0xbf   :  { %6084 = vst [vmem:[#allocation43_spill] sm:$0xff] %v4146_v55 }
  0xc0   :  { %6085 = vst [vmem:[#allocation44_spill] sm:$0xff] %v4148_v61 }
  0xc5   :  { %v4150_v62 = vpop.f32.mrf.mxu2  ;;  %v4152_v63 = vpop.f32.mrf.mxu3 }
  0xc6   :  { %6086 = vst [vmem:[#allocation45_spill] sm:$0xff] %v4150_v62  ;;  %v4154_v0 = vpop.f32.mrf.mxu0  ;;  %v4156_v26 = vpop.f32.mrf.mxu1 }
  0xc7   :  { %6087 = vst [vmem:[#allocation46_spill] sm:$0xff] %v4152_v63 }
  0xc8   :  { %6088 = vst [vmem:[#allocation47_spill] sm:$0xff] %v4154_v0 }
  0xc9   :  { %6089 = vst [vmem:[#allocation48_spill] sm:$0xff] %v4156_v26 }
  0xcd   :  { %v4158_v39 = vpop.f32.mrf.mxu2  ;;  %v4160_v52 = vpop.f32.mrf.mxu3 }
  0xce   :  { %6090 = vst [vmem:[#allocation49_spill] sm:$0xff] %v4158_v39  ;;  %v4162_v58 = vpop.f32.mrf.mxu0  ;;  %v4164_v56 = vpop.f32.mrf.mxu1 }
  0xcf   :  { %6091 = vst [vmem:[#allocation50_spill] sm:$0xff] %v4160_v52 }
  0xd0   :  { %6092 = vst [vmem:[#allocation51_spill] sm:$0xff] %v4162_v58 }
  0xd1   :  { %6093 = vst [vmem:[#allocation52_spill] sm:$0xff] %v4164_v56 }
  0xd5   :  { %v4166_v54 = vpop.f32.mrf.mxu2  ;;  %v4168_v55 = vpop.f32.mrf.mxu3 }
  0xd6   :  { %6094 = vst [vmem:[#allocation53_spill] sm:$0xff] %v4166_v54  ;;  %v4170_v61 = vpop.f32.mrf.mxu0  ;;  %v4172_v62 = vpop.f32.mrf.mxu1 }
  0xd7   :  { %6095 = vst [vmem:[#allocation54_spill] sm:$0xff] %v4168_v55 }
  0xd8   :  { %6096 = vst [vmem:[#allocation55_spill] sm:$0xff] %v4170_v61  ;;  %v190_v61 = vld [vmem:[#allocation9] sm:$0xf] }
  0xd9   :  { %6097 = vst [vmem:[#allocation56_spill] sm:$0xff] %v4172_v62  ;;  %v4206_v51 = vperm.slane %v190_v61, 3 }
  0xdb   :  { %6113 = vst [vmem:[#allocation72_spill] sm:$0xff] %v4206_v51  ;;  %v341_v49 = vadd.f32 %v340_v59, %v4206_v51 }
  0xdd   :  { %v4174_v63 = vpop.f32.mrf.mxu3  ;;  %v4180_v39 = vpop.f32.mrf.mxu2 }
  0xde   :  { %6098 = vst [vmem:[#allocation57_spill] sm:$0xff] %v4174_v63  ;;  %v4176_v0 = vpop.f32.mrf.mxu0  ;;  %v4178_v26 = vpop.f32.mrf.mxu1 }
  0xdf   :  { %6099 = vst [vmem:[#allocation58_spill] sm:$0xff] %v4176_v0  ;;  %v4196_v0 = vperm.slane %v190_v61, 0 }
  0xe0   :  { %6100 = vst [vmem:[#allocation59_spill] sm:$0xff] %v4178_v26  ;;  %v4198_v26 = vperm.slane %v190_v61, 1 }
  0xe1   :  { %6101 = vst [vmem:[#allocation60_spill] sm:$0xff] %v4180_v39 }
  0xe2   :  { %6109 = vst [vmem:[#allocation68_spill] sm:$0xff] %v4196_v0 }
  0xe3   :  { %6110 = vst [vmem:[#allocation69_spill] sm:$0xff] %v4198_v26 }
  0xe5   :  { %v4182_v52 = vpop.f32.mrf.mxu3  ;;  %v4188_v54 = vpop.f32.mrf.mxu2 }
  0xe6   :  { %6102 = vst [vmem:[#allocation61_spill] sm:$0xff] %v4182_v52  ;;  %v4184_v58 = vpop.f32.mrf.mxu0  ;;  %v4186_v56 = vpop.f32.mrf.mxu1  ;;  %v218_v52 = vadd.f32 %v217_v13, %v4196_v0 }
  0xe7   :  { %6103 = vst [vmem:[#allocation62_spill] sm:$0xff] %v4184_v58  ;;  %v259_v58 = vadd.f32 %v258_v60, %v4198_v26 }
  0xe8   :  { %6104 = vst [vmem:[#allocation63_spill] sm:$0xff] %v4186_v56 }
  0xe9   :  { %6105 = vst [vmem:[#allocation64_spill] sm:$0xff] %v4188_v54 }
  0xed   :  { %v4190_v55 = vpop.f32.mrf.mxu3  ;;  %v4200_v39 = vpop.f32.mrf.mxu2 }
  0xee   :  { %6106 = vst [vmem:[#allocation65_spill] sm:$0xff] %v4190_v55  ;;  %v4192_v62 = vpop.f32.mrf.mxu0  ;;  %v4194_v63 = vpop.f32.mrf.mxu1 }
  0xef   :  { %6107 = vst [vmem:[#allocation66_spill] sm:$0xff] %v4192_v62 }
  0xf0   :  { %6108 = vst [vmem:[#allocation67_spill] sm:$0xff] %v4194_v63 }
  0xf1   :  { %6111 = vst [vmem:[#allocation70_spill] sm:$0xff] %v4200_v39 }
  0xf5   :  { %v4204_v56 = vpop.f32.mrf.mxu3  ;;  %v4209_v48 = vpop.f32.mrf.mxu2 }
  0xf6   :  { %6112 = vst [vmem:[#allocation71_spill] sm:$0xff] %v4204_v56  ;;  %v445_v54 = vpop.f32.mrf.mxu0  ;;  %v465_v53 = vpop.f32.mrf.mxu1 }
  0xf7   :  { %v508_v55 = vadd.f32 %v445_v54, %v218_v52  ;;  %v509_v50 = vadd.f32 %v465_v53, %v259_v58  ;;  %6114 = vst [vmem:[#allocation73_spill] sm:$0xff] %v4209_v48  ;;  %v4211_v54 = vperm.slane %v190_v61, 2 }
  0xf9   :  { %v3161_v62 = vmul.f32 -1.442695, %v508_v55  ;;  %v3162_v63 = vmul.f32 -1.442695, %v509_v50  ;;  %6115 = vst [vmem:[#allocation74_spill] sm:$0xff] %v4211_v54  ;;  %v300_v55 = vadd.f32 %v299_v57, %v4211_v54 }
  0xfb   :  { %3223 = vpow2.f32 %v3161_v62 }
  0xfc   :  { %3225 = vpow2.f32 %v3162_v63 }
  0xfd   :  { %v505_v39 = vpop.f32.mrf.mxu3  ;;  %v485_v53 = vpop.f32.mrf.mxu2 }
  0xfe   :  { %v511_v13 = vadd.f32 %v505_v39, %v341_v49  ;;  %v510_v62 = vadd.f32 %v485_v53, %v300_v55 }
 0x100   :  { %v3163_v0 = vmul.f32 -1.442695, %v511_v13 }
 0x101   :  { %v3224_v60 = vpop.eup %3223 }
 0x102   :  { %v3226_v26 = vpop.eup %3225  ;;  %v515_v56 = vadd.f32 1.0, %v3224_v60  ;;  %3227 = vpow2.f32 %v3163_v0 }
 0x103   :  { %v534_v46 = vadd.f32 1.0, %v3226_v26 }
 0x104   :  { %3229 = vrcp.f32 %v515_v56  ;;  %v527_v60 = vand.u32 2147483648, %v515_v56  ;;  %v525_v0 = vand.u32 2147483647, %v515_v56  ;;  %vm521_vm2 = vweird.f32 %v515_v56 }
 0x105   :  { %3231 = vrcp.f32 %v534_v46  ;;  %v546_v26 = vand.u32 2147483648, %v534_v46  ;;  %v544_v51 = vand.u32 2147483647, %v534_v46  ;;  %vm540_vm3 = vweird.f32 %v534_v46 }
 0x106   :  { %v528_v53 = vor.u32 1.1754944e-38, %v527_v60  ;;  %vm526_vm5 = vcmp.eq.f32.partialorder %v525_v0, 8.507059e+37 }
 0x107   :  { %v547_v54 = vor.u32 1.1754944e-38, %v546_v26  ;;  %vm545_vm7 = vcmp.eq.f32.partialorder %v544_v51, 8.507059e+37 }
 0x108   :  { %v3228_v50 = vpop.eup %3227 }
 0x109   :  { %v554_v58 = vadd.f32 1.0, %v3228_v50 }
 0x10a   :  { %v3230_v59 = vpop.eup %3229 }
 0x10b   :  { %v3232_v63 = vpop.eup %3231  ;;  %v517_v52 = vmul.f32 %v3230_v59, %v515_v56  ;;  %3233 = vrcp.f32 %v554_v58  ;;  %vm522_vm0 = vweird.f32 %v3230_v59  ;;  %vm560_vm9 = vweird.f32 %v554_v58 }
 0x10c   :  { %v536_v49 = vmul.f32 %v3232_v63, %v534_v46  ;;  %3235 = vtanh.f32 %v510_v62  ;;  %vm541_vm1 = vweird.f32 %v3232_v63  ;;  %vm523_vm4 = vmor %vm521_vm2, %vm522_vm0  ;;  %v564_v56 = vand.u32 2147483647, %v554_v58 }
 0x10d   :  { %v518_v39 = vsub.f32 1.0, %v517_v52  ;;  %vm542_vm6 = vmor %vm540_vm3, %vm541_vm1 }
 0x10e   :  { %v537_v13 = vsub.f32 1.0, %v536_v49  ;;  %vm565_vm11 = vcmp.eq.f32.partialorder %v564_v56, 8.507059e+37 }
 0x10f   :  { %v519_v61 = vmul.f32 %v3230_v59, %v518_v39 }
 0x110   :  { %v538_v48 = vmul.f32 %v3232_v63, %v537_v13 }
 0x111   :  { %v3234_v47 = vpop.eup %3233  ;;  %v520_v57 = vadd.f32 %v3230_v59, %v519_v61 }
 0x112   :  { %v539_v50 = vadd.f32 %v3232_v63, %v538_v48  ;;  %v556_v55 = vmul.f32 %v3234_v47, %v554_v58  ;;  %v3236_v62 = vpop.eup %3235  ;;  %vm561_vm8 = vweird.f32 %v3234_v47  ;;  %v566_v48 = vand.u32 2147483648, %v554_v58 }
 0x113   :  { %v524_v52 = vsel %vm523_vm4, %v3230_v59, %v520_v57  ;;  %vm562_vm10 = vmor %vm560_vm9, %vm561_vm8 }
 0x114   :  { %v529_v49 = vsel %vm526_vm5, %v528_v53, %v524_v52  ;;  %v543_v39 = vsel %vm542_vm6, %v3232_v63, %v539_v50  ;;  %v557_v45 = vsub.f32 1.0, %v556_v55  ;;  %v567_v60 = vor.u32 1.1754944e-38, %v566_v48  ;;  %v6149_v52 = vld [vmem:[#allocation74_spill] sm:$0xff] }
 0x115   :  { %v548_v13 = vsel %vm545_vm7, %v547_v54, %v543_v39  ;;  %v571_v44 = vmul.f32 %v3236_v62, %v529_v49  ;;  %v6150_v62 = vld [vmem:[#allocation45_spill] sm:$0xff] }
 0x116   :  { %v570_v42 = vmul.f32 0.0, %v548_v13  ;;  %v558_v43 = vmul.f32 %v3234_v47, %v557_v45  ;;  %v303_v49 = vadd.f32 %v6150_v62, %v6149_v52 }
 0x118   :  { %v4214_v61 = vadd.f32 %v571_v44, %v570_v42  ;;  %v559_v46 = vadd.f32 %v3234_v47, %v558_v43  ;;  %v6147_v42 = vld [vmem:[#allocation72_spill] sm:$0xff]  ;;  %v6148_v43 = vld [vmem:[#allocation46_spill] sm:$0xff] }
 0x119   :  { %v344_v44 = vadd.f32 %v6148_v43, %v6147_v42 }
 0x11a   :  { %3237 = vtanh.f32 %v4214_v61  ;;  %v563_v59 = vsel %vm562_vm10, %v3234_v47, %v559_v46 }
 0x11b   :  { %v568_v51 = vsel %vm565_vm11, %v567_v60, %v563_v59 }
 0x120   :  { %v3238_v63 = vpop.eup %3237 }
 0x121   :  { %v4217_v26 = vmul.f32 %v3238_v63, %v568_v51 }
 0x123   :  { %6116 = vst [vmem:[#allocation75_spill] sm:$0xff] %v4217_v26  ;;  %592 = vmatmul.f32.vlgmr.msra.gmra.mxu0 %v4217_v26  ;;  %612 = vmatmul.f32.vlgmr.msra.gmra.mxu1 %v4217_v26 }
 0x124   :  { %632 = vmatmul.f32.vlgmr.msra.gmra.mxu2 %v4217_v26  ;;  %652 = vmatmul.f32.vlgmr.msra.gmra.mxu3 %v4217_v26  ;;  %v4401_v26 = vld [vmem:[#allocation8 + $0xe0] sm:$0xff] }
 0x125   :  { %872 = vmatpush.msra.mxu0 %v3822_v1  ;;  %892 = vmatpush.msra.mxu1 %v3824_v2  ;;  %v6117_v1 = vld [vmem:[#allocation18_spill] sm:$0xff]  ;;  %v6118_v2 = vld [vmem:[#allocation17_spill] sm:$0xff] }
 0x126   :  { %912 = vmatpush.msra.mxu2 %v3828_v4  ;;  %932 = vmatpush.msra.mxu3 %v3826_v3  ;;  %v6119_v3 = vld [vmem:[#allocation19_spill] sm:$0xff]  ;;  %v6120_v4 = vld [vmem:[#allocation20_spill] sm:$0xff] }
 0x127   :  { %873 = vmatpush.msra.mxu0 %v3830_v5  ;;  %893 = vmatpush.msra.mxu1 %v3832_v6  ;;  %v6121_v5 = vld [vmem:[#allocation22_spill] sm:$0xff]  ;;  %v6122_v6 = vld [vmem:[#allocation21_spill] sm:$0xff] }
 0x128   :  { %913 = vmatpush.msra.mxu2 %v3838_v8  ;;  %933 = vmatpush.msra.mxu3 %v3836_v7  ;;  %v6123_v7 = vld [vmem:[#allocation23_spill] sm:$0xff]  ;;  %v6124_v8 = vld [vmem:[#allocation24_spill] sm:$0xff] }
 0x129   :  { %874 = vmatpush.msra.mxu0 %v3841_v9  ;;  %894 = vmatpush.msra.mxu1 %v3843_v10  ;;  %v6125_v9 = vld [vmem:[#allocation26_spill] sm:$0xff]  ;;  %v6126_v10 = vld [vmem:[#allocation25_spill] sm:$0xff] }
 0x12a   :  { %914 = vmatpush.msra.mxu2 %v3850_v12  ;;  %934 = vmatpush.msra.mxu3 %v3848_v11  ;;  %v6127_v11 = vld [vmem:[#allocation27_spill] sm:$0xff]  ;;  %v6128_v12 = vld [vmem:[#allocation28_spill] sm:$0xff] }
 0x12b   :  { %875 = vmatpush.msra.mxu0 %v3856_v14  ;;  %895 = vmatpush.msra.mxu1 %v3858_v15  ;;  %v6129_v14 = vld [vmem:[#allocation30_spill] sm:$0xff]  ;;  %v6130_v15 = vld [vmem:[#allocation29_spill] sm:$0xff] }
 0x12c   :  { %915 = vmatpush.msra.mxu2 %v3864_v17  ;;  %935 = vmatpush.msra.mxu3 %v3862_v16  ;;  %v6131_v16 = vld [vmem:[#allocation31_spill] sm:$0xff]  ;;  %v6132_v17 = vld [vmem:[#allocation32_spill] sm:$0xff] }
 0x12d   :  { %876 = vmatpush.msra.mxu0 %v3866_v18  ;;  %896 = vmatpush.msra.mxu1 %v3868_v19  ;;  %v6133_v18 = vld [vmem:[#allocation34_spill] sm:$0xff]  ;;  %v6134_v19 = vld [vmem:[#allocation33_spill] sm:$0xff] }
 0x12e   :  { %916 = vmatpush.msra.mxu2 %v3874_v21  ;;  %936 = vmatpush.msra.mxu3 %v3872_v20  ;;  %v6135_v20 = vld [vmem:[#allocation35_spill] sm:$0xff]  ;;  %v6136_v21 = vld [vmem:[#allocation36_spill] sm:$0xff] }
 0x12f   :  { %877 = vmatpush.msra.mxu0 %v3877_v22  ;;  %897 = vmatpush.msra.mxu1 %v3879_v23  ;;  %v6137_v22 = vld [vmem:[#allocation37_spill] sm:$0xff]  ;;  %v6138_v23 = vld [vmem:[#allocation38_spill] sm:$0xff] }
 0x130   :  { %917 = vmatpush.msra.mxu2 %v3886_v25  ;;  %937 = vmatpush.msra.mxu3 %v3884_v24  ;;  %v6139_v24 = vld [vmem:[#allocation39_spill] sm:$0xff]  ;;  %v6140_v25 = vld [vmem:[#allocation40_spill] sm:$0xff] }
 0x131   :  { %878 = vmatpush.msra.mxu0 %v3892_v27  ;;  %898 = vmatpush.msra.mxu1 %v3894_v28  ;;  %v6141_v27 = vld [vmem:[#allocation41_spill] sm:$0xff]  ;;  %v6142_v28 = vld [vmem:[#allocation42_spill] sm:$0xff] }
 0x132   :  { %918 = vmatpush.msra.mxu2 %v3900_v30  ;;  %938 = vmatpush.msra.mxu3 %v3898_v29  ;;  %v6143_v29 = vld [vmem:[#allocation68_spill] sm:$0xff]  ;;  %v6144_v30 = vld [vmem:[#allocation43_spill] sm:$0xff] }
 0x133   :  { %879 = vmatpush.msra.mxu0 %v3902_v31  ;;  %899 = vmatpush.msra.mxu1 %v3904_v32  ;;  %v221_v31 = vadd.f32 %v6144_v30, %v6143_v29  ;;  %v6145_v32 = vld [vmem:[#allocation69_spill] sm:$0xff] }
 0x134   :  { %919 = vmatpush.msra.mxu2 %v3910_v34  ;;  %939 = vmatpush.msra.mxu3 %v3908_v33  ;;  %v6146_v33 = vld [vmem:[#allocation44_spill] sm:$0xff] }
 0x135   :  { %880 = vmatpush.msra.mxu0 %v3913_v35  ;;  %900 = vmatpush.msra.mxu1 %v3915_v36  ;;  %v262_v34 = vadd.f32 %v6146_v33, %v6145_v32 }
 0x136   :  { %920 = vmatpush.msra.mxu2 %v3922_v38  ;;  %940 = vmatpush.msra.mxu3 %v3920_v37 }
 0x137   :  { %881 = vmatpush.msra.mxu0 %v3928_v40  ;;  %901 = vmatpush.msra.mxu1 %v3930_v41 }
 0x138   :  { %921 = vmatpush.msra.mxu2 %v6117_v1  ;;  %941 = vmatpush.msra.mxu3 %v6118_v2 }
 0x139   :  { %882 = vmatpush.msra.mxu0 %v6119_v3  ;;  %902 = vmatpush.msra.mxu1 %v6120_v4 }
 0x13a   :  { %922 = vmatpush.msra.mxu2 %v6121_v5  ;;  %942 = vmatpush.msra.mxu3 %v6122_v6 }
 0x13b   :  { %883 = vmatpush.msra.mxu0 %v6123_v7  ;;  %903 = vmatpush.msra.mxu1 %v6124_v8 }
 0x13c   :  { %923 = vmatpush.msra.mxu2 %v6125_v9  ;;  %943 = vmatpush.msra.mxu3 %v6126_v10 }
 0x13d   :  { %884 = vmatpush.msra.mxu0 %v6127_v11  ;;  %904 = vmatpush.msra.mxu1 %v6128_v12 }
 0x13e   :  { %924 = vmatpush.msra.mxu2 %v6129_v14  ;;  %944 = vmatpush.msra.mxu3 %v6130_v15 }
 0x13f   :  { %885 = vmatpush.msra.mxu0 %v6131_v16  ;;  %905 = vmatpush.msra.mxu1 %v6132_v17 }
 0x140   :  { %925 = vmatpush.msra.mxu2 %v6133_v18  ;;  %945 = vmatpush.msra.mxu3 %v6134_v19 }
 0x141   :  { %886 = vmatpush.msra.mxu0 %v6135_v20  ;;  %906 = vmatpush.msra.mxu1 %v6136_v21 }
 0x142   :  { %926 = vmatpush.msra.mxu2 %v6137_v22  ;;  %946 = vmatpush.msra.mxu3 %v6138_v23 }
 0x143   :  { %887 = vmatpush.msra.mxu0 %v6139_v24  ;;  %907 = vmatpush.msra.mxu1 %v6140_v25 }
 0x144   :  { %927 = vmatpush.msra.mxu2 %v6141_v27  ;;  %947 = vmatpush.msra.mxu3 %v6142_v28 }
 0x1a0   :  { %v593_v35 = vpop.f32.mrf.mxu0  ;;  %v613_v36 = vpop.f32.mrf.mxu1 }
 0x1a1   :  { %v656_v37 = vadd.f32 %v593_v35, %v221_v31  ;;  %v657_v38 = vadd.f32 %v613_v36, %v262_v34 }
 0x1a3   :  { %v3164_v40 = vmul.f32 -1.442695, %v656_v37  ;;  %v3165_v41 = vmul.f32 -1.442695, %v657_v38 }
 0x1a5   :  { %3239 = vpow2.f32 %v3164_v40 }
 0x1a6   :  { %3241 = vpow2.f32 %v3165_v41 }
 0x1a7   :  { %v653_v45 = vpop.f32.mrf.mxu3  ;;  %v633_v50 = vpop.f32.mrf.mxu2 }
 0x1a8   :  { %v659_v47 = vadd.f32 %v653_v45, %v344_v44  ;;  %v658_v46 = vadd.f32 %v633_v50, %v303_v49 }
 0x1aa   :  { %v3166_v54 = vmul.f32 -1.442695, %v659_v47 }
 0x1ab   :  { %v3240_v58 = vpop.eup %3239 }
 0x1ac   :  { %v3242_v0 = vpop.eup %3241  ;;  %v663_v57 = vadd.f32 1.0, %v3240_v58  ;;  %3243 = vpow2.f32 %v3166_v54 }
 0x1ad   :  { %v682_v53 = vadd.f32 1.0, %v3242_v0 }
 0x1ae   :  { %3245 = vrcp.f32 %v663_v57  ;;  %v675_v51 = vand.u32 2147483648, %v663_v57  ;;  %v673_v33 = vand.u32 2147483647, %v663_v57  ;;  %vm669_vm14 = vweird.f32 %v663_v57 }
 0x1af   :  { %3247 = vrcp.f32 %v682_v53  ;;  %v694_v30 = vand.u32 2147483648, %v682_v53  ;;  %v692_v35 = vand.u32 2147483647, %v682_v53  ;;  %vm688_vm15 = vweird.f32 %v682_v53 }
 0x1b0   :  { %v676_v38 = vor.u32 1.1754944e-38, %v675_v51  ;;  %vm674_vm2 = vcmp.eq.f32.partialorder %v673_v33, 8.507059e+37  ;;  %v4314_v51 = vld [vmem:[#allocation8 + $0x1f8] sm:$0xff]  ;;  %v4323_v33 = vld [vmem:[#allocation8 + $0x1d0] sm:$0xff] }
 0x1b1   :  { %v695_v43 = vor.u32 1.1754944e-38, %v694_v30  ;;  %vm693_vm3 = vcmp.eq.f32.partialorder %v692_v35, 8.507059e+37  ;;  %v4317_v30 = vld [vmem:[#allocation8 + $0x1c0] sm:$0xff] }
 0x1b2   :  { %v3244_v55 = vpop.eup %3243  ;;  %v4329_v35 = vld [vmem:[#allocation8 + $0x1a0] sm:$0xff] }
 0x1b3   :  { %v702_v39 = vadd.f32 1.0, %v3244_v55 }
 0x1b4   :  { %v3246_v13 = vpop.eup %3245 }
 0x1b5   :  { %v3248_v48 = vpop.eup %3247  ;;  %v665_v56 = vmul.f32 %v3246_v13, %v663_v57  ;;  %3249 = vrcp.f32 %v702_v39  ;;  %vm670_vm12 = vweird.f32 %v3246_v13  ;;  %v714_v49 = vand.u32 2147483648, %v702_v39 }
 0x1b6   :  { %v684_v59 = vmul.f32 %v3248_v48, %v682_v53  ;;  %3251 = vtanh.f32 %v658_v46  ;;  %vm689_vm13 = vweird.f32 %v3248_v48  ;;  %vm671_vm0 = vmor %vm669_vm14, %vm670_vm12  ;;  %vm708_vm5 = vweird.f32 %v702_v39 }
 0x1b7   :  { %v666_v60 = vsub.f32 1.0, %v665_v56  ;;  %vm690_vm1 = vmor %vm688_vm15, %vm689_vm13  ;;  %v715_v56 = vor.u32 1.1754944e-38, %v714_v49  ;;  %v4380_v49 = vld [vmem:[#allocation8 + $0x128] sm:$0xff] }
 0x1b8   :  { %v685_v63 = vsub.f32 1.0, %v684_v59 }
 0x1b9   :  { %v667_v31 = vmul.f32 %v3246_v13, %v666_v60 }
 0x1ba   :  { %v686_v34 = vmul.f32 %v3248_v48, %v685_v63  ;;  %v4311_v63 = vld [vmem:[#allocation8 + $0x1f0] sm:$0xff] }
 0x1bb   :  { %v3250_v36 = vpop.eup %3249  ;;  %v668_v37 = vadd.f32 %v3246_v13, %v667_v31  ;;  %v4320_v31 = vld [vmem:[#allocation8 + $0x1c8] sm:$0xff] }
 0x1bc   :  { %v687_v40 = vadd.f32 %v3248_v48, %v686_v34  ;;  %v704_v41 = vmul.f32 %v3250_v36, %v702_v39  ;;  %v3252_v45 = vpop.eup %3251  ;;  %vm709_vm4 = vweird.f32 %v3250_v36  ;;  %v4326_v34 = vld [vmem:[#allocation8 + $0x1d8] sm:$0xff] }
 0x1bd   :  { %v672_v44 = vsel %vm671_vm0, %v3246_v13, %v668_v37  ;;  %v712_v13 = vand.u32 2147483647, %v702_v39  ;;  %vm710_vm6 = vmor %vm708_vm5, %vm709_vm4  ;;  %v4308_v39 = vld [vmem:[#allocation8 + $0x1e8] sm:$0xff]  ;;  %v4335_v37 = vld [vmem:[#allocation8 + $0x1b0] sm:$0xff] }
 0x1be   :  { %v677_v47 = vsel %vm674_vm2, %v676_v38, %v672_v44  ;;  %v691_v54 = vsel %vm690_vm1, %v3248_v48, %v687_v40  ;;  %v705_v58 = vsub.f32 1.0, %v704_v41  ;;  %v4338_v38 = vld [vmem:[#allocation8 + $0x1b8] sm:$0xff]  ;;  %v4341_v40 = vld [vmem:[#allocation8 + $0x180] sm:$0xff]  ;;  %v4344_v41 = vld [vmem:[#allocation8 + $0x188] sm:$0xff] }
 0x1bf   :  { %v696_v0 = vsel %vm693_vm3, %v695_v43, %v691_v54  ;;  %v719_v50 = vmul.f32 %v3252_v45, %v677_v47  ;;  %vm713_vm7 = vcmp.eq.f32.partialorder %v712_v13, 8.507059e+37  ;;  %v4347_v43 = vld [vmem:[#allocation8 + $0x190] sm:$0xff]  ;;  %v4350_v44 = vld [vmem:[#allocation8 + $0x198] sm:$0xff]  ;;  %v4353_v45 = vld [vmem:[#allocation8 + $0x160] sm:$0xff] }
 0x1c0   :  { %v718_v55 = vmul.f32 %v696_v0, %v4214_v61  ;;  %v706_v62 = vmul.f32 %v3250_v36, %v705_v58  ;;  %v4305_v61 = vld [vmem:[#allocation8 + $0x1e0] sm:$0xff]  ;;  %v4356_v47 = vld [vmem:[#allocation8 + $0x168] sm:$0xff]  ;;  %v4359_v54 = vld [vmem:[#allocation8 + $0x170] sm:$0xff] }
 0x1c1   :  { %v4362_v58 = vld [vmem:[#allocation8 + $0x178] sm:$0xff]  ;;  %v4365_v0 = vld [vmem:[#allocation8 + $0x140] sm:$0xff]  ;;  %v4383_v13 = vld [vmem:[#allocation8 + $0x130] sm:$0xff] }
 0x1c2   :  { %v4296_v57 = vadd.f32 %v719_v50, %v718_v55  ;;  %v707_v53 = vadd.f32 %v3250_v36, %v706_v62  ;;  %v4368_v50 = vld [vmem:[#allocation8 + $0x148] sm:$0xff]  ;;  %v4371_v55 = vld [vmem:[#allocation8 + $0x150] sm:$0xff]  ;;  %v4374_v62 = vld [vmem:[#allocation8 + $0x158] sm:$0xff] }
 0x1c4   :  { %3253 = vtanh.f32 %v4296_v57  ;;  %v711_v46 = vsel %vm710_vm6, %v3250_v36, %v707_v53  ;;  %v4332_v36 = vld [vmem:[#allocation8 + $0x1a8] sm:$0xff]  ;;  %v4377_v53 = vld [vmem:[#allocation8 + $0x120] sm:$0xff] }
 0x1c5   :  { %v716_v59 = vsel %vm713_vm7, %v715_v56, %v711_v46  ;;  %v4386_v46 = vld [vmem:[#allocation8 + $0x138] sm:$0xff]  ;;  %v4389_v56 = vld [vmem:[#allocation8 + $0x100] sm:$0xff] }
 0x1c6   :  { %6152 = vst [vmem:[#allocation17_spill] sm:$0xff] %v4386_v46 }
 0x1c7   :  { %6153 = vst [vmem:[#allocation19_spill] sm:$0xff] %v4389_v56 }
 0x1ca   :  { %v3254_v48 = vpop.eup %3253 }
 0x1cb   :  { %v4299_v60 = vmul.f32 %v3254_v48, %v716_v59  ;;  %v4392_v48 = vld [vmem:[#allocation8 + $0x108] sm:$0xff]  ;;  %v4395_v59 = vld [vmem:[#allocation8 + $0x110] sm:$0xff] }
 0x1cc   :  { %6154 = vst [vmem:[#allocation20_spill] sm:$0xff] %v4392_v48 }
 0x1cd   :  { %6151 = vst [vmem:[#allocation18_spill] sm:$0xff] %v4299_v60  ;;  %740 = vmatmul.f32.vlgmr.msrb.gmra.mxu0 %v4299_v60  ;;  %760 = vmatmul.f32.vlgmr.msrb.gmra.mxu1 %v4299_v60 }
 0x1ce   :  { %780 = vmatmul.f32.vlgmr.msrb.gmra.mxu2 %v4299_v60  ;;  %800 = vmatmul.f32.vlgmr.msrb.gmra.mxu3 %v4299_v60  ;;  %6155 = vst [vmem:[#allocation22_spill] sm:$0xff] %v4395_v59  ;;  %v4398_v60 = vld [vmem:[#allocation8 + $0x118] sm:$0xff] }
 0x1cf   :  { %1020 = vmatpush.msrb.mxu0 %v4305_v61  ;;  %1040 = vmatpush.msrb.mxu1 %v4308_v39  ;;  %6156 = vst [vmem:[#allocation21_spill] sm:$0xff] %v4398_v60 }
 0x1d0   :  { %1060 = vmatpush.msrb.mxu2 %v4311_v63  ;;  %1080 = vmatpush.msrb.mxu3 %v4314_v51 }
 0x1d1   :  { %1021 = vmatpush.msrb.mxu0 %v4317_v30  ;;  %1041 = vmatpush.msrb.mxu1 %v4320_v31 }
 0x1d2   :  { %1061 = vmatpush.msrb.mxu2 %v4323_v33  ;;  %1081 = vmatpush.msrb.mxu3 %v4326_v34 }
 0x1d3   :  { %1022 = vmatpush.msrb.mxu0 %v4329_v35  ;;  %1042 = vmatpush.msrb.mxu1 %v4332_v36 }
 0x1d4   :  { %1062 = vmatpush.msrb.mxu2 %v4335_v37  ;;  %1082 = vmatpush.msrb.mxu3 %v4338_v38 }
 0x1d5   :  { %1023 = vmatpush.msrb.mxu0 %v4341_v40  ;;  %1043 = vmatpush.msrb.mxu1 %v4344_v41 }
 0x1d6   :  { %1063 = vmatpush.msrb.mxu2 %v4347_v43  ;;  %1083 = vmatpush.msrb.mxu3 %v4350_v44 }
 0x1d7   :  { %1024 = vmatpush.msrb.mxu0 %v4353_v45  ;;  %1044 = vmatpush.msrb.mxu1 %v4356_v47 }
 0x1d8   :  { %1064 = vmatpush.msrb.mxu2 %v4359_v54  ;;  %1084 = vmatpush.msrb.mxu3 %v4362_v58 }
 0x1d9   :  { %1025 = vmatpush.msrb.mxu0 %v4365_v0  ;;  %1045 = vmatpush.msrb.mxu1 %v4368_v50 }
 0x1da   :  { %1065 = vmatpush.msrb.mxu2 %v4371_v55  ;;  %1085 = vmatpush.msrb.mxu3 %v4374_v62 }
 0x1db   :  { %1026 = vmatpush.msrb.mxu0 %v4377_v53  ;;  %1046 = vmatpush.msrb.mxu1 %v4380_v49 }
 0x1dc   :  { %1066 = vmatpush.msrb.mxu2 %v4383_v13  ;;  %1086 = vmatpush.msrb.mxu3 %v4386_v46  ;;  %v4404_v46 = vld [vmem:[#allocation8 + $0xe8] sm:$0xff] }
 0x1dd   :  { %1027 = vmatpush.msrb.mxu0 %v4389_v56  ;;  %1047 = vmatpush.msrb.mxu1 %v4392_v48  ;;  %v4407_v56 = vld [vmem:[#allocation8 + $0xf0] sm:$0xff]  ;;  %v4410_v48 = vld [vmem:[#allocation8 + $0xf8] sm:$0xff] }
 0x1de   :  { %1067 = vmatpush.msrb.mxu2 %v4395_v59  ;;  %1087 = vmatpush.msrb.mxu3 %v4398_v60  ;;  %v4413_v59 = vld [vmem:[#allocation8 + $0xc0] sm:$0xff]  ;;  %v4416_v60 = vld [vmem:[#allocation8 + $0xc8] sm:$0xff] }
 0x1df   :  { %1028 = vmatpush.msrb.mxu0 %v4401_v26  ;;  %1048 = vmatpush.msrb.mxu1 %v4404_v46 }
 0x1e0   :  { %1068 = vmatpush.msrb.mxu2 %v4407_v56  ;;  %1088 = vmatpush.msrb.mxu3 %v4410_v48 }
 0x1e1   :  { %1029 = vmatpush.msrb.mxu0 %v4413_v59  ;;  %1049 = vmatpush.msrb.mxu1 %v4416_v60 }
 0x1e2   :  { %1069 = vmatpush.msrb.mxu2 %v6117_v1  ;;  %1089 = vmatpush.msrb.mxu3 %v6118_v2  ;;  %v6157_v1 = vld [vmem:[#allocation47_spill] sm:$0xff] }
 0x1e3   :  { %1030 = vmatpush.msrb.mxu0 %v6119_v3  ;;  %1050 = vmatpush.msrb.mxu1 %v6120_v4  ;;  %v224_v2 = vadd.f32 %v6157_v1, %v6143_v29  ;;  %v6158_v3 = vld [vmem:[#allocation48_spill] sm:$0xff] }
 0x1e4   :  { %1070 = vmatpush.msrb.mxu2 %v6121_v5  ;;  %1090 = vmatpush.msrb.mxu3 %v6122_v6  ;;  %v265_v4 = vadd.f32 %v6158_v3, %v6145_v32 }
 0x1e5   :  { %1031 = vmatpush.msrb.mxu0 %v6123_v7  ;;  %1051 = vmatpush.msrb.mxu1 %v6124_v8 }
 0x1e6   :  { %1071 = vmatpush.msrb.mxu2 %v6125_v9  ;;  %1091 = vmatpush.msrb.mxu3 %v6126_v10 }
 0x1e7   :  { %1032 = vmatpush.msrb.mxu0 %v6127_v11  ;;  %1052 = vmatpush.msrb.mxu1 %v6128_v12  ;;  %v6159_v11 = vld [vmem:[#allocation50_spill] sm:$0xff] }
 0x1e8   :  { %1072 = vmatpush.msrb.mxu2 %v6129_v14  ;;  %1092 = vmatpush.msrb.mxu3 %v6130_v15  ;;  %v347_v12 = vadd.f32 %v6159_v11, %v6147_v42 }
 0x1e9   :  { %1033 = vmatpush.msrb.mxu0 %v6131_v16  ;;  %1053 = vmatpush.msrb.mxu1 %v6132_v17 }
 0x1ea   :  { %1073 = vmatpush.msrb.mxu2 %v6133_v18  ;;  %1093 = vmatpush.msrb.mxu3 %v6134_v19 }
 0x1eb   :  { %1034 = vmatpush.msrb.mxu0 %v6135_v20  ;;  %1054 = vmatpush.msrb.mxu1 %v6136_v21 }
 0x1ec   :  { %1074 = vmatpush.msrb.mxu2 %v6137_v22  ;;  %1094 = vmatpush.msrb.mxu3 %v6138_v23  ;;  %v6160_v23 = vld [vmem:[#allocation49_spill] sm:$0xff] }
 0x1ed   :  { %1035 = vmatpush.msrb.mxu0 %v6139_v24  ;;  %1055 = vmatpush.msrb.mxu1 %v6140_v25  ;;  %v306_v24 = vadd.f32 %v6160_v23, %v6149_v52 }
 0x1ee   :  { %1075 = vmatpush.msrb.mxu2 %v6141_v27  ;;  %1095 = vmatpush.msrb.mxu3 %v6142_v28 }
 0x24a   :  { %v741_v5 = vpop.f32.mrf.mxu0  ;;  %v761_v6 = vpop.f32.mrf.mxu1 }
 0x24b   :  { %v804_v7 = vadd.f32 %v741_v5, %v224_v2  ;;  %v805_v8 = vadd.f32 %v761_v6, %v265_v4 }
 0x24d   :  { %v3167_v9 = vmul.f32 -1.442695, %v804_v7  ;;  %v3168_v10 = vmul.f32 -1.442695, %v805_v8 }
 0x24f   :  { %3255 = vpow2.f32 %v3167_v9 }
 0x250   :  { %3257 = vpow2.f32 %v3168_v10 }
 0x251   :  { %v801_v14 = vpop.f32.mrf.mxu3  ;;  %v781_v21 = vpop.f32.mrf.mxu2 }
 0x252   :  { %v807_v15 = vadd.f32 %v801_v14, %v347_v12  ;;  %v806_v28 = vadd.f32 %v781_v21, %v306_v24 }
 0x254   :  { %v3169_v16 = vmul.f32 -1.442695, %v807_v15 }
 0x255   :  { %v3256_v17 = vpop.eup %3255 }
 0x256   :  { %v3258_v18 = vpop.eup %3257  ;;  %v811_v19 = vadd.f32 1.0, %v3256_v17  ;;  %3259 = vpow2.f32 %v3169_v16 }
 0x257   :  { %v830_v20 = vadd.f32 1.0, %v3258_v18 }
 0x258   :  { %3261 = vrcp.f32 %v811_v19  ;;  %v823_v6 = vand.u32 2147483648, %v811_v19  ;;  %v821_v9 = vand.u32 2147483647, %v811_v19  ;;  %vm817_vm10 = vweird.f32 %v811_v19 }
 0x259   :  { %3263 = vrcp.f32 %v830_v20  ;;  %v842_v7 = vand.u32 2147483648, %v830_v20  ;;  %v840_v11 = vand.u32 2147483647, %v830_v20  ;;  %vm836_vm11 = vweird.f32 %v830_v20 }
 0x25a   :  { %v824_v15 = vor.u32 1.1754944e-38, %v823_v6  ;;  %vm822_vm14 = vcmp.eq.f32.partialorder %v821_v9, 8.507059e+37 }
 0x25b   :  { %v843_v18 = vor.u32 1.1754944e-38, %v842_v7  ;;  %vm841_vm15 = vcmp.eq.f32.partialorder %v840_v11, 8.507059e+37  ;;  %v6164_v11 = vld [vmem:[#allocation20_spill] sm:$0xff] }
 0x25c   :  { %v3260_v22 = vpop.eup %3259 }
 0x25d   :  { %v850_v25 = vadd.f32 1.0, %v3260_v22 }
 0x25e   :  { %v3262_v27 = vpop.eup %3261 }
 0x25f   :  { %v3264_v1 = vpop.eup %3263  ;;  %v813_v2 = vmul.f32 %v3262_v27, %v811_v19  ;;  %3265 = vrcp.f32 %v850_v25  ;;  %vm818_vm8 = vweird.f32 %v3262_v27  ;;  %v862_v6 = vand.u32 2147483648, %v850_v25 }
 0x260   :  { %v832_v3 = vmul.f32 %v3264_v1, %v830_v20  ;;  %3267 = vtanh.f32 %v806_v28  ;;  %vm837_vm9 = vweird.f32 %v3264_v1  ;;  %vm819_vm12 = vmor %vm817_vm10, %vm818_vm8  ;;  %vm856_vm1 = vweird.f32 %v850_v25 }
 0x261   :  { %v814_v4 = vsub.f32 1.0, %v813_v2  ;;  %vm838_vm13 = vmor %vm836_vm11, %vm837_vm9 }
 0x262   :  { %v833_v5 = vsub.f32 1.0, %v832_v3 }
 0x263   :  { %v815_v8 = vmul.f32 %v3262_v27, %v814_v4 }
 0x264   :  { %v834_v10 = vmul.f32 %v3264_v1, %v833_v5 }
 0x265   :  { %v3266_v12 = vpop.eup %3265  ;;  %v816_v14 = vadd.f32 %v3262_v27, %v815_v8  ;;  %v863_v8 = vor.u32 1.1754944e-38, %v862_v6  ;;  %v4543_v6 = vld [vmem:[#allocation8 + $0x40] sm:$0xff] }
 0x266   :  { %v835_v16 = vadd.f32 %v3264_v1, %v834_v10  ;;  %v852_v17 = vmul.f32 %v3266_v12, %v850_v25  ;;  %v3268_v22 = vpop.eup %3267  ;;  %vm857_vm0 = vweird.f32 %v3266_v12  ;;  %6181 = vst [vmem:[#allocation38_spill] sm:$0xff] %v4543_v6 }
 0x267   :  { %v820_v21 = vsel %vm819_vm12, %v3262_v27, %v816_v14  ;;  %v860_v27 = vand.u32 2147483647, %v850_v25  ;;  %vm858_vm2 = vmor %vm856_vm1, %vm857_vm0  ;;  %v6163_v25 = vld [vmem:[#allocation19_spill] sm:$0xff]  ;;  %v6166_v14 = vld [vmem:[#allocation21_spill] sm:$0xff] }
 0x268   :  { %v825_v23 = vsel %vm822_vm14, %v824_v15, %v820_v21  ;;  %v839_v24 = vsel %vm838_vm13, %v3264_v1, %v835_v16  ;;  %v853_v28 = vsub.f32 1.0, %v852_v17  ;;  %v4501_v15 = vld [vmem:[#allocation8 + $0xd0] sm:$0xff]  ;;  %v4504_v16 = vld [vmem:[#allocation8 + $0xd8] sm:$0xff]  ;;  %v4507_v17 = vld [vmem:[#allocation8 + $0xa0] sm:$0xff] }
 0x269   :  { %v844_v2 = vsel %vm841_vm15, %v843_v18, %v839_v24  ;;  %v867_v3 = vmul.f32 %v3268_v22, %v825_v23  ;;  %vm861_vm3 = vcmp.eq.f32.partialorder %v860_v27, 8.507059e+37  ;;  %6167 = vst [vmem:[#allocation24_spill] sm:$0xff] %v4501_v15  ;;  %v4510_v18 = vld [vmem:[#allocation8 + $0xa8] sm:$0xff]  ;;  %v4513_v21 = vld [vmem:[#allocation8 + $0xb0] sm:$0xff]  ;;  %v4516_v22 = vld [vmem:[#allocation8 + $0xb8] sm:$0xff] }
 0x26a   :  { %v866_v4 = vmul.f32 %v844_v2, %v4296_v57  ;;  %v854_v5 = vmul.f32 %v3266_v12, %v853_v28  ;;  %v6162_v57 = vld [vmem:[#allocation17_spill] sm:$0xff]  ;;  %6168 = vst [vmem:[#allocation26_spill] sm:$0xff] %v4504_v16  ;;  %v4519_v23 = vld [vmem:[#allocation8 + $0x80] sm:$0xff]  ;;  %v4522_v24 = vld [vmem:[#allocation8 + $0x88] sm:$0xff] }
 0x26b   :  { %6169 = vst [vmem:[#allocation25_spill] sm:$0xff] %v4507_v17  ;;  %v4525_v28 = vld [vmem:[#allocation8 + $0x90] sm:$0xff]  ;;  %v4528_v2 = vld [vmem:[#allocation8 + $0x98] sm:$0xff]  ;;  %v4546_v27 = vld [vmem:[#allocation8 + $0x48] sm:$0xff] }
 0x26c   :  { %v4454_v19 = vadd.f32 %v867_v3, %v866_v4  ;;  %v855_v20 = vadd.f32 %v3266_v12, %v854_v5  ;;  %6170 = vst [vmem:[#allocation27_spill] sm:$0xff] %v4510_v18  ;;  %v4531_v3 = vld [vmem:[#allocation8 + $0x60] sm:$0xff]  ;;  %v4534_v4 = vld [vmem:[#allocation8 + $0x68] sm:$0xff]  ;;  %v4537_v5 = vld [vmem:[#allocation8 + $0x70] sm:$0xff] }
 0x26d   :  { %6171 = vst [vmem:[#allocation28_spill] sm:$0xff] %v4513_v21 }
 0x26e   :  { %3269 = vtanh.f32 %v4454_v19  ;;  %v859_v7 = vsel %vm858_vm2, %v3266_v12, %v855_v20  ;;  %v6165_v12 = vld [vmem:[#allocation22_spill] sm:$0xff]  ;;  %6172 = vst [vmem:[#allocation30_spill] sm:$0xff] %v4516_v22 }
 0x26f   :  { %v864_v9 = vsel %vm861_vm3, %v863_v8, %v859_v7  ;;  %6173 = vst [vmem:[#allocation29_spill] sm:$0xff] %v4519_v23  ;;  %v4540_v20 = vld [vmem:[#allocation8 + $0x78] sm:$0xff]  ;;  %v4549_v7 = vld [vmem:[#allocation8 + $0x50] sm:$0xff] }
 0x270   :  { %6174 = vst [vmem:[#allocation31_spill] sm:$0xff] %v4522_v24  ;;  %v4552_v8 = vld [vmem:[#allocation8 + $0x58] sm:$0xff] }
 0x271   :  { %6175 = vst [vmem:[#allocation32_spill] sm:$0xff] %v4525_v28 }
 0x272   :  { %6176 = vst [vmem:[#allocation34_spill] sm:$0xff] %v4528_v2 }
 0x273   :  { %6177 = vst [vmem:[#allocation33_spill] sm:$0xff] %v4531_v3 }
 0x274   :  { %v3270_v1 = vpop.eup %3269  ;;  %6178 = vst [vmem:[#allocation35_spill] sm:$0xff] %v4534_v4 }
 0x275   :  { %v4457_v10 = vmul.f32 %v3270_v1, %v864_v9  ;;  %6179 = vst [vmem:[#allocation36_spill] sm:$0xff] %v4537_v5  ;;  %v4555_v1 = vld [vmem:[#allocation8 + $0x20] sm:$0xff]  ;;  %v4558_v9 = vld [vmem:[#allocation8 + $0x28] sm:$0xff] }
 0x276   :  { %6180 = vst [vmem:[#allocation37_spill] sm:$0xff] %v4540_v20 }
 0x277   :  { %6161 = vst [vmem:[#allocation23_spill] sm:$0xff] %v4457_v10  ;;  %888 = vmatmul.f32.vlgmr.msra.gmra.mxu0 %v4457_v10  ;;  %908 = vmatmul.f32.vlgmr.msra.gmra.mxu1 %v4457_v10 }
 0x278   :  { %928 = vmatmul.f32.vlgmr.msra.gmra.mxu2 %v4457_v10  ;;  %948 = vmatmul.f32.vlgmr.msra.gmra.mxu3 %v4457_v10  ;;  %6182 = vst [vmem:[#allocation39_spill] sm:$0xff] %v4546_v27  ;;  %v4561_v10 = vld [vmem:[#allocation8 + $0x30] sm:$0xff] }
 0x279   :  { %1168 = vmatpush.msra.mxu0 %v4305_v61  ;;  %1188 = vmatpush.msra.mxu1 %v4308_v39  ;;  %6183 = vst [vmem:[#allocation40_spill] sm:$0xff] %v4549_v7 }
 0x27a   :  { %1208 = vmatpush.msra.mxu2 %v4311_v63  ;;  %1228 = vmatpush.msra.mxu3 %v4314_v51  ;;  %6184 = vst [vmem:[#allocation41_spill] sm:$0xff] %v4552_v8 }
 0x27b   :  { %1169 = vmatpush.msra.mxu0 %v4317_v30  ;;  %1189 = vmatpush.msra.mxu1 %v4320_v31  ;;  %6185 = vst [vmem:[#allocation42_spill] sm:$0xff] %v4555_v1 }
 0x27c   :  { %1209 = vmatpush.msra.mxu2 %v4323_v33  ;;  %1229 = vmatpush.msra.mxu3 %v4326_v34  ;;  %6186 = vst [vmem:[#allocation43_spill] sm:$0xff] %v4558_v9 }
 0x27d   :  { %1170 = vmatpush.msra.mxu0 %v4329_v35  ;;  %1190 = vmatpush.msra.mxu1 %v4332_v36  ;;  %6187 = vst [vmem:[#allocation44_spill] sm:$0xff] %v4561_v10 }
 0x27e   :  { %1210 = vmatpush.msra.mxu2 %v4335_v37  ;;  %1230 = vmatpush.msra.mxu3 %v4338_v38 }
 0x27f   :  { %1171 = vmatpush.msra.mxu0 %v4341_v40  ;;  %1191 = vmatpush.msra.mxu1 %v4344_v41 }
 0x280   :  { %1211 = vmatpush.msra.mxu2 %v4347_v43  ;;  %1231 = vmatpush.msra.mxu3 %v4350_v44 }
 0x281   :  { %1172 = vmatpush.msra.mxu0 %v4353_v45  ;;  %1192 = vmatpush.msra.mxu1 %v4356_v47 }
 0x282   :  { %1212 = vmatpush.msra.mxu2 %v4359_v54  ;;  %1232 = vmatpush.msra.mxu3 %v4362_v58 }
 0x283   :  { %1173 = vmatpush.msra.mxu0 %v4365_v0  ;;  %1193 = vmatpush.msra.mxu1 %v4368_v50 }
 0x284   :  { %1213 = vmatpush.msra.mxu2 %v4371_v55  ;;  %1233 = vmatpush.msra.mxu3 %v4374_v62 }
 0x285   :  { %1174 = vmatpush.msra.mxu0 %v4377_v53  ;;  %1194 = vmatpush.msra.mxu1 %v4380_v49 }
 0x286   :  { %1214 = vmatpush.msra.mxu2 %v4383_v13  ;;  %1234 = vmatpush.msra.mxu3 %v6162_v57 }
 0x287   :  { %1175 = vmatpush.msra.mxu0 %v6163_v25  ;;  %1195 = vmatpush.msra.mxu1 %v6164_v11 }
 0x288   :  { %1215 = vmatpush.msra.mxu2 %v6165_v12  ;;  %1235 = vmatpush.msra.mxu3 %v6166_v14 }
 0x289   :  { %1176 = vmatpush.msra.mxu0 %v4401_v26  ;;  %1196 = vmatpush.msra.mxu1 %v4404_v46 }
 0x28a   :  { %1216 = vmatpush.msra.mxu2 %v4407_v56  ;;  %1236 = vmatpush.msra.mxu3 %v4410_v48 }
 0x28b   :  { %1177 = vmatpush.msra.mxu0 %v4413_v59  ;;  %1197 = vmatpush.msra.mxu1 %v4416_v60 }
 0x28c   :  { %1217 = vmatpush.msra.mxu2 %v4501_v15  ;;  %1237 = vmatpush.msra.mxu3 %v4504_v16 }
 0x28d   :  { %1178 = vmatpush.msra.mxu0 %v4507_v17  ;;  %1198 = vmatpush.msra.mxu1 %v4510_v18 }
 0x28e   :  { %1218 = vmatpush.msra.mxu2 %v4513_v21  ;;  %1238 = vmatpush.msra.mxu3 %v4516_v22 }
 0x28f   :  { %1179 = vmatpush.msra.mxu0 %v4519_v23  ;;  %1199 = vmatpush.msra.mxu1 %v4522_v24 }
 0x290   :  { %1219 = vmatpush.msra.mxu2 %v4525_v28  ;;  %1239 = vmatpush.msra.mxu3 %v4528_v2  ;;  %v6195_v28 = vld [vmem:[#allocation54_spill] sm:$0xff] }
 0x291   :  { %1180 = vmatpush.msra.mxu0 %v4531_v3  ;;  %1200 = vmatpush.msra.mxu1 %v4534_v4 }
 0x292   :  { %1220 = vmatpush.msra.mxu2 %v4537_v5  ;;  %1240 = vmatpush.msra.mxu3 %v4540_v20 }
 0x293   :  { %1181 = vmatpush.msra.mxu0 %v4543_v6  ;;  %1201 = vmatpush.msra.mxu1 %v4546_v27  ;;  %v4564_v27 = vld [vmem:[#allocation8 + $0x38] sm:$0xff] }
 0x294   :  { %1221 = vmatpush.msra.mxu2 %v4549_v7  ;;  %1241 = vmatpush.msra.mxu3 %v4552_v8  ;;  %6188 = vst [vmem:[#allocation46_spill] sm:$0xff] %v4564_v27  ;;  %v4567_v7 = vld [vmem:[#allocation8] sm:$0xff]  ;;  %v4570_v8 = vld [vmem:[#allocation8 + $0x8] sm:$0xff] }
 0x295   :  { %1182 = vmatpush.msra.mxu0 %v4555_v1  ;;  %1202 = vmatpush.msra.mxu1 %v4558_v9  ;;  %6189 = vst [vmem:[#allocation45_spill] sm:$0xff] %v4567_v7  ;;  %v4573_v1 = vld [vmem:[#allocation8 + $0x10] sm:$0xff]  ;;  %v4576_v9 = vld [vmem:[#allocation8 + $0x18] sm:$0xff] }
 0x296   :  { %1222 = vmatpush.msra.mxu2 %v4561_v10  ;;  %1242 = vmatpush.msra.mxu3 %v4564_v27  ;;  %6190 = vst [vmem:[#allocation47_spill] sm:$0xff] %v4570_v8  ;;  %v6193_v10 = vld [vmem:[#allocation51_spill] sm:$0xff]  ;;  %v6194_v27 = vld [vmem:[#allocation52_spill] sm:$0xff] }
 0x297   :  { %1183 = vmatpush.msra.mxu0 %v4567_v7  ;;  %1203 = vmatpush.msra.mxu1 %v4570_v8  ;;  %6191 = vst [vmem:[#allocation48_spill] sm:$0xff] %v4573_v1  ;;  %v227_v6 = vadd.f32 %v6193_v10, %v6143_v29  ;;  %v268_v20 = vadd.f32 %v6194_v27, %v6145_v32 }
 0x298   :  { %1223 = vmatpush.msra.mxu2 %v4573_v1  ;;  %6192 = vst [vmem:[#allocation50_spill] sm:$0xff] %v4576_v9  ;;  %1243 = vmatpush.msra.mxu3 %v4576_v9  ;;  %v350_v1 = vadd.f32 %v6195_v28, %v6147_v42 }
 0x2f4   :  { %v889_v5 = vpop.f32.mrf.mxu0  ;;  %v909_v7 = vpop.f32.mrf.mxu1 }
 0x2f5   :  { %v952_v4 = vadd.f32 %v889_v5, %v227_v6  ;;  %v953_v3 = vadd.f32 %v909_v7, %v268_v20 }
 0x2f7   :  { %v3170_v2 = vmul.f32 -1.442695, %v952_v4  ;;  %v3171_v8 = vmul.f32 -1.442695, %v953_v3  ;;  %v6196_v4 = vld [vmem:[#allocation53_spill] sm:$0xff] }
 0x2f8   :  { %v309_v3 = vadd.f32 %v6196_v4, %v6149_v52 }
 0x2f9   :  { %3271 = vpow2.f32 %v3170_v2 }
 0x2fa   :  { %3273 = vpow2.f32 %v3171_v8 }
 0x2fb   :  { %v949_v24 = vpop.f32.mrf.mxu3  ;;  %v929_v27 = vpop.f32.mrf.mxu2 }
 0x2fc   :  { %v955_v23 = vadd.f32 %v949_v24, %v350_v1  ;;  %v954_v6 = vadd.f32 %v929_v27, %v309_v3 }
 0x2fe   :  { %v3172_v9 = vmul.f32 -1.442695, %v955_v23 }
 0x2ff   :  { %v3272_v22 = vpop.eup %3271 }
 0x300   :  { %v3274_v21 = vpop.eup %3273  ;;  %v959_v10 = vadd.f32 1.0, %v3272_v22  ;;  %3275 = vpow2.f32 %v3172_v9 }
 0x301   :  { %v978_v29 = vadd.f32 1.0, %v3274_v21 }
 0x302   :  { %3277 = vrcp.f32 %v959_v10  ;;  %v971_v1 = vand.u32 2147483648, %v959_v10  ;;  %v969_v9 = vand.u32 2147483647, %v959_v10  ;;  %vm965_vm6 = vweird.f32 %v959_v10 }
 0x303   :  { %3279 = vrcp.f32 %v978_v29  ;;  %v990_v22 = vand.u32 2147483648, %v978_v29  ;;  %v988_v32 = vand.u32 2147483647, %v978_v29  ;;  %vm984_vm7 = vweird.f32 %v978_v29 }
 0x304   :  { %v972_v27 = vor.u32 1.1754944e-38, %v971_v1  ;;  %vm970_vm10 = vcmp.eq.f32.partialorder %v969_v9, 8.507059e+37 }
 0x305   :  { %vm989_vm11 = vcmp.eq.f32.partialorder %v988_v32, 8.507059e+37 }
 0x306   :  { %v3276_v5 = vpop.eup %3275 }
 0x307   :  { %v998_v2 = vadd.f32 1.0, %v3276_v5 }
 0x308   :  { %v3278_v20 = vpop.eup %3277 }
 0x309   :  { %v3280_v28 = vpop.eup %3279  ;;  %v961_v7 = vmul.f32 %v3278_v20, %v959_v10  ;;  %3281 = vrcp.f32 %v998_v2  ;;  %vm966_vm4 = vweird.f32 %v3278_v20  ;;  %vm1004_vm13 = vweird.f32 %v998_v2 }
 0x30a   :  { %v980_v24 = vmul.f32 %v3280_v28, %v978_v29  ;;  %3283 = vtanh.f32 %v954_v6  ;;  %vm985_vm5 = vweird.f32 %v3280_v28  ;;  %vm967_vm8 = vmor %vm965_vm6, %vm966_vm4 }
 0x30b   :  { %v962_v23 = vsub.f32 1.0, %v961_v7  ;;  %vm986_vm9 = vmor %vm984_vm7, %vm985_vm5  ;;  %v991_v7 = vor.u32 1.1754944e-38, %v990_v22 }
 0x30c   :  { %v981_v8 = vsub.f32 1.0, %v980_v24 }
 0x30d   :  { %v963_v21 = vmul.f32 %v3278_v20, %v962_v23 }
 0x30e   :  { %v982_v42 = vmul.f32 %v3280_v28, %v981_v8 }
 0x30f   :  { %v3282_v18 = vpop.eup %3281  ;;  %v964_v4 = vadd.f32 %v3278_v20, %v963_v21 }
 0x310   :  { %v983_v5 = vadd.f32 %v3280_v28, %v982_v42  ;;  %v1000_v3 = vmul.f32 %v3282_v18, %v998_v2  ;;  %v3284_v6 = vpop.eup %3283  ;;  %vm1005_vm12 = vweird.f32 %v3282_v18  ;;  %v1010_v42 = vand.u32 2147483648, %v998_v2 }
 0x311   :  { %v968_v24 = vsel %vm967_vm8, %v3278_v20, %v964_v4  ;;  %v1008_v20 = vand.u32 2147483647, %v998_v2  ;;  %vm1006_vm14 = vmor %vm1004_vm13, %vm1005_vm12  ;;  %v6204_v2 = vld [vmem:[#allocation29_spill] sm:$0xff]  ;;  %v6205_v4 = vld [vmem:[#allocation31_spill] sm:$0xff] }
 0x312   :  { %v973_v52 = vsel %vm970_vm10, %v972_v27, %v968_v24  ;;  %v987_v23 = vsel %vm986_vm9, %v3280_v28, %v983_v5  ;;  %v1001_v17 = vsub.f32 1.0, %v1000_v3  ;;  %v1011_v22 = vor.u32 1.1754944e-38, %v1010_v42  ;;  %v6206_v27 = vld [vmem:[#allocation32_spill] sm:$0xff]  ;;  %v6207_v5 = vld [vmem:[#allocation34_spill] sm:$0xff]  ;;  %v6208_v3 = vld [vmem:[#allocation33_spill] sm:$0xff] }
 0x313   :  { %v992_v8 = vsel %vm989_vm11, %v991_v7, %v987_v23  ;;  %v1015_v16 = vmul.f32 %v3284_v6, %v973_v52  ;;  %vm1009_vm15 = vcmp.eq.f32.partialorder %v1008_v20, 8.507059e+37  ;;  %v6198_v52 = vld [vmem:[#allocation24_spill] sm:$0xff]  ;;  %v6209_v7 = vld [vmem:[#allocation35_spill] sm:$0xff]  ;;  %v6211_v6 = vld [vmem:[#allocation37_spill] sm:$0xff] }
 0x314   :  { %v1014_v15 = vmul.f32 %v992_v8, %v4454_v19  ;;  %v1002_v21 = vmul.f32 %v3282_v18, %v1001_v17  ;;  %v6199_v19 = vld [vmem:[#allocation26_spill] sm:$0xff]  ;;  %v6202_v17 = vld [vmem:[#allocation28_spill] sm:$0xff]  ;;  %v6213_v8 = vld [vmem:[#allocation39_spill] sm:$0xff] }
 0x315   :  { %v6210_v24 = vld [vmem:[#allocation36_spill] sm:$0xff]  ;;  %v6212_v23 = vld [vmem:[#allocation38_spill] sm:$0xff]  ;;  %v6217_v20 = vld [vmem:[#allocation43_spill] sm:$0xff] }
 0x316   :  { %v4588_v10 = vadd.f32 %v1015_v16, %v1014_v15  ;;  %v1003_v29 = vadd.f32 %v3282_v18, %v1002_v21  ;;  %v6200_v15 = vld [vmem:[#allocation25_spill] sm:$0xff]  ;;  %v6201_v16 = vld [vmem:[#allocation27_spill] sm:$0xff]  ;;  %v6214_v21 = vld [vmem:[#allocation40_spill] sm:$0xff] }
 0x317   :  { %v6216_v42 = vld [vmem:[#allocation42_spill] sm:$0xff] }
 0x318   :  { %3285 = vtanh.f32 %v4588_v10  ;;  %v1007_v1 = vsel %vm1006_vm14, %v3282_v18, %v1003_v29  ;;  %v6203_v18 = vld [vmem:[#allocation30_spill] sm:$0xff]  ;;  %v6215_v29 = vld [vmem:[#allocation41_spill] sm:$0xff] }
 0x319   :  { %v1012_v28 = vsel %vm1009_vm15, %v1011_v22, %v1007_v1  ;;  %v6218_v1 = vld [vmem:[#allocation44_spill] sm:$0xff]  ;;  %v6219_v22 = vld [vmem:[#allocation46_spill] sm:$0xff] }
 0x31e   :  { %v3286_v32 = vpop.eup %3285 }
 0x31f   :  { %v4591_v9 = vmul.f32 %v3286_v32, %v1012_v28  ;;  %v6220_v32 = vld [vmem:[#allocation45_spill] sm:$0xff]  ;;  %v6221_v28 = vld [vmem:[#allocation47_spill] sm:$0xff] }
 0x321   :  { %6197 = vst [vmem:[#allocation49_spill] sm:$0xff] %v4591_v9  ;;  %1036 = vmatmul.f32.vlgmr.msrb.gmra.mxu0 %v4591_v9  ;;  %1056 = vmatmul.f32.vlgmr.msrb.gmra.mxu1 %v4591_v9 }
 0x322   :  { %1076 = vmatmul.f32.vlgmr.msrb.gmra.mxu2 %v4591_v9  ;;  %1096 = vmatmul.f32.vlgmr.msrb.gmra.mxu3 %v4591_v9  ;;  %v6222_v9 = vld [vmem:[#allocation48_spill] sm:$0xff] }
 0x323   :  { %1316 = vmatpush.msrb.mxu0 %v4305_v61  ;;  %1336 = vmatpush.msrb.mxu1 %v4308_v39 }
 0x324   :  { %1356 = vmatpush.msrb.mxu2 %v4311_v63  ;;  %1376 = vmatpush.msrb.mxu3 %v4314_v51 }
 0x325   :  { %1317 = vmatpush.msrb.mxu0 %v4317_v30  ;;  %1337 = vmatpush.msrb.mxu1 %v4320_v31 }
 0x326   :  { %1357 = vmatpush.msrb.mxu2 %v4323_v33  ;;  %1377 = vmatpush.msrb.mxu3 %v4326_v34 }
 0x327   :  { %1318 = vmatpush.msrb.mxu0 %v4329_v35  ;;  %1338 = vmatpush.msrb.mxu1 %v4332_v36 }
 0x328   :  { %1358 = vmatpush.msrb.mxu2 %v4335_v37  ;;  %1378 = vmatpush.msrb.mxu3 %v4338_v38 }
 0x329   :  { %1319 = vmatpush.msrb.mxu0 %v4341_v40  ;;  %1339 = vmatpush.msrb.mxu1 %v4344_v41 }
 0x32a   :  { %1359 = vmatpush.msrb.mxu2 %v4347_v43  ;;  %1379 = vmatpush.msrb.mxu3 %v4350_v44 }
 0x32b   :  { %1320 = vmatpush.msrb.mxu0 %v4353_v45  ;;  %1340 = vmatpush.msrb.mxu1 %v4356_v47 }
 0x32c   :  { %1360 = vmatpush.msrb.mxu2 %v4359_v54  ;;  %1380 = vmatpush.msrb.mxu3 %v4362_v58 }
 0x32d   :  { %1321 = vmatpush.msrb.mxu0 %v4365_v0  ;;  %1341 = vmatpush.msrb.mxu1 %v4368_v50 }
 0x32e   :  { %1361 = vmatpush.msrb.mxu2 %v4371_v55  ;;  %1381 = vmatpush.msrb.mxu3 %v4374_v62 }
 0x32f   :  { %1322 = vmatpush.msrb.mxu0 %v4377_v53  ;;  %1342 = vmatpush.msrb.mxu1 %v4380_v49 }
 0x330   :  { %1362 = vmatpush.msrb.mxu2 %v4383_v13  ;;  %1382 = vmatpush.msrb.mxu3 %v6162_v57 }
 0x331   :  { %1323 = vmatpush.msrb.mxu0 %v6163_v25  ;;  %1343 = vmatpush.msrb.mxu1 %v6164_v11 }
 0x332   :  { %1363 = vmatpush.msrb.mxu2 %v6165_v12  ;;  %1383 = vmatpush.msrb.mxu3 %v6166_v14 }
 0x333   :  { %1324 = vmatpush.msrb.mxu0 %v4401_v26  ;;  %1344 = vmatpush.msrb.mxu1 %v4404_v46 }
 0x334   :  { %1364 = vmatpush.msrb.mxu2 %v4407_v56  ;;  %1384 = vmatpush.msrb.mxu3 %v4410_v48 }
 0x335   :  { %1325 = vmatpush.msrb.mxu0 %v4413_v59  ;;  %1345 = vmatpush.msrb.mxu1 %v4416_v60 }
 0x336   :  { %1365 = vmatpush.msrb.mxu2 %v6198_v52  ;;  %1385 = vmatpush.msrb.mxu3 %v6199_v19 }
 0x337   :  { %1326 = vmatpush.msrb.mxu0 %v6200_v15  ;;  %1346 = vmatpush.msrb.mxu1 %v6201_v16 }
 0x338   :  { %1366 = vmatpush.msrb.mxu2 %v6202_v17  ;;  %1386 = vmatpush.msrb.mxu3 %v6203_v18 }
 0x339   :  { %1327 = vmatpush.msrb.mxu0 %v6204_v2  ;;  %1347 = vmatpush.msrb.mxu1 %v6205_v4 }
 0x33a   :  { %1367 = vmatpush.msrb.mxu2 %v6206_v27  ;;  %1387 = vmatpush.msrb.mxu3 %v6207_v5  ;;  %v6229_v27 = vld [vmem:[#allocation57_spill] sm:$0xff] }
 0x33b   :  { %1328 = vmatpush.msrb.mxu0 %v6208_v3  ;;  %1348 = vmatpush.msrb.mxu1 %v6209_v7 }
 0x33c   :  { %1368 = vmatpush.msrb.mxu2 %v6210_v24  ;;  %1388 = vmatpush.msrb.mxu3 %v6211_v6  ;;  %v6227_v24 = vld [vmem:[#allocation56_spill] sm:$0xff] }
 0x33d   :  { %1329 = vmatpush.msrb.mxu0 %v6212_v23  ;;  %1349 = vmatpush.msrb.mxu1 %v6213_v8  ;;  %v6223_v23 = vld [vmem:[#allocation50_spill] sm:$0xff]  ;;  %v6224_v8 = vld [vmem:[#allocation68_spill] sm:$0xff] }
 0x33e   :  { %1369 = vmatpush.msrb.mxu2 %v6214_v21  ;;  %1389 = vmatpush.msrb.mxu3 %v6215_v29  ;;  %v6225_v21 = vld [vmem:[#allocation55_spill] sm:$0xff]  ;;  %v6226_v29 = vld [vmem:[#allocation69_spill] sm:$0xff] }
 0x33f   :  { %1330 = vmatpush.msrb.mxu0 %v6216_v42  ;;  %1350 = vmatpush.msrb.mxu1 %v6217_v20  ;;  %v230_v6 = vadd.f32 %v6225_v21, %v6224_v8  ;;  %v271_v42 = vadd.f32 %v6227_v24, %v6226_v29 }
 0x340   :  { %1370 = vmatpush.msrb.mxu2 %v6218_v1  ;;  %1390 = vmatpush.msrb.mxu3 %v6219_v22 }
 0x341   :  { %1331 = vmatpush.msrb.mxu0 %v6220_v32  ;;  %1351 = vmatpush.msrb.mxu1 %v6221_v28  ;;  %v6228_v32 = vld [vmem:[#allocation72_spill] sm:$0xff] }
 0x342   :  { %1371 = vmatpush.msrb.mxu2 %v6222_v9  ;;  %1391 = vmatpush.msrb.mxu3 %v6223_v23  ;;  %v353_v28 = vadd.f32 %v6229_v27, %v6228_v32 }
 0x39e   :  { %v1037_v7 = vpop.f32.mrf.mxu0  ;;  %v1057_v20 = vpop.f32.mrf.mxu1 }
 0x39f   :  { %v1100_v3 = vadd.f32 %v1037_v7, %v230_v6  ;;  %v1101_v1 = vadd.f32 %v1057_v20, %v271_v42  ;;  %v6230_v6 = vld [vmem:[#allocation74_spill] sm:$0xff] }
 0x3a1   :  { %v3173_v5 = vmul.f32 -1.442695, %v1100_v3  ;;  %v3174_v22 = vmul.f32 -1.442695, %v1101_v1  ;;  %v6231_v3 = vld [vmem:[#allocation60_spill] sm:$0xff] }
 0x3a2   :  { %v312_v42 = vadd.f32 %v6231_v3, %v6230_v6 }
 0x3a3   :  { %3287 = vpow2.f32 %v3173_v5 }
 0x3a4   :  { %3289 = vpow2.f32 %v3174_v22 }
 0x3a5   :  { %v1097_v9 = vpop.f32.mrf.mxu3  ;;  %v1077_v24 = vpop.f32.mrf.mxu2 }
 0x3a6   :  { %v1103_v4 = vadd.f32 %v1097_v9, %v353_v28  ;;  %v1102_v1 = vadd.f32 %v1077_v24, %v312_v42 }
 0x3a8   :  { %v3175_v23 = vmul.f32 -1.442695, %v1103_v4 }
 0x3a9   :  { %v3288_v2 = vpop.eup %3287 }
 0x3aa   :  { %v3290_v18 = vpop.eup %3289  ;;  %v1107_v21 = vadd.f32 1.0, %v3288_v2  ;;  %3291 = vpow2.f32 %v3175_v23 }
 0x3ab   :  { %v1126_v8 = vadd.f32 1.0, %v3290_v18 }
 0x3ac   :  { %3293 = vrcp.f32 %v1107_v21  ;;  %v1119_v32 = vand.u32 2147483648, %v1107_v21  ;;  %v1117_v23 = vand.u32 2147483647, %v1107_v21  ;;  %vm1113_vm2 = vweird.f32 %v1107_v21 }
 0x3ad   :  { %3295 = vrcp.f32 %v1126_v8  ;;  %v1138_v2 = vand.u32 2147483648, %v1126_v8  ;;  %v1136_v17 = vand.u32 2147483647, %v1126_v8  ;;  %vm1132_vm3 = vweird.f32 %v1126_v8 }
 0x3ae   :  { %v1120_v24 = vor.u32 1.1754944e-38, %v1119_v32  ;;  %vm1118_vm6 = vcmp.eq.f32.partialorder %v1117_v23, 8.507059e+37 }
 0x3af   :  { %vm1137_vm7 = vcmp.eq.f32.partialorder %v1136_v17, 8.507059e+37 }
 0x3b0   :  { %v3292_v7 = vpop.eup %3291 }
 0x3b1   :  { %v1146_v5 = vadd.f32 1.0, %v3292_v7 }
 0x3b2   :  { %v3294_v20 = vpop.eup %3293 }
 0x3b3   :  { %v3296_v27 = vpop.eup %3295  ;;  %v1109_v22 = vmul.f32 %v3294_v20, %v1107_v21  ;;  %3297 = vrcp.f32 %v1146_v5  ;;  %vm1114_vm0 = vweird.f32 %v3294_v20  ;;  %vm1152_vm9 = vweird.f32 %v1146_v5 }
 0x3b4   :  { %v1128_v9 = vmul.f32 %v3296_v27, %v1126_v8  ;;  %3299 = vtanh.f32 %v1102_v1  ;;  %vm1133_vm1 = vweird.f32 %v3296_v27  ;;  %vm1115_vm4 = vmor %vm1113_vm2, %vm1114_vm0  ;;  %v1156_v32 = vand.u32 2147483647, %v1146_v5 }
 0x3b5   :  { %v1110_v4 = vsub.f32 1.0, %v1109_v22  ;;  %vm1134_vm5 = vmor %vm1132_vm3, %vm1133_vm1  ;;  %v1139_v22 = vor.u32 1.1754944e-38, %v1138_v2 }
 0x3b6   :  { %v1129_v28 = vsub.f32 1.0, %v1128_v9  ;;  %vm1157_vm11 = vcmp.eq.f32.partialorder %v1156_v32, 8.507059e+37 }
 0x3b7   :  { %v1111_v18 = vmul.f32 %v3294_v20, %v1110_v4 }
 0x3b8   :  { %v1130_v29 = vmul.f32 %v3296_v27, %v1129_v28 }
 0x3b9   :  { %v3298_v16 = vpop.eup %3297  ;;  %v1112_v3 = vadd.f32 %v3294_v20, %v1111_v18 }
 0x3ba   :  { %v1131_v7 = vadd.f32 %v3296_v27, %v1130_v29  ;;  %v1148_v42 = vmul.f32 %v3298_v16, %v1146_v5  ;;  %v3300_v1 = vpop.eup %3299  ;;  %vm1153_vm8 = vweird.f32 %v3298_v16  ;;  %v1158_v29 = vand.u32 2147483648, %v1146_v5 }
 0x3bb   :  { %v1116_v9 = vsel %vm1115_vm4, %v3294_v20, %v1112_v3  ;;  %vm1154_vm10 = vmor %vm1152_vm9, %vm1153_vm8 }
 0x3bc   :  { %v1121_v6 = vsel %vm1118_vm6, %v1120_v24, %v1116_v9  ;;  %v1135_v4 = vsel %vm1134_vm5, %v3296_v27, %v1131_v7  ;;  %v1149_v15 = vsub.f32 1.0, %v1148_v42  ;;  %v1159_v2 = vor.u32 1.1754944e-38, %v1158_v29  ;;  %v6264_v9 = vld [vmem:[#allocation74_spill] sm:$0xff] }
 0x3bd   :  { %v1140_v28 = vsel %vm1137_vm7, %v1139_v22, %v1135_v4  ;;  %v1163_v19 = vmul.f32 %v3300_v1, %v1121_v6  ;;  %v6265_v1 = vld [vmem:[#allocation64_spill] sm:$0xff] }
 0x3be   :  { %v1162_v52 = vmul.f32 %v1140_v28, %v4588_v10  ;;  %v1150_v18 = vmul.f32 %v3298_v16, %v1149_v15  ;;  %v6262_v10 = vld [vmem:[#allocation72_spill] sm:$0xff]  ;;  %v315_v4 = vadd.f32 %v6265_v1, %v6264_v9  ;;  %v6266_v1 = vld [vmem:[#allocation62_spill] sm:$0xff] }
 0x3c0   :  { %v4670_v21 = vadd.f32 %v1163_v19, %v1162_v52  ;;  %v1151_v8 = vadd.f32 %v3298_v16, %v1150_v18  ;;  %v6263_v52 = vld [vmem:[#allocation61_spill] sm:$0xff] }
 0x3c1   :  { %v356_v19 = vadd.f32 %v6263_v52, %v6262_v10  ;;  %v1673_v52 = vld [vmem:[#allocation6 + $0x3a0] sm:$0xff] }
 0x3c2   :  { %3301 = vtanh.f32 %v4670_v21  ;;  %v1155_v20 = vsel %vm1154_vm10, %v3298_v16, %v1151_v8 }
 0x3c3   :  { %v1160_v27 = vsel %vm1157_vm11, %v1159_v2, %v1155_v20 }
 0x3c8   :  { %v3302_v17 = vpop.eup %3301 }
 0x3c9   :  { %v4673_v23 = vmul.f32 %v3302_v17, %v1160_v27 }
 0x3cb   :  { %1184 = vmatmul.f32.vlgmr.msra.gmra.mxu0 %v4673_v23  ;;  %1204 = vmatmul.f32.vlgmr.msra.gmra.mxu1 %v4673_v23 }
 0x3cc   :  { %1224 = vmatmul.f32.vlgmr.msra.gmra.mxu2 %v4673_v23  ;;  %1244 = vmatmul.f32.vlgmr.msra.gmra.mxu3 %v4673_v23 }
 0x3cd   :  { %1464 = vmatpush.msra.mxu0 %v4305_v61  ;;  %1484 = vmatpush.msra.mxu1 %v4308_v39  ;;  %v6232_v61 = vld [vmem:[#allocation24_spill] sm:$0xff]  ;;  %v6233_v39 = vld [vmem:[#allocation26_spill] sm:$0xff] }
 0x3ce   :  { %1504 = vmatpush.msra.mxu2 %v4311_v63  ;;  %1524 = vmatpush.msra.mxu3 %v4314_v51  ;;  %v6234_v63 = vld [vmem:[#allocation25_spill] sm:$0xff]  ;;  %v6235_v51 = vld [vmem:[#allocation27_spill] sm:$0xff] }
 0x3cf   :  { %1465 = vmatpush.msra.mxu0 %v4317_v30  ;;  %1485 = vmatpush.msra.mxu1 %v4320_v31  ;;  %v6236_v30 = vld [vmem:[#allocation28_spill] sm:$0xff]  ;;  %v6238_v31 = vld [vmem:[#allocation29_spill] sm:$0xff] }
 0x3d0   :  { %1505 = vmatpush.msra.mxu2 %v4323_v33  ;;  %1525 = vmatpush.msra.mxu3 %v4326_v34  ;;  %v6239_v33 = vld [vmem:[#allocation31_spill] sm:$0xff]  ;;  %v6240_v34 = vld [vmem:[#allocation32_spill] sm:$0xff] }
 0x3d1   :  { %1466 = vmatpush.msra.mxu0 %v4329_v35  ;;  %1486 = vmatpush.msra.mxu1 %v4332_v36  ;;  %v6241_v35 = vld [vmem:[#allocation34_spill] sm:$0xff]  ;;  %v6243_v36 = vld [vmem:[#allocation35_spill] sm:$0xff] }
 0x3d2   :  { %1506 = vmatpush.msra.mxu2 %v4335_v37  ;;  %1526 = vmatpush.msra.mxu3 %v4338_v38  ;;  %v6244_v37 = vld [vmem:[#allocation36_spill] sm:$0xff]  ;;  %v6245_v38 = vld [vmem:[#allocation37_spill] sm:$0xff] }
 0x3d3   :  { %1467 = vmatpush.msra.mxu0 %v4341_v40  ;;  %1487 = vmatpush.msra.mxu1 %v4344_v41  ;;  %v6246_v40 = vld [vmem:[#allocation38_spill] sm:$0xff]  ;;  %v6247_v41 = vld [vmem:[#allocation39_spill] sm:$0xff] }
 0x3d4   :  { %1507 = vmatpush.msra.mxu2 %v4347_v43  ;;  %1527 = vmatpush.msra.mxu3 %v4350_v44  ;;  %v6248_v43 = vld [vmem:[#allocation40_spill] sm:$0xff]  ;;  %v6249_v44 = vld [vmem:[#allocation41_spill] sm:$0xff] }
 0x3d5   :  { %1468 = vmatpush.msra.mxu0 %v4353_v45  ;;  %1488 = vmatpush.msra.mxu1 %v4356_v47  ;;  %v6250_v45 = vld [vmem:[#allocation42_spill] sm:$0xff]  ;;  %v6251_v47 = vld [vmem:[#allocation43_spill] sm:$0xff] }
 0x3d6   :  { %1508 = vmatpush.msra.mxu2 %v4359_v54  ;;  %1528 = vmatpush.msra.mxu3 %v4362_v58  ;;  %v6252_v54 = vld [vmem:[#allocation44_spill] sm:$0xff]  ;;  %v6253_v58 = vld [vmem:[#allocation46_spill] sm:$0xff] }
 0x3d7   :  { %1469 = vmatpush.msra.mxu0 %v4365_v0  ;;  %1489 = vmatpush.msra.mxu1 %v4368_v50  ;;  %v6254_v0 = vld [vmem:[#allocation45_spill] sm:$0xff]  ;;  %v6255_v50 = vld [vmem:[#allocation47_spill] sm:$0xff] }
 0x3d8   :  { %1509 = vmatpush.msra.mxu2 %v4371_v55  ;;  %1529 = vmatpush.msra.mxu3 %v4374_v62  ;;  %v6256_v55 = vld [vmem:[#allocation48_spill] sm:$0xff]  ;;  %v6257_v62 = vld [vmem:[#allocation50_spill] sm:$0xff] }
 0x3d9   :  { %1470 = vmatpush.msra.mxu0 %v4377_v53  ;;  %1490 = vmatpush.msra.mxu1 %v4380_v49  ;;  %v6258_v53 = vld [vmem:[#allocation68_spill] sm:$0xff]  ;;  %v6259_v49 = vld [vmem:[#allocation58_spill] sm:$0xff] }
 0x3da   :  { %1510 = vmatpush.msra.mxu2 %v4383_v13  ;;  %1530 = vmatpush.msra.mxu3 %v6162_v57  ;;  %v233_v13 = vadd.f32 %v6259_v49, %v6258_v53 }
 0x3db   :  { %1471 = vmatpush.msra.mxu0 %v6163_v25  ;;  %1491 = vmatpush.msra.mxu1 %v6164_v11 }
 0x3dc   :  { %1511 = vmatpush.msra.mxu2 %v6165_v12  ;;  %1531 = vmatpush.msra.mxu3 %v6166_v14 }
 0x3dd   :  { %1472 = vmatpush.msra.mxu0 %v4401_v26  ;;  %1492 = vmatpush.msra.mxu1 %v4404_v46  ;;  %v6237_v26 = vld [vmem:[#allocation30_spill] sm:$0xff]  ;;  %v6260_v46 = vld [vmem:[#allocation69_spill] sm:$0xff] }
 0x3de   :  { %1512 = vmatpush.msra.mxu2 %v4407_v56  ;;  %1532 = vmatpush.msra.mxu3 %v4410_v48  ;;  %v6261_v56 = vld [vmem:[#allocation59_spill] sm:$0xff] }
 0x3df   :  { %1473 = vmatpush.msra.mxu0 %v4413_v59  ;;  %1493 = vmatpush.msra.mxu1 %v4416_v60  ;;  %v6242_v60 = vld [vmem:[#allocation33_spill] sm:$0xff]  ;;  %v274_v48 = vadd.f32 %v6261_v56, %v6260_v46 }
 0x3e0   :  { %1513 = vmatpush.msra.mxu2 %v6232_v61  ;;  %1533 = vmatpush.msra.mxu3 %v6233_v39 }
 0x3e1   :  { %1474 = vmatpush.msra.mxu0 %v6234_v63  ;;  %1494 = vmatpush.msra.mxu1 %v6235_v51 }
 0x3e2   :  { %1514 = vmatpush.msra.mxu2 %v6236_v30  ;;  %1534 = vmatpush.msra.mxu3 %v6237_v26 }
 0x3e3   :  { %1475 = vmatpush.msra.mxu0 %v6238_v31  ;;  %1495 = vmatpush.msra.mxu1 %v6239_v33 }
 0x3e4   :  { %1515 = vmatpush.msra.mxu2 %v6240_v34  ;;  %1535 = vmatpush.msra.mxu3 %v6241_v35 }
 0x3e5   :  { %1476 = vmatpush.msra.mxu0 %v6242_v60  ;;  %1496 = vmatpush.msra.mxu1 %v6243_v36 }
 0x3e6   :  { %1516 = vmatpush.msra.mxu2 %v6244_v37  ;;  %1536 = vmatpush.msra.mxu3 %v6245_v38 }
 0x3e7   :  { %1477 = vmatpush.msra.mxu0 %v6246_v40  ;;  %1497 = vmatpush.msra.mxu1 %v6247_v41 }
 0x3e8   :  { %1517 = vmatpush.msra.mxu2 %v6248_v43  ;;  %1537 = vmatpush.msra.mxu3 %v6249_v44 }
 0x3e9   :  { %1478 = vmatpush.msra.mxu0 %v6250_v45  ;;  %1498 = vmatpush.msra.mxu1 %v6251_v47 }
 0x3ea   :  { %1518 = vmatpush.msra.mxu2 %v6252_v54  ;;  %1538 = vmatpush.msra.mxu3 %v6253_v58 }
 0x3eb   :  { %1479 = vmatpush.msra.mxu0 %v6254_v0  ;;  %1499 = vmatpush.msra.mxu1 %v6255_v50 }
 0x3ec   :  { %1519 = vmatpush.msra.mxu2 %v6256_v55  ;;  %1539 = vmatpush.msra.mxu3 %v6257_v62 }
 0x448   :  { %v1185_v59 = vpop.f32.mrf.mxu0  ;;  %v1205_v57 = vpop.f32.mrf.mxu1 }
 0x449   :  { %v1248_v25 = vadd.f32 %v1185_v59, %v233_v13  ;;  %v1249_v11 = vadd.f32 %v1205_v57, %v274_v48  ;;  %v1682_v48 = vld [vmem:[#allocation6 + $0x3e8] sm:$0xff]  ;;  %v1683_v59 = vld [vmem:[#allocation6 + $0x3f0] sm:$0xff]  ;;  %v1684_v57 = vld [vmem:[#allocation6 + $0x3f8] sm:$0xff] }
 0x44b   :  { %v3176_v12 = vmul.f32 -1.442695, %v1248_v25  ;;  %v3177_v14 = vmul.f32 -1.442695, %v1249_v11  ;;  %v1677_v25 = vld [vmem:[#allocation6 + $0x3c0] sm:$0xff]  ;;  %v1678_v11 = vld [vmem:[#allocation6 + $0x3c8] sm:$0xff] }
 0x44d   :  { %3303 = vpow2.f32 %v3176_v12  ;;  %v1679_v12 = vld [vmem:[#allocation6 + $0x3d0] sm:$0xff] }
 0x44e   :  { %3305 = vpow2.f32 %v3177_v14  ;;  %v1680_v14 = vld [vmem:[#allocation6 + $0x3d8] sm:$0xff] }
 0x44f   :  { %v1245_v15 = vpop.f32.mrf.mxu3  ;;  %v1225_v42 = vpop.f32.mrf.mxu2 }
 0x450   :  { %v1251_v16 = vadd.f32 %v1245_v15, %v356_v19  ;;  %v1250_v8 = vadd.f32 %v1225_v42, %v315_v4  ;;  %v1674_v19 = vld [vmem:[#allocation6 + $0x3a8] sm:$0xff]  ;;  %v1675_v15 = vld [vmem:[#allocation6 + $0x3b0] sm:$0xff]  ;;  %v236_v4 = vadd.f32 %v6266_v1, %v6258_v53 }
 0x451   :  { %v1666_v42 = vld [vmem:[#allocation6 + $0x368] sm:$0xff] }
 0x452   :  { %v3178_v6 = vmul.f32 -1.442695, %v1251_v16  ;;  %v1676_v16 = vld [vmem:[#allocation6 + $0x3b8] sm:$0xff] }
 0x453   :  { %v3304_v5 = vpop.eup %3303 }
 0x454   :  { %v3306_v3 = vpop.eup %3305  ;;  %v1255_v24 = vadd.f32 1.0, %v3304_v5  ;;  %3307 = vpow2.f32 %v3178_v6  ;;  %v1669_v6 = vld [vmem:[#allocation6 + $0x380] sm:$0xff]  ;;  %v1670_v5 = vld [vmem:[#allocation6 + $0x388] sm:$0xff] }
 0x455   :  { %v1274_v7 = vadd.f32 1.0, %v3306_v3  ;;  %v1671_v3 = vld [vmem:[#allocation6 + $0x390] sm:$0xff] }
 0x456   :  { %3309 = vrcp.f32 %v1255_v24  ;;  %v1267_v27 = vand.u32 2147483648, %v1255_v24  ;;  %v1265_v63 = vand.u32 2147483647, %v1255_v24  ;;  %vm1261_vm14 = vweird.f32 %v1255_v24 }
 0x457   :  { %3311 = vrcp.f32 %v1274_v7  ;;  %v1286_v61 = vand.u32 2147483648, %v1274_v7  ;;  %v1284_v30 = vand.u32 2147483647, %v1274_v7  ;;  %vm1280_vm15 = vweird.f32 %v1274_v7 }
 0x458   :  { %v1268_v33 = vor.u32 1.1754944e-38, %v1267_v27  ;;  %vm1266_vm2 = vcmp.eq.f32.partialorder %v1265_v63, 8.507059e+37  ;;  %v1657_v63 = vld [vmem:[#allocation6 + $0x320] sm:$0xff] }
 0x459   :  { %v1287_v60 = vor.u32 1.1754944e-38, %v1286_v61  ;;  %vm1285_vm3 = vcmp.eq.f32.partialorder %v1284_v30, 8.507059e+37  ;;  %v1659_v30 = vld [vmem:[#allocation6 + $0x330] sm:$0xff] }
 0x45a   :  { %v3308_v22 = vpop.eup %3307 }
 0x45b   :  { %v1294_v28 = vadd.f32 1.0, %v3308_v22  ;;  %v1667_v22 = vld [vmem:[#allocation6 + $0x370] sm:$0xff] }
 0x45c   :  { %v3310_v18 = vpop.eup %3309 }
 0x45d   :  { %v3312_v29 = vpop.eup %3311  ;;  %v1257_v32 = vmul.f32 %v3310_v18, %v1255_v24  ;;  %3313 = vrcp.f32 %v1294_v28  ;;  %vm1262_vm12 = vweird.f32 %v3310_v18  ;;  %v1306_v0 = vand.u32 2147483648, %v1294_v28  ;;  %v1672_v24 = vld [vmem:[#allocation6 + $0x398] sm:$0xff] }
 0x45e   :  { %v1276_v20 = vmul.f32 %v3312_v29, %v1274_v7  ;;  %3315 = vtanh.f32 %v1250_v8  ;;  %vm1281_vm13 = vweird.f32 %v3312_v29  ;;  %vm1263_vm0 = vmor %vm1261_vm14, %vm1262_vm12  ;;  %vm1300_vm5 = vweird.f32 %v1294_v28  ;;  %v1665_v7 = vld [vmem:[#allocation6 + $0x360] sm:$0xff]  ;;  %v1668_v8 = vld [vmem:[#allocation6 + $0x378] sm:$0xff] }
 0x45f   :  { %v1258_v2 = vsub.f32 1.0, %v1257_v32  ;;  %vm1282_vm1 = vmor %vm1280_vm15, %vm1281_vm13  ;;  %v1304_v50 = vand.u32 2147483647, %v1294_v28  ;;  %v1307_v62 = vor.u32 1.1754944e-38, %v1306_v0  ;;  %v1646_v0 = vld [vmem:[#allocation6 + $0x2c8] sm:$0xff] }
 0x460   :  { %v1277_v17 = vsub.f32 1.0, %v1276_v20  ;;  %v1661_v20 = vld [vmem:[#allocation6 + $0x340] sm:$0xff] }
 0x461   :  { %v1259_v39 = vmul.f32 %v3310_v18, %v1258_v2  ;;  %vm1305_vm7 = vcmp.eq.f32.partialorder %v1304_v50, 8.507059e+37  ;;  %v1662_v2 = vld [vmem:[#allocation6 + $0x348] sm:$0xff]  ;;  %v1647_v50 = vld [vmem:[#allocation6 + $0x2d0] sm:$0xff] }
 0x462   :  { %v1278_v51 = vmul.f32 %v3312_v29, %v1277_v17  ;;  %v1663_v17 = vld [vmem:[#allocation6 + $0x350] sm:$0xff] }
 0x463   :  { %v3314_v26 = vpop.eup %3313  ;;  %v1260_v31 = vadd.f32 %v3310_v18, %v1259_v39  ;;  %v1664_v39 = vld [vmem:[#allocation6 + $0x358] sm:$0xff] }
 0x464   :  { %v1279_v34 = vadd.f32 %v3312_v29, %v1278_v51  ;;  %v1296_v35 = vmul.f32 %v3314_v26, %v1294_v28  ;;  %v3316_v37 = vpop.eup %3315  ;;  %vm1301_vm4 = vweird.f32 %v3314_v26  ;;  %v6267_v28 = vld [vmem:[#allocation63_spill] sm:$0xff]  ;;  %v1658_v51 = vld [vmem:[#allocation6 + $0x328] sm:$0xff] }
 0x465   :  { %v1264_v36 = vsel %vm1263_vm0, %v3310_v18, %v1260_v31  ;;  %vm1302_vm6 = vmor %vm1300_vm5, %vm1301_vm4  ;;  %v277_v18 = vadd.f32 %v6267_v28, %v6260_v46  ;;  %v1627_v28 = vld [vmem:[#allocation6 + $0x230] sm:$0xff] }
 0x466   :  { %v1269_v38 = vsel %vm1266_vm2, %v1268_v33, %v1264_v36  ;;  %v1283_v40 = vsel %vm1282_vm1, %v3312_v29, %v1279_v34  ;;  %v1297_v41 = vsub.f32 1.0, %v1296_v35  ;;  %v1660_v33 = vld [vmem:[#allocation6 + $0x338] sm:$0xff]  ;;  %v1653_v34 = vld [vmem:[#allocation6 + $0x300] sm:$0xff]  ;;  %v1654_v35 = vld [vmem:[#allocation6 + $0x308] sm:$0xff] }
 0x467   :  { %v1288_v43 = vsel %vm1285_vm3, %v1287_v60, %v1283_v40  ;;  %v1311_v44 = vmul.f32 %v3316_v37, %v1269_v38  ;;  %v1655_v60 = vld [vmem:[#allocation6 + $0x310] sm:$0xff]  ;;  %v1656_v36 = vld [vmem:[#allocation6 + $0x318] sm:$0xff]  ;;  %v1649_v40 = vld [vmem:[#allocation6 + $0x2e0] sm:$0xff] }
 0x468   :  { %v1310_v45 = vmul.f32 %v1288_v43, %v4670_v21  ;;  %v1298_v47 = vmul.f32 %v3314_v26, %v1297_v41  ;;  %v1681_v21 = vld [vmem:[#allocation6 + $0x3e0] sm:$0xff]  ;;  %v6268_v37 = vld [vmem:[#allocation65_spill] sm:$0xff]  ;;  %v1650_v41 = vld [vmem:[#allocation6 + $0x2e8] sm:$0xff] }
 0x469   :  { %v359_v38 = vadd.f32 %v6268_v37, %v6262_v10  ;;  %v1651_v43 = vld [vmem:[#allocation6 + $0x2f0] sm:$0xff] }
 0x46a   :  { %v4752_v54 = vadd.f32 %v1311_v44, %v1310_v45  ;;  %v1299_v58 = vadd.f32 %v3314_v26, %v1298_v47  ;;  %v1652_v45 = vld [vmem:[#allocation6 + $0x2f8] sm:$0xff] }
 0x46c   :  { %3317 = vtanh.f32 %v4752_v54  ;;  %v1303_v55 = vsel %vm1302_vm6, %v3314_v26, %v1299_v58  ;;  %v1645_v58 = vld [vmem:[#allocation6 + $0x2c0] sm:$0xff] }
 0x46d   :  { %v1308_v13 = vsel %vm1305_vm7, %v1307_v62, %v1303_v55  ;;  %v1648_v55 = vld [vmem:[#allocation6 + $0x2d8] sm:$0xff] }
 0x472   :  { %v3318_v49 = vpop.eup %3317 }
 0x473   :  { %v4755_v56 = vmul.f32 %v3318_v49, %v1308_v13  ;;  %v1641_v49 = vld [vmem:[#allocation6 + $0x2a0] sm:$0xff]  ;;  %v1642_v13 = vld [vmem:[#allocation6 + $0x2a8] sm:$0xff] }
 0x475   :  { %1332 = vmatmul.f32.vlgmr.msrb.gmra.mxu0 %v4755_v56  ;;  %1352 = vmatmul.f32.vlgmr.msrb.gmra.mxu1 %v4755_v56 }
 0x476   :  { %1372 = vmatmul.f32.vlgmr.msrb.gmra.mxu2 %v4755_v56  ;;  %1392 = vmatmul.f32.vlgmr.msrb.gmra.mxu3 %v4755_v56 }
 0x477   :  { %1696 = vmatpush.msrb.mxu0 %v1681_v21  ;;  %1737 = vmatpush.msrb.mxu1 %v1682_v48  ;;  %v1643_v21 = vld [vmem:[#allocation6 + $0x2b0] sm:$0xff] }
 0x478   :  { %1778 = vmatpush.msrb.mxu2 %v1683_v59  ;;  %1819 = vmatpush.msrb.mxu3 %v1684_v57  ;;  %v1644_v59 = vld [vmem:[#allocation6 + $0x2b8] sm:$0xff]  ;;  %v1637_v57 = vld [vmem:[#allocation6 + $0x280] sm:$0xff] }
 0x479   :  { %1697 = vmatpush.msrb.mxu0 %v1677_v25  ;;  %1738 = vmatpush.msrb.mxu1 %v1678_v11  ;;  %v1638_v25 = vld [vmem:[#allocation6 + $0x288] sm:$0xff] }
 0x47a   :  { %1779 = vmatpush.msrb.mxu2 %v1679_v12  ;;  %1820 = vmatpush.msrb.mxu3 %v1680_v14  ;;  %v1639_v14 = vld [vmem:[#allocation6 + $0x290] sm:$0xff] }
 0x47b   :  { %1698 = vmatpush.msrb.mxu0 %v1673_v52  ;;  %1739 = vmatpush.msrb.mxu1 %v1674_v19  ;;  %v1640_v52 = vld [vmem:[#allocation6 + $0x298] sm:$0xff] }
 0x47c   :  { %1780 = vmatpush.msrb.mxu2 %v1675_v15  ;;  %1821 = vmatpush.msrb.mxu3 %v1676_v16  ;;  %v1633_v15 = vld [vmem:[#allocation6 + $0x260] sm:$0xff]  ;;  %v1634_v16 = vld [vmem:[#allocation6 + $0x268] sm:$0xff] }
 0x47d   :  { %1699 = vmatpush.msrb.mxu0 %v1669_v6  ;;  %1740 = vmatpush.msrb.mxu1 %v1670_v5  ;;  %v1635_v6 = vld [vmem:[#allocation6 + $0x270] sm:$0xff]  ;;  %v1636_v5 = vld [vmem:[#allocation6 + $0x278] sm:$0xff] }
 0x47e   :  { %1781 = vmatpush.msrb.mxu2 %v1671_v3  ;;  %1822 = vmatpush.msrb.mxu3 %v1672_v24  ;;  %v1629_v3 = vld [vmem:[#allocation6 + $0x240] sm:$0xff]  ;;  %v1630_v24 = vld [vmem:[#allocation6 + $0x248] sm:$0xff] }
 0x47f   :  { %1700 = vmatpush.msrb.mxu0 %v1665_v7  ;;  %1741 = vmatpush.msrb.mxu1 %v1666_v42  ;;  %v1631_v7 = vld [vmem:[#allocation6 + $0x250] sm:$0xff]  ;;  %v1632_v42 = vld [vmem:[#allocation6 + $0x258] sm:$0xff] }
 0x480   :  { %1782 = vmatpush.msrb.mxu2 %v1667_v22  ;;  %1823 = vmatpush.msrb.mxu3 %v1668_v8  ;;  %v1625_v22 = vld [vmem:[#allocation6 + $0x220] sm:$0xff] }
 0x481   :  { %1701 = vmatpush.msrb.mxu0 %v1661_v20  ;;  %1742 = vmatpush.msrb.mxu1 %v1662_v2  ;;  %v1621_v20 = vld [vmem:[#allocation6 + $0x200] sm:$0xff]  ;;  %v1622_v2 = vld [vmem:[#allocation6 + $0x208] sm:$0xff] }
 0x482   :  { %1783 = vmatpush.msrb.mxu2 %v1663_v17  ;;  %1824 = vmatpush.msrb.mxu3 %v1664_v39 }
 0x483   :  { %1702 = vmatpush.msrb.mxu0 %v1657_v63  ;;  %1743 = vmatpush.msrb.mxu1 %v1658_v51 }
 0x484   :  { %1784 = vmatpush.msrb.mxu2 %v1659_v30  ;;  %1825 = vmatpush.msrb.mxu3 %v1660_v33 }
 0x485   :  { %1703 = vmatpush.msrb.mxu0 %v1653_v34  ;;  %1744 = vmatpush.msrb.mxu1 %v1654_v35 }
 0x486   :  { %1785 = vmatpush.msrb.mxu2 %v1655_v60  ;;  %1826 = vmatpush.msrb.mxu3 %v1656_v36 }
 0x487   :  { %1704 = vmatpush.msrb.mxu0 %v1649_v40  ;;  %1745 = vmatpush.msrb.mxu1 %v1650_v41 }
 0x488   :  { %1786 = vmatpush.msrb.mxu2 %v1651_v43  ;;  %1827 = vmatpush.msrb.mxu3 %v1652_v45 }
 0x489   :  { %1705 = vmatpush.msrb.mxu0 %v1645_v58  ;;  %1746 = vmatpush.msrb.mxu1 %v1646_v0 }
 0x48a   :  { %1787 = vmatpush.msrb.mxu2 %v1647_v50  ;;  %1828 = vmatpush.msrb.mxu3 %v1648_v55 }
 0x48b   :  { %1706 = vmatpush.msrb.mxu0 %v1641_v49  ;;  %1747 = vmatpush.msrb.mxu1 %v1642_v13 }
 0x48c   :  { %1788 = vmatpush.msrb.mxu2 %v1643_v21  ;;  %1829 = vmatpush.msrb.mxu3 %v1644_v59 }
 0x48d   :  { %1707 = vmatpush.msrb.mxu0 %v1637_v57  ;;  %1748 = vmatpush.msrb.mxu1 %v1638_v25 }
 0x48e   :  { %1789 = vmatpush.msrb.mxu2 %v1639_v14  ;;  %1830 = vmatpush.msrb.mxu3 %v1640_v52 }
 0x48f   :  { %1708 = vmatpush.msrb.mxu0 %v1633_v15  ;;  %1749 = vmatpush.msrb.mxu1 %v1634_v16  ;;  %v6271_v16 = vld [vmem:[#allocation18_spill] sm:$0xff] }
 0x490   :  { %1790 = vmatpush.msrb.mxu2 %v1635_v6  ;;  %1831 = vmatpush.msrb.mxu3 %v1636_v5  ;;  %v6272_v6 = vld [vmem:[#allocation23_spill] sm:$0xff] }
 0x491   :  { %1709 = vmatpush.msrb.mxu0 %v1629_v3  ;;  %1750 = vmatpush.msrb.mxu1 %v1630_v24  ;;  %v4799_v5 = vld [vmem:[#allocation8 + $0x3e0] sm:$0xff]  ;;  %v4801_v3 = vld [vmem:[#allocation8 + $0x3e8] sm:$0xff] }
 0x492   :  { %1791 = vmatpush.msrb.mxu2 %v1631_v7  ;;  %1832 = vmatpush.msrb.mxu3 %v1632_v42  ;;  %6273 = vst [vmem:[#allocation17_spill] sm:$0xff] %v4799_v5  ;;  %v4803_v24 = vld [vmem:[#allocation8 + $0x3c0] sm:$0xff]  ;;  %v4807_v7 = vld [vmem:[#allocation8 + $0x3c8] sm:$0xff]  ;;  %v4809_v42 = vld [vmem:[#allocation8 + $0x3f8] sm:$0xff] }
 0x493   :  { %1710 = vmatpush.msrb.mxu0 %v1625_v22  ;;  %6274 = vst [vmem:[#allocation19_spill] sm:$0xff] %v4807_v7  ;;  %v4812_v22 = vld [vmem:[#allocation8 + $0x3a0] sm:$0xff] }
 0x494   :  { %1792 = vmatpush.msrb.mxu2 %v1627_v28  ;;  %v6277_v28 = vld [vmem:[#allocation49_spill] sm:$0xff] }
 0x495   :  { %1711 = vmatpush.msrb.mxu0 %v1621_v20  ;;  %v4847_v20 = vld [vmem:[#allocation8 + $0x388] sm:$0xff] }
 0x4f2   :  { %v1333_v29 = vpop.f32.mrf.mxu0  ;;  %v1353_v32 = vpop.f32.mrf.mxu1 }
 0x4f3   :  { %v1396_v27 = vadd.f32 %v1333_v29, %v236_v4  ;;  %v1397_v61 = vadd.f32 %v1353_v32, %v277_v18  ;;  %v1626_v4 = vld [vmem:[#allocation6 + $0x228] sm:$0xff]  ;;  %v1628_v18 = vld [vmem:[#allocation6 + $0x238] sm:$0xff] }
 0x4f4   :  { %v6269_v29 = vld [vmem:[#allocation70_spill] sm:$0xff]  ;;  %1751 = vmatpush.msrb.mxu1 %v1626_v4  ;;  %1833 = vmatpush.msrb.mxu3 %v1628_v18  ;;  %v4835_v18 = vld [vmem:[#allocation8 + $0x3f0] sm:$0xff] }
 0x4f5   :  { %v3179_v26 = vmul.f32 -1.442695, %v1396_v27  ;;  %v3180_v31 = vmul.f32 -1.442695, %v1397_v61  ;;  %v318_v32 = vadd.f32 %v6269_v29, %v6264_v9  ;;  %v1623_v27 = vld [vmem:[#allocation6 + $0x210] sm:$0xff]  ;;  %v1624_v61 = vld [vmem:[#allocation6 + $0x218] sm:$0xff] }
 0x4f6   :  { %1752 = vmatpush.msrb.mxu1 %v1622_v2  ;;  %1793 = vmatpush.msrb.mxu2 %v1623_v27  ;;  %v4816_v4 = vld [vmem:[#allocation8 + $0x3d8] sm:$0xff]  ;;  %v4843_v29 = vld [vmem:[#allocation8 + $0x3b0] sm:$0xff]  ;;  %v4855_v2 = vld [vmem:[#allocation8 + $0x368] sm:$0xff] }
 0x4f7   :  { %3319 = vpow2.f32 %v3179_v26  ;;  %1834 = vmatpush.msrb.mxu3 %v1624_v61  ;;  %6276 = vst [vmem:[#allocation22_spill] sm:$0xff] %v4816_v4  ;;  %v4859_v27 = vld [vmem:[#allocation8 + $0x390] sm:$0xff]  ;;  %v4865_v61 = vld [vmem:[#allocation8 + $0x378] sm:$0xff] }
 0x4f8   :  { %3321 = vpow2.f32 %v3180_v31 }
 0x4f9   :  { %v1393_v44 = vpop.f32.mrf.mxu3  ;;  %v1373_v1 = vpop.f32.mrf.mxu2 }
 0x4fa   :  { %v1399_v47 = vadd.f32 %v1393_v44, %v359_v38  ;;  %v1398_v63 = vadd.f32 %v1373_v1, %v318_v32  ;;  %v4814_v1 = vld [vmem:[#allocation8 + $0x3a8] sm:$0xff]  ;;  %v4845_v32 = vld [vmem:[#allocation8 + $0x380] sm:$0xff] }
 0x4fb   :  { %6275 = vst [vmem:[#allocation20_spill] sm:$0xff] %v4814_v1 }
 0x4fc   :  { %v3181_v62 = vmul.f32 -1.442695, %v1399_v47  ;;  %6279 = vst [vmem:[#allocation51_spill] sm:$0xff] %v4845_v32 }
 0x4fd   :  { %v3320_v48 = vpop.eup %3319 }
 0x4fe   :  { %v3322_v11 = vpop.eup %3321  ;;  %v4767_v12 = vadd.f32 1.0, %v3320_v48  ;;  %3323 = vpow2.f32 %v3181_v62 }
 0x4ff   :  { %v4769_v19 = vadd.f32 1.0, %v3322_v11 }
 0x500   :  { %3325 = vrcp.f32 %v4767_v12  ;;  %v1415_v34 = vand.u32 2147483648, %v4767_v12  ;;  %v1413_v36 = vand.u32 2147483647, %v4767_v12  ;;  %vm1409_vm10 = vweird.f32 %v4767_v12 }
 0x501   :  { %3327 = vrcp.f32 %v4769_v19  ;;  %v1434_v35 = vand.u32 2147483648, %v4769_v19  ;;  %v1432_v38 = vand.u32 2147483647, %v4769_v19  ;;  %vm1428_vm11 = vweird.f32 %v4769_v19 }
 0x502   :  { %v1416_v43 = vor.u32 1.1754944e-38, %v1415_v34  ;;  %vm1414_vm14 = vcmp.eq.f32.partialorder %v1413_v36, 8.507059e+37  ;;  %v4879_v34 = vld [vmem:[#allocation8 + $0x358] sm:$0xff]  ;;  %v4883_v36 = vld [vmem:[#allocation8 + $0x350] sm:$0xff] }
 0x503   :  { %v1435_v47 = vor.u32 1.1754944e-38, %v1434_v35  ;;  %vm1433_vm15 = vcmp.eq.f32.partialorder %v1432_v38, 8.507059e+37 }
 0x504   :  { %v3324_v8 = vpop.eup %3323 }
 0x505   :  { %v1442_v17 = vadd.f32 1.0, %v3324_v8  ;;  %v4838_v8 = vld [vmem:[#allocation8 + $0x3d0] sm:$0xff] }
 0x506   :  { %v3326_v39 = vpop.eup %3325 }
 0x507   :  { %v3328_v51 = vpop.eup %3327  ;;  %v1405_v30 = vmul.f32 %v3326_v39, %v4767_v12  ;;  %3329 = vrcp.f32 %v1442_v17  ;;  %vm1410_vm8 = vweird.f32 %v3326_v39  ;;  %v1454_v25 = vand.u32 2147483648, %v1442_v17 }
 0x508   :  { %v1424_v26 = vmul.f32 %v3328_v51, %v4769_v19  ;;  %3331 = vtanh.f32 %v1398_v63  ;;  %vm1429_vm9 = vweird.f32 %v3328_v51  ;;  %vm1411_vm12 = vmor %vm1409_vm10, %vm1410_vm8  ;;  %vm1448_vm1 = vweird.f32 %v1442_v17  ;;  %v6280_v63 = vld [vmem:[#allocation66_spill] sm:$0xff] }
 0x509   :  { %v1406_v31 = vsub.f32 1.0, %v1405_v30  ;;  %vm1430_vm13 = vmor %vm1428_vm11, %vm1429_vm9  ;;  %v1452_v11 = vand.u32 2147483647, %v1442_v17  ;;  %v1455_v14 = vor.u32 1.1754944e-38, %v1454_v25  ;;  %v6281_v30 = vld [vmem:[#allocation67_spill] sm:$0xff] }
 0x50a   :  { %v1425_v33 = vsub.f32 1.0, %v1424_v26  ;;  %v280_v26 = vadd.f32 %v6281_v30, %v6260_v46  ;;  %v4890_v46 = vld [vmem:[#allocation8 + $0x338] sm:$0xff]  ;;  %v4925_v25 = vld [vmem:[#allocation8 + $0x2a0] sm:$0xff] }
 0x50b   :  { %v1407_v60 = vmul.f32 %v3326_v39, %v1406_v31  ;;  %vm1453_vm3 = vcmp.eq.f32.partialorder %v1452_v11, 8.507059e+37  ;;  %v4875_v31 = vld [vmem:[#allocation8 + $0x340] sm:$0xff]  ;;  %6284 = vst [vmem:[#allocation54_spill] sm:$0xff] %v4925_v25  ;;  %v4927_v11 = vld [vmem:[#allocation8 + $0x2a8] sm:$0xff] }
 0x50c   :  { %v1426_v37 = vmul.f32 %v3328_v51, %v1425_v33  ;;  %v4877_v33 = vld [vmem:[#allocation8 + $0x348] sm:$0xff]  ;;  %6285 = vst [vmem:[#allocation53_spill] sm:$0xff] %v4927_v11 }
 0x50d   :  { %v3330_v40 = vpop.eup %3329  ;;  %v1408_v41 = vadd.f32 %v3326_v39, %v1407_v60 }
 0x50e   :  { %v1427_v44 = vadd.f32 %v3328_v51, %v1426_v37  ;;  %v1444_v45 = vmul.f32 %v3330_v40, %v1442_v17  ;;  %v3332_v0 = vpop.eup %3331  ;;  %vm1449_vm0 = vweird.f32 %v3330_v40  ;;  %v4857_v17 = vld [vmem:[#allocation8 + $0x398] sm:$0xff] }
 0x50f   :  { %v1412_v58 = vsel %vm1411_vm12, %v3326_v39, %v1408_v41  ;;  %vm1450_vm2 = vmor %vm1448_vm1, %vm1449_vm0  ;;  %v4867_v39 = vld [vmem:[#allocation8 + $0x370] sm:$0xff] }
 0x510   :  { %v1417_v50 = vsel %vm1414_vm14, %v1416_v43, %v1412_v58  ;;  %v1431_v55 = vsel %vm1430_vm13, %v3328_v51, %v1427_v44  ;;  %v1445_v62 = vsub.f32 1.0, %v1444_v45  ;;  %v239_v51 = vadd.f32 %v6280_v63, %v6258_v53  ;;  %v4885_v53 = vld [vmem:[#allocation8 + $0x320] sm:$0xff]  ;;  %v4895_v41 = vld [vmem:[#allocation8 + $0x330] sm:$0xff] }
 0x511   :  { %v1436_v49 = vsel %vm1433_vm15, %v1435_v47, %v1431_v55  ;;  %v1459_v13 = vmul.f32 %v3332_v0, %v1417_v50  ;;  %v4897_v45 = vld [vmem:[#allocation8 + $0x300] sm:$0xff]  ;;  %v4899_v47 = vld [vmem:[#allocation8 + $0x308] sm:$0xff]  ;;  %v4909_v50 = vld [vmem:[#allocation8 + $0x318] sm:$0xff] }
 0x512   :  { %v1458_v21 = vmul.f32 %v1436_v49, %v4752_v54  ;;  %v1446_v48 = vmul.f32 %v3330_v40, %v1445_v62  ;;  %v6270_v54 = vld [vmem:[#allocation75_spill] sm:$0xff]  ;;  %v4907_v0 = vld [vmem:[#allocation8 + $0x2e8] sm:$0xff]  ;;  %v4916_v49 = vld [vmem:[#allocation8 + $0x2f8] sm:$0xff] }
 0x513   :  { %v4905_v58 = vld [vmem:[#allocation8 + $0x2e0] sm:$0xff]  ;;  %v4914_v62 = vld [vmem:[#allocation8 + $0x2c8] sm:$0xff] }
 0x514   :  { %v4784_v59 = vadd.f32 %v1459_v13, %v1458_v21  ;;  %v1447_v57 = vadd.f32 %v3330_v40, %v1446_v48  ;;  %v4912_v55 = vld [vmem:[#allocation8 + $0x2c0] sm:$0xff]  ;;  %v4922_v48 = vld [vmem:[#allocation8 + $0x2d8] sm:$0xff] }
 0x515   :  { %v6282_v13 = vld [vmem:[#allocation71_spill] sm:$0xff]  ;;  %6283 = vst [vmem:[#allocation52_spill] sm:$0xff] %v4922_v48 }
 0x516   :  { %3333 = vtanh.f32 %v4784_v59  ;;  %v1451_v12 = vsel %vm1450_vm2, %v3330_v40, %v1447_v57  ;;  %v4887_v40 = vld [vmem:[#allocation8 + $0x328] sm:$0xff]  ;;  %v362_v21 = vadd.f32 %v6282_v13, %v6262_v10  ;;  %v4933_v10 = vld [vmem:[#allocation8 + $0x2b8] sm:$0xff]  ;;  %v4951_v63 = vld [vmem:[#allocation8 + $0x260] sm:$0xff] }
 0x517   :  { %v1456_v19 = vsel %vm1453_vm3, %v1455_v14, %v1451_v12  ;;  %v4929_v12 = vld [vmem:[#allocation8 + $0x310] sm:$0xff]  ;;  %6286 = vst [vmem:[#allocation55_spill] sm:$0xff] %v4933_v10  ;;  %v4979_v13 = vld [vmem:[#allocation8 + $0x220] sm:$0xff] }
 0x518   :  { %6291 = vst [vmem:[#allocation26_spill] sm:$0xff] %v4951_v63 }
 0x519   :  { %6298 = vst [vmem:[#allocation32_spill] sm:$0xff] %v4979_v13 }
 0x51c   :  { %v3334_v52 = vpop.eup %3333 }
 0x51d   :  { %v1462_v15 = vmul.f32 %v3334_v52, %v1456_v19  ;;  %v4935_v52 = vld [vmem:[#allocation8 + $0x2f0] sm:$0xff]  ;;  %v4939_v19 = vld [vmem:[#allocation8 + $0x280] sm:$0xff] }
 0x51e   :  { %6287 = vst [vmem:[#allocation56_spill] sm:$0xff] %v4939_v19 }
 0x51f   :  { %1480 = vmatmul.f32.vlgmr.msra.gmra.mxu0 %v1462_v15  ;;  %1500 = vmatmul.f32.vlgmr.msra.gmra.mxu1 %v1462_v15 }
 0x520   :  { %1520 = vmatmul.f32.vlgmr.msra.gmra.mxu2 %v1462_v15  ;;  %1540 = vmatmul.f32.vlgmr.msra.gmra.mxu3 %v1462_v15 }
 0x521   :  { %1925 = vmatpush.msra.mxu0 %v4799_v5  ;;  %1945 = vmatpush.msra.mxu1 %v4801_v3 }
 0x522   :  { %1985 = vmatpush.msra.mxu3 %v4809_v42  ;;  %1965 = vmatpush.msra.mxu2 %v4835_v18 }
 0x523   :  { %1926 = vmatpush.msra.mxu0 %v4803_v24  ;;  %1946 = vmatpush.msra.mxu1 %v4807_v7 }
 0x524   :  { %1986 = vmatpush.msra.mxu3 %v4816_v4  ;;  %1966 = vmatpush.msra.mxu2 %v4838_v8 }
 0x525   :  { %1927 = vmatpush.msra.mxu0 %v4812_v22  ;;  %1947 = vmatpush.msra.mxu1 %v4814_v1 }
 0x526   :  { %1967 = vmatpush.msra.mxu2 %v4843_v29 }
 0x527   :  { %1712 = vmatmul.f32.vlgmr.msrb.gmra.mxu0 %v6270_v54  ;;  %1753 = vmatmul.f32.vlgmr.msrb.gmra.mxu1 %v6270_v54 }
 0x528   :  { %1794 = vmatmul.f32.vlgmr.msrb.gmra.mxu2 %v6270_v54  ;;  %1835 = vmatmul.f32.vlgmr.msrb.gmra.mxu3 %v6270_v54 }
 0x529   :  { %1928 = vmatpush.msra.mxu0 %v4845_v32  ;;  %1948 = vmatpush.msra.mxu1 %v4847_v20 }
 0x52a   :  { %1968 = vmatpush.msra.mxu2 %v4859_v27 }
 0x52b   :  { %1949 = vmatpush.msra.mxu1 %v4855_v2 }
 0x52c   :  { %1969 = vmatpush.msra.mxu2 %v4867_v39 }
 0x52d   :  { %1950 = vmatpush.msra.mxu1 %v4877_v33 }
 0x52e   :  { %1970 = vmatpush.msra.mxu2 %v4883_v36 }
 0x52f   :  { %1715 = vmatmul.f32.gmra.mxu0 %v6271_v16  ;;  %1756 = vmatmul.f32.gmra.mxu1 %v6271_v16 }
 0x530   :  { %1797 = vmatmul.f32.gmra.mxu2 %v6271_v16  ;;  %1838 = vmatmul.f32.gmra.mxu3 %v6271_v16  ;;  %v4945_v16 = vld [vmem:[#allocation8 + $0x298] sm:$0xff] }
 0x531   :  { %1951 = vmatpush.msra.mxu1 %v4887_v40  ;;  %1971 = vmatpush.msra.mxu2 %v4895_v41  ;;  %6289 = vst [vmem:[#allocation60_spill] sm:$0xff] %v4945_v16 }
 0x533   :  { %1952 = vmatpush.msra.mxu1 %v4899_v47  ;;  %1972 = vmatpush.msra.mxu2 %v4929_v12 }
 0x535   :  { %1953 = vmatpush.msra.mxu1 %v4907_v0  ;;  %1973 = vmatpush.msra.mxu2 %v4935_v52 }
 0x537   :  { %1718 = vmatmul.f32.gmra.mxu0 %v6272_v6  ;;  %1759 = vmatmul.f32.gmra.mxu1 %v6272_v6 }
 0x538   :  { %1800 = vmatmul.f32.gmra.mxu2 %v6272_v6  ;;  %1841 = vmatmul.f32.gmra.mxu3 %v6272_v6  ;;  %v4947_v6 = vld [vmem:[#allocation8 + $0x2d0] sm:$0xff] }
 0x539   :  { %1954 = vmatpush.msra.mxu1 %v4914_v62  ;;  %6290 = vst [vmem:[#allocation24_spill] sm:$0xff] %v4947_v6  ;;  %1974 = vmatpush.msra.mxu2 %v4947_v6 }
 0x53b   :  { %1955 = vmatpush.msra.mxu1 %v4927_v11 }
 0x53f   :  { %1721 = vmatmul.f32.gmra.mxu0 %v6277_v28  ;;  %1762 = vmatmul.f32.gmra.mxu1 %v6277_v28 }
 0x540   :  { %1803 = vmatmul.f32.gmra.mxu2 %v6277_v28  ;;  %1844 = vmatmul.f32.gmra.mxu3 %v6277_v28 }
 0x547   :  { %1724 = vmatmul.f32.gmra.mxu0 %v4673_v23  ;;  %1765 = vmatmul.f32.gmra.mxu1 %v4673_v23 }
 0x548   :  { %1806 = vmatmul.f32.gmra.mxu2 %v4673_v23  ;;  %1847 = vmatmul.f32.gmra.mxu3 %v4673_v23  ;;  %v4841_v23 = vld [vmem:[#allocation8 + $0x3b8] sm:$0xff] }
 0x549   :  { %6278 = vst [vmem:[#allocation21_spill] sm:$0xff] %v4841_v23  ;;  %1987 = vmatpush.msra.mxu3 %v4841_v23 }
 0x54b   :  { %1988 = vmatpush.msra.mxu3 %v4857_v17 }
 0x54d   :  { %1989 = vmatpush.msra.mxu3 %v4865_v61 }
 0x54f   :  { %1727 = vmatmul.f32.gmra.mxu0 %v4755_v56  ;;  %1768 = vmatmul.f32.gmra.mxu1 %v4755_v56 }
 0x550   :  { %1809 = vmatmul.f32.gmra.mxu2 %v4755_v56  ;;  %1850 = vmatmul.f32.gmra.mxu3 %v4755_v56  ;;  %v4850_v56 = vld [vmem:[#allocation8 + $0x360] sm:$0xff] }
 0x551   :  { %1929 = vmatpush.msra.mxu0 %v4850_v56  ;;  %1990 = vmatpush.msra.mxu3 %v4879_v34 }
 0x553   :  { %1930 = vmatpush.msra.mxu0 %v4875_v31  ;;  %1991 = vmatpush.msra.mxu3 %v4890_v46 }
 0x555   :  { %1931 = vmatpush.msra.mxu0 %v4885_v53  ;;  %1992 = vmatpush.msra.mxu3 %v4909_v50 }
 0x557   :  { %1730 = vmatmul.f32.gmra.mxu0 %v1462_v15  ;;  %1771 = vmatmul.f32.gmra.mxu1 %v1462_v15 }
 0x558   :  { %1812 = vmatmul.f32.gmra.mxu2 %v1462_v15  ;;  %1853 = vmatmul.f32.gmra.mxu3 %v1462_v15  ;;  %v4941_v15 = vld [vmem:[#allocation8 + $0x288] sm:$0xff] }
 0x559   :  { %1932 = vmatpush.msra.mxu0 %v4897_v45  ;;  %1993 = vmatpush.msra.mxu3 %v4916_v49  ;;  %6288 = vst [vmem:[#allocation57_spill] sm:$0xff] %v4941_v15 }
 0x55a   :  { %1956 = vmatpush.msra.mxu1 %v4941_v15 }
 0x55b   :  { %1933 = vmatpush.msra.mxu0 %v4905_v58  ;;  %1994 = vmatpush.msra.mxu3 %v4922_v48 }
 0x55d   :  { %1934 = vmatpush.msra.mxu0 %v4912_v55  ;;  %1995 = vmatpush.msra.mxu3 %v4933_v10 }
 0x55f   :  { %1935 = vmatpush.msra.mxu0 %v4925_v25  ;;  %1996 = vmatpush.msra.mxu3 %v4945_v16  ;;  %v5003_v16 = vld [vmem:[#allocation8 + $0x218] sm:$0xff] }
 0x560   :  { %6307 = vst [vmem:[#allocation40_spill] sm:$0xff] %v5003_v16 }
 0x561   :  { %1936 = vmatpush.msra.mxu0 %v4939_v19 }
 0x563   :  { %1937 = vmatpush.msra.mxu0 %v4951_v63 }
 0x59c   :  { %v1481_v35 = vpop.f32.mrf.mxu0  ;;  %v1501_v60 = vpop.f32.mrf.mxu1 }
 0x59d   :  { %v1544_v37 = vadd.f32 %v1481_v35, %v239_v51  ;;  %v1545_v38 = vadd.f32 %v1501_v60, %v280_v26  ;;  %v4953_v51 = vld [vmem:[#allocation8 + $0x268] sm:$0xff]  ;;  %v4959_v35 = vld [vmem:[#allocation8 + $0x2b0] sm:$0xff]  ;;  %v4961_v60 = vld [vmem:[#allocation8 + $0x278] sm:$0xff] }
 0x59e   :  { %6292 = vst [vmem:[#allocation25_spill] sm:$0xff] %v4953_v51  ;;  %1957 = vmatpush.msra.mxu1 %v4953_v51  ;;  %1975 = vmatpush.msra.mxu2 %v4959_v35  ;;  %v6304_v51 = vld [vmem:[#allocation73_spill] sm:$0xff] }
 0x59f   :  { %v3182_v43 = vmul.f32 -1.442695, %v1544_v37  ;;  %v3183_v44 = vmul.f32 -1.442695, %v1545_v38  ;;  %6293 = vst [vmem:[#allocation27_spill] sm:$0xff] %v4959_v35  ;;  %v4967_v38 = vld [vmem:[#allocation8 + $0x240] sm:$0xff]  ;;  %1997 = vmatpush.msra.mxu3 %v4961_v60  ;;  %v321_v63 = vadd.f32 %v6304_v51, %v6264_v9 }
 0x5a0   :  { %6294 = vst [vmem:[#allocation28_spill] sm:$0xff] %v4961_v60  ;;  %1938 = vmatpush.msra.mxu0 %v4967_v38  ;;  %v5011_v9 = vld [vmem:[#allocation8 + $0x230] sm:$0xff] }
 0x5a1   :  { %3335 = vpow2.f32 %v3182_v43  ;;  %6295 = vst [vmem:[#allocation30_spill] sm:$0xff] %v4967_v38  ;;  %v4969_v43 = vld [vmem:[#allocation8 + $0x248] sm:$0xff]  ;;  %v5001_v38 = vld [vmem:[#allocation8 + $0x238] sm:$0xff] }
 0x5a2   :  { %3337 = vpow2.f32 %v3183_v44  ;;  %6296 = vst [vmem:[#allocation29_spill] sm:$0xff] %v4969_v43  ;;  %v4974_v44 = vld [vmem:[#allocation8 + $0x290] sm:$0xff]  ;;  %1958 = vmatpush.msra.mxu1 %v4969_v43  ;;  %1939 = vmatpush.msra.mxu0 %v4979_v13 }
 0x5a3   :  { %v1541_v57 = vpop.f32.mrf.mxu3  ;;  %6297 = vst [vmem:[#allocation31_spill] sm:$0xff] %v4974_v44  ;;  %1976 = vmatpush.msra.mxu2 %v4974_v44  ;;  %v4999_v43 = vld [vmem:[#allocation8 + $0x250] sm:$0xff] }
 0x5a4   :  { %v1547_v14 = vadd.f32 %v1541_v57, %v362_v21  ;;  %v4981_v21 = vld [vmem:[#allocation8 + $0x228] sm:$0xff]  ;;  %v4983_v57 = vld [vmem:[#allocation8 + $0x258] sm:$0xff]  ;;  %6305 = vst [vmem:[#allocation38_spill] sm:$0xff] %v4999_v43 }
 0x5a5   :  { %6299 = vst [vmem:[#allocation34_spill] sm:$0xff] %v4981_v21  ;;  %1998 = vmatpush.msra.mxu3 %v4983_v57  ;;  %1959 = vmatpush.msra.mxu1 %v4981_v21 }
 0x5a6   :  { %v3184_v54 = vmul.f32 -1.442695, %v1547_v14  ;;  %6300 = vst [vmem:[#allocation33_spill] sm:$0xff] %v4983_v57  ;;  %v4987_v14 = vld [vmem:[#allocation8 + $0x270] sm:$0xff] }
 0x5a7   :  { %v3336_v28 = vpop.eup %3335  ;;  %6301 = vst [vmem:[#allocation35_spill] sm:$0xff] %v4987_v14  ;;  %1977 = vmatpush.msra.mxu2 %v4987_v14  ;;  %1999 = vmatpush.msra.mxu3 %v5001_v38 }
 0x5a8   :  { %v3338_v30 = vpop.eup %3337  ;;  %v4955_v26 = vadd.f32 1.0, %v3336_v28  ;;  %3339 = vpow2.f32 %v3184_v54  ;;  %v1521_v54 = vpop.f32.mrf.mxu2  ;;  %v4991_v28 = vld [vmem:[#allocation8 + $0x200] sm:$0xff]  ;;  %6306 = vst [vmem:[#allocation39_spill] sm:$0xff] %v5001_v38  ;;  %v5018_v38 = vld [vmem:[#allocation8 + $0x210] sm:$0xff] }
 0x5a9   :  { %v4963_v37 = vadd.f32 1.0, %v3338_v30  ;;  %6302 = vst [vmem:[#allocation36_spill] sm:$0xff] %v4991_v28  ;;  %v4993_v30 = vld [vmem:[#allocation8 + $0x208] sm:$0xff]  ;;  %v1546_v15 = vadd.f32 %v1521_v54, %v321_v63  ;;  %1940 = vmatpush.msra.mxu0 %v4991_v28  ;;  %1978 = vmatpush.msra.mxu2 %v4999_v43 }
 0x5aa   :  { %3341 = vrcp.f32 %v4955_v26  ;;  %6303 = vst [vmem:[#allocation37_spill] sm:$0xff] %v4993_v30  ;;  %1960 = vmatpush.msra.mxu1 %v4993_v30  ;;  %2000 = vmatpush.msra.mxu3 %v5003_v16  ;;  %v1563_v30 = vand.u32 2147483648, %v4955_v26  ;;  %vm1557_vm6 = vweird.f32 %v4955_v26 }
 0x5ab   :  { %3343 = vrcp.f32 %v4963_v37  ;;  %6308 = vst [vmem:[#allocation41_spill] sm:$0xff] %v5011_v9  ;;  %2072 = vmatpush.msrb.mxu0 %v4799_v5  ;;  %1979 = vmatpush.msra.mxu2 %v5011_v9  ;;  %v1582_v16 = vand.u32 2147483648, %v4963_v37  ;;  %v1561_v5 = vand.u32 2147483647, %v4955_v26  ;;  %vm1576_vm7 = vweird.f32 %v4963_v37 }
 0x5ac   :  { %6309 = vst [vmem:[#allocation42_spill] sm:$0xff] %v5018_v38  ;;  %2092 = vmatpush.msrb.mxu1 %v4801_v3  ;;  %2132 = vmatpush.msrb.mxu3 %v4809_v42 }
 0x5ad   :  { %2073 = vmatpush.msrb.mxu0 %v4803_v24  ;;  %1980 = vmatpush.msra.mxu2 %v5018_v38  ;;  %vm1562_vm10 = vcmp.eq.f32.partialorder %v1561_v5, 8.507059e+37 }
 0x5ae   :  { %v3340_v60 = vpop.eup %3339  ;;  %2093 = vmatpush.msrb.mxu1 %v4807_v7  ;;  %2133 = vmatpush.msrb.mxu3 %v4816_v4 }
 0x5af   :  { %v5005_v44 = vadd.f32 1.0, %v3340_v60  ;;  %2112 = vmatpush.msrb.mxu2 %v4835_v18  ;;  %2074 = vmatpush.msrb.mxu0 %v4812_v22 }
 0x5b0   :  { %v3342_v57 = vpop.eup %3341  ;;  %2094 = vmatpush.msrb.mxu1 %v4814_v1  ;;  %2134 = vmatpush.msrb.mxu3 %v4841_v23 }
 0x5b1   :  { %v3344_v51 = vpop.eup %3343  ;;  %v1553_v21 = vmul.f32 %v3342_v57, %v4955_v26  ;;  %3345 = vrcp.f32 %v5005_v44  ;;  %vm1558_vm4 = vweird.f32 %v3342_v57  ;;  %2113 = vmatpush.msrb.mxu2 %v4838_v8  ;;  %2075 = vmatpush.msrb.mxu0 %v4845_v32  ;;  %v1583_v26 = vor.u32 1.1754944e-38, %v1582_v16 }
 0x5b2   :  { %v1572_v60 = vmul.f32 %v3344_v51, %v4963_v37  ;;  %3347 = vtanh.f32 %v1546_v15  ;;  %vm1577_vm5 = vweird.f32 %v3344_v51  ;;  %vm1559_vm8 = vmor %vm1557_vm6, %vm1558_vm4  ;;  %2095 = vmatpush.msrb.mxu1 %v4847_v20  ;;  %2135 = vmatpush.msrb.mxu3 %v4857_v17  ;;  %vm1596_vm13 = vweird.f32 %v5005_v44 }
 0x5b3   :  { %v1554_v63 = vsub.f32 1.0, %v1553_v21  ;;  %vm1578_vm9 = vmor %vm1576_vm7, %vm1577_vm5  ;;  %2114 = vmatpush.msrb.mxu2 %v4843_v29  ;;  %2076 = vmatpush.msrb.mxu0 %v4850_v56 }
 0x5b4   :  { %v1573_v54 = vsub.f32 1.0, %v1572_v60  ;;  %v1580_v60 = vand.u32 2147483647, %v4963_v37  ;;  %2096 = vmatpush.msrb.mxu1 %v4855_v2  ;;  %2136 = vmatpush.msrb.mxu3 %v4865_v61 }
 0x5b5   :  { %v1555_v28 = vmul.f32 %v3342_v57, %v1554_v63  ;;  %v1564_v63 = vor.u32 1.1754944e-38, %v1563_v30  ;;  %2115 = vmatpush.msrb.mxu2 %v4859_v27  ;;  %2077 = vmatpush.msrb.mxu0 %v4875_v31 }
 0x5b6   :  { %v1574_v21 = vmul.f32 %v3344_v51, %v1573_v54  ;;  %vm1581_vm11 = vcmp.eq.f32.partialorder %v1580_v60, 8.507059e+37  ;;  %2097 = vmatpush.msrb.mxu1 %v4877_v33  ;;  %2137 = vmatpush.msrb.mxu3 %v4879_v34  ;;  %v6310_v60 = vld [vmem:[#allocation57_spill] sm:$0xff] }
 0x5b7   :  { %v5034_v15 = vpop.eup %3345  ;;  %v1556_v7 = vadd.f32 %v3342_v57, %v1555_v28  ;;  %2116 = vmatpush.msrb.mxu2 %v4867_v39  ;;  %2078 = vmatpush.msrb.mxu0 %v4885_v53 }
 0x5b8   :  { %v1575_v54 = vadd.f32 %v3344_v51, %v1574_v21  ;;  %v1592_v4 = vmul.f32 %v5034_v15, %v5005_v44  ;;  %v3348_v37 = vpop.eup %3347  ;;  %vm1597_vm12 = vweird.f32 %v5034_v15  ;;  %2098 = vmatpush.msrb.mxu1 %v4887_v40  ;;  %2138 = vmatpush.msrb.mxu3 %v4890_v46 }
 0x5b9   :  { %v1560_v28 = vsel %vm1559_vm8, %v3342_v57, %v1556_v7  ;;  %2117 = vmatpush.msrb.mxu2 %v4883_v36  ;;  %2079 = vmatpush.msrb.mxu0 %v4897_v45  ;;  %vm1598_vm14 = vmor %vm1596_vm13, %vm1597_vm12 }
 0x5ba   :  { %v1565_v23 = vsel %vm1562_vm10, %v1564_v63, %v1560_v28  ;;  %v1579_v30 = vsel %vm1578_vm9, %v3344_v51, %v1575_v54  ;;  %v1593_v21 = vsub.f32 1.0, %v1592_v4  ;;  %2099 = vmatpush.msrb.mxu1 %v4899_v47  ;;  %2139 = vmatpush.msrb.mxu3 %v4909_v50  ;;  %v6312_v63 = vld [vmem:[#allocation31_spill] sm:$0xff]  ;;  %v6313_v54 = vld [vmem:[#allocation26_spill] sm:$0xff]  ;;  %v6315_v28 = vld [vmem:[#allocation28_spill] sm:$0xff] }
 0x5bb   :  { %v1584_v1 = vsel %vm1581_vm11, %v1583_v26, %v1579_v30  ;;  %v1607_v32 = vmul.f32 %v3348_v37, %v1565_v23  ;;  %2118 = vmatpush.msrb.mxu2 %v4895_v41  ;;  %2080 = vmatpush.msrb.mxu0 %v4905_v58  ;;  %v6314_v26 = vld [vmem:[#allocation25_spill] sm:$0xff]  ;;  %v6316_v37 = vld [vmem:[#allocation30_spill] sm:$0xff] }
 0x5bc   :  { %v1606_v5 = vmul.f32 %v1584_v1, %v4784_v59  ;;  %v1594_v7 = vmul.f32 %v5034_v15, %v1593_v21  ;;  %v1602_v59 = vand.u32 2147483648, %v5005_v44  ;;  %v1600_v1 = vand.u32 2147483647, %v5005_v44  ;;  %2100 = vmatpush.msrb.mxu1 %v4907_v0  ;;  %2140 = vmatpush.msrb.mxu3 %v4916_v49  ;;  %v6317_v30 = vld [vmem:[#allocation29_spill] sm:$0xff] }
 0x5bd   :  { %2119 = vmatpush.msrb.mxu2 %v4929_v12  ;;  %2081 = vmatpush.msrb.mxu0 %v4912_v55  ;;  %v6318_v21 = vld [vmem:[#allocation33_spill] sm:$0xff] }
 0x5be   :  { %v1608_v4 = vadd.f32 %v1607_v32, %v1606_v5  ;;  %v1595_v23 = vadd.f32 %v5034_v15, %v1594_v7  ;;  %v1603_v16 = vor.u32 1.1754944e-38, %v1602_v59  ;;  %vm1601_vm15 = vcmp.eq.f32.partialorder %v1600_v1, 8.507059e+37  ;;  %2101 = vmatpush.msrb.mxu1 %v4914_v62  ;;  %2141 = vmatpush.msrb.mxu3 %v4922_v48  ;;  %v6320_v7 = vld [vmem:[#allocation34_spill] sm:$0xff]  ;;  %v6323_v59 = vld [vmem:[#allocation37_spill] sm:$0xff]  ;;  %v6324_v1 = vld [vmem:[#allocation40_spill] sm:$0xff] }
 0x5bf   :  { %2120 = vmatpush.msrb.mxu2 %v4935_v52  ;;  %2082 = vmatpush.msrb.mxu0 %v4925_v25  ;;  %v6319_v5 = vmov 0.0  }
 0x5c0   :  { %3349 = vtanh.f32 %v1608_v4  ;;  %v1599_v32 = vsel %vm1598_vm14, %v5034_v15, %v1595_v23  ;;  %2102 = vmatpush.msrb.mxu1 %v4927_v11  ;;  %2142 = vmatpush.msrb.mxu3 %v4933_v10  ;;  %v6311_v15 = vld [vmem:[#allocation60_spill] sm:$0xff]  ;;  %v6321_v4 = vld [vmem:[#allocation39_spill] sm:$0xff] }
 0x5c1   :  { %v1604_v57 = vsel %vm1601_vm15, %v1603_v16, %v1599_v32  ;;  %2121 = vmatpush.msrb.mxu2 %v4947_v6  ;;  %2083 = vmatpush.msrb.mxu0 %v4939_v19  ;;  %v6322_v23 = vld [vmem:[#allocation36_spill] sm:$0xff]  ;;  %v6325_v32 = vld [vmem:[#allocation17_spill] sm:$0xff]  ;;  %v6326_v16 = vld [vmem:[#allocation19_spill] sm:$0xff] }
 0x5c2   :  { %2103 = vmatpush.msrb.mxu1 %v6310_v60  ;;  %2143 = vmatpush.msrb.mxu3 %v6311_v15 }
 0x5c3   :  { %2122 = vmatpush.msrb.mxu2 %v4959_v35  ;;  %2084 = vmatpush.msrb.mxu0 %v6313_v54 }
 0x5c4   :  { %2104 = vmatpush.msrb.mxu1 %v6314_v26  ;;  %2144 = vmatpush.msrb.mxu3 %v6315_v28 }
 0x5c5   :  { %2123 = vmatpush.msrb.mxu2 %v6312_v63  ;;  %2085 = vmatpush.msrb.mxu0 %v6316_v37 }
 0x5c6   :  { %v3350_v44 = vpop.eup %3349  ;;  %2105 = vmatpush.msrb.mxu1 %v6317_v30  ;;  %2145 = vmatpush.msrb.mxu3 %v6318_v21 }
 0x5c7   :  { %v1610_v51 = vmul.f32 %v3350_v44, %v1604_v57  ;;  %2124 = vmatpush.msrb.mxu2 %v4987_v14  ;;  %2086 = vmatpush.msrb.mxu0 %v4979_v13  ;;  %v6327_v44 = vld [vmem:[#allocation22_spill] sm:$0xff]  ;;  %v6328_v57 = vld [vmem:[#allocation20_spill] sm:$0xff] }
 0x5c8   :  { %2106 = vmatpush.msrb.mxu1 %v6320_v7  ;;  %2146 = vmatpush.msrb.mxu3 %v6321_v4 }
 0x5c9   :  { %1733 = vmatmul.f32.gmra.mxu0 %v1610_v51  ;;  %1774 = vmatmul.f32.gmra.mxu1 %v1610_v51 }
 0x5ca   :  { %1815 = vmatmul.f32.gmra.mxu2 %v1610_v51  ;;  %1856 = vmatmul.f32.gmra.mxu3 %v1610_v51  ;;  %v6329_v51 = vld [vmem:[#allocation21_spill] sm:$0xff] }
 0x5cb   :  { %2125 = vmatpush.msrb.mxu2 %v4999_v43  ;;  %2087 = vmatpush.msrb.mxu0 %v6322_v23 }
 0x5cc   :  { %2107 = vmatpush.msrb.mxu1 %v6323_v59  ;;  %2147 = vmatpush.msrb.mxu3 %v6324_v1 }
 0x5cd   :  { %2126 = vmatpush.msrb.mxu2 %v5011_v9 }
 0x5cf   :  { %2127 = vmatpush.msrb.mxu2 %v5018_v38 }
 0x5d1   :  { %1941 = vmatmul.f32.vlgmr.msra.gmra.mxu0 %v6319_v5  ;;  %1961 = vmatmul.f32.vlgmr.msra.gmra.mxu1 %v6319_v5 }
 0x5d2   :  { %1981 = vmatmul.f32.vlgmr.msra.gmra.mxu2 %v6319_v5  ;;  %2001 = vmatmul.f32.vlgmr.msra.gmra.mxu3 %v6319_v5  ;;  %v6330_v5 = vld [vmem:[#allocation51_spill] sm:$0xff] }
 0x5d3   :  { %2219 = vmatpush.msra.mxu0 %v6325_v32  ;;  %2239 = vmatpush.msra.mxu1 %v4801_v3 }
 0x5d4   :  { %2259 = vmatpush.msra.mxu2 %v4835_v18  ;;  %2279 = vmatpush.msra.mxu3 %v4809_v42 }
 0x5d5   :  { %2220 = vmatpush.msra.mxu0 %v4803_v24  ;;  %2240 = vmatpush.msra.mxu1 %v6326_v16 }
 0x5d6   :  { %2260 = vmatpush.msra.mxu2 %v4838_v8  ;;  %2280 = vmatpush.msra.mxu3 %v6327_v44 }
 0x5d7   :  { %2221 = vmatpush.msra.mxu0 %v4812_v22  ;;  %2241 = vmatpush.msra.mxu1 %v6328_v57 }
 0x5d8   :  { %2261 = vmatpush.msra.mxu2 %v4843_v29  ;;  %2281 = vmatpush.msra.mxu3 %v6329_v51 }
 0x5d9   :  { %2222 = vmatpush.msra.mxu0 %v6330_v5  ;;  %2242 = vmatpush.msra.mxu1 %v4847_v20 }
 0x5da   :  { %2262 = vmatpush.msra.mxu2 %v4859_v27  ;;  %2282 = vmatpush.msra.mxu3 %v4857_v17 }
 0x5db   :  { %2223 = vmatpush.msra.mxu0 %v4850_v56  ;;  %2243 = vmatpush.msra.mxu1 %v4855_v2 }
 0x5dc   :  { %2263 = vmatpush.msra.mxu2 %v4867_v39  ;;  %2283 = vmatpush.msra.mxu3 %v4865_v61 }
 0x5dd   :  { %2224 = vmatpush.msra.mxu0 %v4875_v31  ;;  %2244 = vmatpush.msra.mxu1 %v4877_v33 }
 0x5de   :  { %2264 = vmatpush.msra.mxu2 %v4883_v36  ;;  %2284 = vmatpush.msra.mxu3 %v4879_v34 }
 0x5df   :  { %2225 = vmatpush.msra.mxu0 %v4885_v53  ;;  %2245 = vmatpush.msra.mxu1 %v4887_v40 }
 0x5e0   :  { %2265 = vmatpush.msra.mxu2 %v4895_v41  ;;  %2285 = vmatpush.msra.mxu3 %v4890_v46 }
 0x5e1   :  { %2226 = vmatpush.msra.mxu0 %v4897_v45  ;;  %2246 = vmatpush.msra.mxu1 %v4899_v47 }
 0x5e2   :  { %2266 = vmatpush.msra.mxu2 %v4929_v12  ;;  %2286 = vmatpush.msra.mxu3 %v4909_v50 }
 0x5e3   :  { %2227 = vmatpush.msra.mxu0 %v4905_v58  ;;  %2247 = vmatpush.msra.mxu1 %v4907_v0 }
 0x5e4   :  { %2267 = vmatpush.msra.mxu2 %v4935_v52  ;;  %2287 = vmatpush.msra.mxu3 %v4916_v49 }
 0x5e5   :  { %2228 = vmatpush.msra.mxu0 %v4912_v55  ;;  %2248 = vmatpush.msra.mxu1 %v4914_v62 }
 0x5e6   :  { %2268 = vmatpush.msra.mxu2 %v4947_v6  ;;  %2288 = vmatpush.msra.mxu3 %v4922_v48 }
 0x5e7   :  { %2229 = vmatpush.msra.mxu0 %v4925_v25  ;;  %2249 = vmatpush.msra.mxu1 %v4927_v11 }
 0x5e8   :  { %2269 = vmatpush.msra.mxu2 %v4959_v35  ;;  %2289 = vmatpush.msra.mxu3 %v4933_v10 }
 0x5e9   :  { %2230 = vmatpush.msra.mxu0 %v4939_v19  ;;  %2250 = vmatpush.msra.mxu1 %v6310_v60 }
 0x5ea   :  { %2270 = vmatpush.msra.mxu2 %v6312_v63  ;;  %2290 = vmatpush.msra.mxu3 %v6311_v15 }
 0x5eb   :  { %2231 = vmatpush.msra.mxu0 %v6313_v54  ;;  %2251 = vmatpush.msra.mxu1 %v6314_v26 }
 0x5ec   :  { %2271 = vmatpush.msra.mxu2 %v4987_v14  ;;  %2291 = vmatpush.msra.mxu3 %v6315_v28 }
 0x5ed   :  { %2232 = vmatpush.msra.mxu0 %v6316_v37  ;;  %2252 = vmatpush.msra.mxu1 %v6317_v30  ;;  %v1713_v30 = vpop.f32.mrf.mxu0  ;;  %v1836_v37 = vpop.f32.mrf.mxu3 }
 0x5ee   :  { %2272 = vmatpush.msra.mxu2 %v4999_v43  ;;  %2292 = vmatpush.msra.mxu3 %v6318_v21  ;;  %v1754_v43 = vpop.f32.mrf.mxu1 }
 0x5ef   :  { %2233 = vmatpush.msra.mxu0 %v4979_v13  ;;  %2253 = vmatpush.msra.mxu1 %v6320_v7  ;;  %v1795_v7 = vpop.f32.mrf.mxu2 }
 0x5f0   :  { %2273 = vmatpush.msra.mxu2 %v5011_v9  ;;  %2293 = vmatpush.msra.mxu3 %v6321_v4 }
 0x5f1   :  { %2234 = vmatpush.msra.mxu0 %v6322_v23  ;;  %2254 = vmatpush.msra.mxu1 %v6323_v59 }
 0x5f2   :  { %2274 = vmatpush.msra.mxu2 %v5018_v38  ;;  %2294 = vmatpush.msra.mxu3 %v6324_v1 }
 0x5f5   :  { %v5174_v21 = vpop.f32.mrf.mxu0  ;;  %v5178_v28 = vpop.f32.mrf.mxu3 }
 0x5f6   :  { %6331 = vst [vmem:[#allocation43_spill] sm:$0xff] %v5174_v21  ;;  %v5176_v13 = vpop.f32.mrf.mxu1 }
 0x5f7   :  { %6332 = vst [vmem:[#allocation44_spill] sm:$0xff] %v5176_v13  ;;  %v5184_v23 = vpop.f32.mrf.mxu2 }
 0x5f8   :  { %6333 = vst [vmem:[#allocation46_spill] sm:$0xff] %v5178_v28 }
 0x5f9   :  { %6336 = vst [vmem:[#allocation48_spill] sm:$0xff] %v5184_v23 }
 0x5fd   :  { %v5180_v9 = vpop.f32.mrf.mxu0  ;;  %v5186_v59 = vpop.f32.mrf.mxu3 }
 0x5fe   :  { %6334 = vst [vmem:[#allocation45_spill] sm:$0xff] %v5180_v9  ;;  %v5182_v4 = vpop.f32.mrf.mxu1 }
 0x5ff   :  { %6335 = vst [vmem:[#allocation47_spill] sm:$0xff] %v5182_v4  ;;  %v5192_v14 = vpop.f32.mrf.mxu2 }
 0x600   :  { %6337 = vst [vmem:[#allocation50_spill] sm:$0xff] %v5186_v59 }
 0x601   :  { %6340 = vst [vmem:[#allocation69_spill] sm:$0xff] %v5192_v14 }
 0x605   :  { %v5188_v38 = vpop.f32.mrf.mxu0  ;;  %v5194_v21 = vpop.f32.mrf.mxu3 }
 0x606   :  { %6338 = vst [vmem:[#allocation68_spill] sm:$0xff] %v5188_v38  ;;  %v5190_v1 = vpop.f32.mrf.mxu1 }
 0x607   :  { %6339 = vst [vmem:[#allocation58_spill] sm:$0xff] %v5190_v1  ;;  %v5200_v28 = vpop.f32.mrf.mxu2 }
 0x608   :  { %6341 = vst [vmem:[#allocation59_spill] sm:$0xff] %v5194_v21 }
 0x609   :  { %6344 = vst [vmem:[#allocation74_spill] sm:$0xff] %v5200_v28 }
 0x60d   :  { %v5196_v13 = vpop.f32.mrf.mxu0  ;;  %v5202_v9 = vpop.f32.mrf.mxu3 }
 0x60e   :  { %6342 = vst [vmem:[#allocation72_spill] sm:$0xff] %v5196_v13  ;;  %v5198_v26 = vpop.f32.mrf.mxu1 }
 0x60f   :  { %6343 = vst [vmem:[#allocation61_spill] sm:$0xff] %v5198_v26  ;;  %v5208_v59 = vpop.f32.mrf.mxu2  ;;  %v1686_v26 = vld [vmem:[#allocation9 + $0x4] sm:$0xf] }
 0x610   :  { %6345 = vst [vmem:[#allocation64_spill] sm:$0xff] %v5202_v9  ;;  %v5234_v63 = vperm.slane %v1686_v26, 3 }
 0x611   :  { %6348 = vst [vmem:[#allocation65_spill] sm:$0xff] %v5208_v59 }
 0x612   :  { %6360 = vst [vmem:[#allocation22_spill] sm:$0xff] %v5234_v63  ;;  %v1837_v60 = vadd.f32 %v1836_v37, %v5234_v63 }
 0x615   :  { %v5204_v4 = vpop.f32.mrf.mxu0  ;;  %v5210_v38 = vpop.f32.mrf.mxu3 }
 0x616   :  { %6346 = vst [vmem:[#allocation62_spill] sm:$0xff] %v5204_v4  ;;  %v5206_v23 = vpop.f32.mrf.mxu1  ;;  %v5224_v4 = vperm.slane %v1686_v26, 0 }
 0x617   :  { %6347 = vst [vmem:[#allocation63_spill] sm:$0xff] %v5206_v23  ;;  %v5216_v21 = vpop.f32.mrf.mxu2  ;;  %v5226_v23 = vperm.slane %v1686_v26, 1 }
 0x618   :  { %6349 = vst [vmem:[#allocation70_spill] sm:$0xff] %v5210_v38  ;;  %v1714_v59 = vadd.f32 %v1713_v30, %v5224_v4 }
 0x619   :  { %6352 = vst [vmem:[#allocation23_spill] sm:$0xff] %v5216_v21  ;;  %v1755_v38 = vadd.f32 %v1754_v43, %v5226_v23 }
 0x61a   :  { %6356 = vst [vmem:[#allocation71_spill] sm:$0xff] %v5224_v4 }
 0x61b   :  { %6357 = vst [vmem:[#allocation73_spill] sm:$0xff] %v5226_v23 }
 0x61d   :  { %v5212_v1 = vpop.f32.mrf.mxu0  ;;  %v5218_v13 = vpop.f32.mrf.mxu3 }
 0x61e   :  { %6350 = vst [vmem:[#allocation75_spill] sm:$0xff] %v5212_v1  ;;  %v5214_v14 = vpop.f32.mrf.mxu1 }
 0x61f   :  { %6351 = vst [vmem:[#allocation18_spill] sm:$0xff] %v5214_v14  ;;  %v5230_v1 = vpop.f32.mrf.mxu2 }
 0x620   :  { %6353 = vst [vmem:[#allocation49_spill] sm:$0xff] %v5218_v13 }
 0x621   :  { %6358 = vst [vmem:[#allocation17_spill] sm:$0xff] %v5230_v1 }
 0x646   :  { %v5220_v28 = vpop.f32.mrf.mxu0  ;;  %v5222_v9 = vpop.f32.mrf.mxu1 }
 0x647   :  { %6354 = vst [vmem:[#allocation66_spill] sm:$0xff] %v5220_v28 }
 0x648   :  { %6355 = vst [vmem:[#allocation67_spill] sm:$0xff] %v5222_v9 }
 0x64d   :  { %v5232_v14 = vpop.f32.mrf.mxu3  ;;  %v5237_v19 = vpop.f32.mrf.mxu2 }
 0x64e   :  { %6359 = vst [vmem:[#allocation19_spill] sm:$0xff] %v5232_v14  ;;  %v1942_v21 = vpop.f32.mrf.mxu0  ;;  %v1962_v54 = vpop.f32.mrf.mxu1 }
 0x64f   :  { %v2005_v13 = vadd.f32 %v1942_v21, %v1714_v59  ;;  %v2006_v15 = vadd.f32 %v1962_v54, %v1755_v38  ;;  %6361 = vst [vmem:[#allocation20_spill] sm:$0xff] %v5237_v19  ;;  %v5239_v21 = vperm.slane %v1686_v26, 2 }
 0x651   :  { %v3185_v28 = vmul.f32 -1.442695, %v2005_v13  ;;  %v3186_v9 = vmul.f32 -1.442695, %v2006_v15  ;;  %6362 = vst [vmem:[#allocation21_spill] sm:$0xff] %v5239_v21  ;;  %v1796_v15 = vadd.f32 %v1795_v7, %v5239_v21 }
 0x653   :  { %3351 = vpow2.f32 %v3185_v28 }
 0x654   :  { %3353 = vpow2.f32 %v3186_v9 }
 0x655   :  { %v2002_v30 = vpop.f32.mrf.mxu3  ;;  %v1982_v38 = vpop.f32.mrf.mxu2 }
 0x656   :  { %v2008_v43 = vadd.f32 %v2002_v30, %v1837_v60  ;;  %v2007_v28 = vadd.f32 %v1982_v38, %v1796_v15 }
 0x658   :  { %v3187_v23 = vmul.f32 -1.442695, %v2008_v43 }
 0x659   :  { %v3352_v1 = vpop.eup %3351 }
 0x65a   :  { %v3354_v4 = vpop.eup %3353  ;;  %v2012_v14 = vadd.f32 1.0, %v3352_v1  ;;  %3355 = vpow2.f32 %v3187_v23 }
 0x65b   :  { %v2031_v10 = vadd.f32 1.0, %v3354_v4 }
 0x65c   :  { %3357 = vrcp.f32 %v2012_v14  ;;  %v2024_v1 = vand.u32 2147483648, %v2012_v14  ;;  %v2022_v23 = vand.u32 2147483647, %v2012_v14  ;;  %vm2018_vm2 = vweird.f32 %v2012_v14 }
 0x65d   :  { %3359 = vrcp.f32 %v2031_v10  ;;  %v2043_v4 = vand.u32 2147483648, %v2031_v10  ;;  %v2041_v63 = vand.u32 2147483647, %v2031_v10  ;;  %vm2037_vm3 = vweird.f32 %v2031_v10 }
 0x65e   :  { %v2025_v38 = vor.u32 1.1754944e-38, %v2024_v1  ;;  %vm2023_vm5 = vcmp.eq.f32.partialorder %v2022_v23, 8.507059e+37 }
 0x65f   :  { %v2044_v21 = vor.u32 1.1754944e-38, %v2043_v4  ;;  %vm2042_vm7 = vcmp.eq.f32.partialorder %v2041_v63, 8.507059e+37 }
 0x660   :  { %v3356_v13 = vpop.eup %3355 }
 0x661   :  { %v2051_v54 = vadd.f32 1.0, %v3356_v13 }
 0x662   :  { %v3358_v9 = vpop.eup %3357 }
 0x663   :  { %v3360_v37 = vpop.eup %3359  ;;  %v2014_v59 = vmul.f32 %v3358_v9, %v2012_v14  ;;  %3361 = vrcp.f32 %v2051_v54  ;;  %vm2019_vm0 = vweird.f32 %v3358_v9  ;;  %vm2057_vm9 = vweird.f32 %v2051_v54 }
 0x664   :  { %v2033_v60 = vmul.f32 %v3360_v37, %v2031_v10  ;;  %3363 = vtanh.f32 %v2007_v28  ;;  %vm2038_vm1 = vweird.f32 %v3360_v37  ;;  %vm2020_vm4 = vmor %vm2018_vm2, %vm2019_vm0  ;;  %v2061_v14 = vand.u32 2147483647, %v2051_v54 }
 0x665   :  { %v2015_v30 = vsub.f32 1.0, %v2014_v59  ;;  %vm2039_vm6 = vmor %vm2037_vm3, %vm2038_vm1 }
 0x666   :  { %v2034_v43 = vsub.f32 1.0, %v2033_v60  ;;  %vm2062_vm11 = vcmp.eq.f32.partialorder %v2061_v14, 8.507059e+37 }
 0x667   :  { %v2016_v26 = vmul.f32 %v3358_v9, %v2015_v30 }
 0x668   :  { %v2035_v19 = vmul.f32 %v3360_v37, %v2034_v43 }
 0x669   :  { %v3362_v35 = vpop.eup %3361  ;;  %v2017_v7 = vadd.f32 %v3358_v9, %v2016_v26 }
 0x66a   :  { %v2036_v13 = vadd.f32 %v3360_v37, %v2035_v19  ;;  %v2053_v15 = vmul.f32 %v3362_v35, %v2051_v54  ;;  %v3364_v28 = vpop.eup %3363  ;;  %vm2058_vm8 = vweird.f32 %v3362_v35  ;;  %v2063_v19 = vand.u32 2147483648, %v2051_v54 }
 0x66b   :  { %v2021_v59 = vsel %vm2020_vm4, %v3358_v9, %v2017_v7  ;;  %vm2059_vm10 = vmor %vm2057_vm9, %vm2058_vm8 }
 0x66c   :  { %v2026_v60 = vsel %vm2023_vm5, %v2025_v38, %v2021_v59  ;;  %v2040_v30 = vsel %vm2039_vm6, %v3360_v37, %v2036_v13  ;;  %v2054_v11 = vsub.f32 1.0, %v2053_v15  ;;  %v2064_v1 = vor.u32 1.1754944e-38, %v2063_v19  ;;  %v6395_v59 = vld [vmem:[#allocation21_spill] sm:$0xff] }
 0x66d   :  { %v2045_v43 = vsel %vm2042_vm7, %v2044_v21, %v2040_v30  ;;  %v2068_v25 = vmul.f32 %v3364_v28, %v2026_v60  ;;  %v6396_v28 = vld [vmem:[#allocation48_spill] sm:$0xff] }
 0x66e   :  { %v2067_v48 = vmul.f32 0.0, %v2045_v43  ;;  %v2055_v6 = vmul.f32 %v3362_v35, %v2054_v11  ;;  %v1799_v60 = vadd.f32 %v6396_v28, %v6395_v59  ;;  %v5378_v28 = vld [vmem:[#allocation8 + $0x378] sm:$0xff] }
 0x670   :  { %v5242_v26 = vadd.f32 %v2068_v25, %v2067_v48  ;;  %v2056_v10 = vadd.f32 %v3362_v35, %v2055_v6  ;;  %v6392_v48 = vld [vmem:[#allocation44_spill] sm:$0xff] }
 0x672   :  { %3365 = vtanh.f32 %v5242_v26  ;;  %v2060_v9 = vsel %vm2059_vm10, %v3362_v35, %v2056_v10 }
 0x673   :  { %v2065_v63 = vsel %vm2062_vm11, %v2064_v1, %v2060_v9 }
 0x678   :  { %v3366_v37 = vpop.eup %3365 }
 0x679   :  { %v2071_v4 = vmul.f32 %v3366_v37, %v2065_v63 }
 0x67b   :  { %2088 = vmatmul.f32.vlgmr.msrb.gmra.mxu0 %v2071_v4  ;;  %2108 = vmatmul.f32.vlgmr.msrb.gmra.mxu1 %v2071_v4 }
 0x67c   :  { %2128 = vmatmul.f32.vlgmr.msrb.gmra.mxu2 %v2071_v4  ;;  %2148 = vmatmul.f32.vlgmr.msrb.gmra.mxu3 %v2071_v4 }
 0x67d   :  { %2366 = vmatpush.msrb.mxu0 %v6325_v32  ;;  %2386 = vmatpush.msrb.mxu1 %v4801_v3  ;;  %v6363_v3 = vld [vmem:[#allocation24_spill] sm:$0xff] }
 0x67e   :  { %2406 = vmatpush.msrb.mxu2 %v4835_v18  ;;  %2426 = vmatpush.msrb.mxu3 %v4809_v42  ;;  %v6365_v42 = vld [vmem:[#allocation54_spill] sm:$0xff]  ;;  %v6367_v18 = vld [vmem:[#allocation27_spill] sm:$0xff] }
 0x67f   :  { %2367 = vmatpush.msrb.mxu0 %v4803_v24  ;;  %2387 = vmatpush.msrb.mxu1 %v6326_v16  ;;  %v6364_v24 = vld [vmem:[#allocation52_spill] sm:$0xff]  ;;  %v6393_v16 = vld [vmem:[#allocation22_spill] sm:$0xff] }
 0x680   :  { %2407 = vmatpush.msrb.mxu2 %v4838_v8  ;;  %2427 = vmatpush.msrb.mxu3 %v6327_v44  ;;  %v6368_v8 = vld [vmem:[#allocation55_spill] sm:$0xff]  ;;  %v6394_v44 = vld [vmem:[#allocation46_spill] sm:$0xff] }
 0x681   :  { %2368 = vmatpush.msrb.mxu0 %v4812_v22  ;;  %2388 = vmatpush.msrb.mxu1 %v6328_v57  ;;  %v6366_v22 = vld [vmem:[#allocation53_spill] sm:$0xff]  ;;  %v1840_v57 = vadd.f32 %v6394_v44, %v6393_v16  ;;  %v5345_v44 = vld [vmem:[#allocation8 + $0x3a0] sm:$0xff] }
 0x682   :  { %2408 = vmatpush.msrb.mxu2 %v4843_v29  ;;  %2428 = vmatpush.msrb.mxu3 %v6329_v51  ;;  %v6369_v29 = vld [vmem:[#allocation56_spill] sm:$0xff] }
 0x683   :  { %2369 = vmatpush.msrb.mxu0 %v6330_v5  ;;  %2389 = vmatpush.msrb.mxu1 %v4847_v20  ;;  %v6370_v20 = vld [vmem:[#allocation57_spill] sm:$0xff] }
 0x684   :  { %2409 = vmatpush.msrb.mxu2 %v4859_v27  ;;  %2429 = vmatpush.msrb.mxu3 %v4857_v17  ;;  %v6373_v17 = vld [vmem:[#allocation26_spill] sm:$0xff]  ;;  %v6374_v27 = vld [vmem:[#allocation25_spill] sm:$0xff] }
 0x685   :  { %2370 = vmatpush.msrb.mxu0 %v4850_v56  ;;  %2390 = vmatpush.msrb.mxu1 %v4855_v2  ;;  %v6371_v56 = vld [vmem:[#allocation31_spill] sm:$0xff]  ;;  %v6372_v2 = vld [vmem:[#allocation60_spill] sm:$0xff] }
 0x686   :  { %2410 = vmatpush.msrb.mxu2 %v4867_v39  ;;  %2430 = vmatpush.msrb.mxu3 %v4865_v61  ;;  %v6375_v61 = vld [vmem:[#allocation35_spill] sm:$0xff]  ;;  %v6376_v39 = vld [vmem:[#allocation28_spill] sm:$0xff] }
 0x687   :  { %2371 = vmatpush.msrb.mxu0 %v4875_v31  ;;  %2391 = vmatpush.msrb.mxu1 %v4877_v33  ;;  %v6377_v31 = vld [vmem:[#allocation30_spill] sm:$0xff]  ;;  %v6378_v33 = vld [vmem:[#allocation29_spill] sm:$0xff] }
 0x688   :  { %2411 = vmatpush.msrb.mxu2 %v4883_v36  ;;  %2431 = vmatpush.msrb.mxu3 %v4879_v34  ;;  %v6379_v34 = vld [vmem:[#allocation38_spill] sm:$0xff]  ;;  %v6380_v36 = vld [vmem:[#allocation33_spill] sm:$0xff] }
 0x689   :  { %2372 = vmatpush.msrb.mxu0 %v4885_v53  ;;  %2392 = vmatpush.msrb.mxu1 %v4887_v40  ;;  %v6381_v53 = vld [vmem:[#allocation32_spill] sm:$0xff]  ;;  %v6382_v40 = vld [vmem:[#allocation34_spill] sm:$0xff] }
 0x68a   :  { %2412 = vmatpush.msrb.mxu2 %v4895_v41  ;;  %2432 = vmatpush.msrb.mxu3 %v4890_v46  ;;  %v6383_v46 = vld [vmem:[#allocation41_spill] sm:$0xff]  ;;  %v6384_v41 = vld [vmem:[#allocation39_spill] sm:$0xff] }
 0x68b   :  { %2373 = vmatpush.msrb.mxu0 %v4897_v45  ;;  %2393 = vmatpush.msrb.mxu1 %v4899_v47  ;;  %v6385_v45 = vld [vmem:[#allocation36_spill] sm:$0xff]  ;;  %v6386_v47 = vld [vmem:[#allocation37_spill] sm:$0xff] }
 0x68c   :  { %2413 = vmatpush.msrb.mxu2 %v4929_v12  ;;  %2433 = vmatpush.msrb.mxu3 %v4909_v50  ;;  %v6389_v50 = vld [vmem:[#allocation71_spill] sm:$0xff] }
 0x68d   :  { %2374 = vmatpush.msrb.mxu0 %v4905_v58  ;;  %2394 = vmatpush.msrb.mxu1 %v4907_v0  ;;  %v6387_v58 = vld [vmem:[#allocation42_spill] sm:$0xff]  ;;  %v6388_v0 = vld [vmem:[#allocation40_spill] sm:$0xff] }
 0x68e   :  { %2414 = vmatpush.msrb.mxu2 %v4935_v52  ;;  %2434 = vmatpush.msrb.mxu3 %v4916_v49  ;;  %v6391_v49 = vld [vmem:[#allocation73_spill] sm:$0xff] }
 0x68f   :  { %2375 = vmatpush.msrb.mxu0 %v4912_v55  ;;  %2395 = vmatpush.msrb.mxu1 %v4914_v62  ;;  %v6390_v55 = vld [vmem:[#allocation43_spill] sm:$0xff]  ;;  %v1758_v25 = vadd.f32 %v6392_v48, %v6391_v49 }
 0x690   :  { %2415 = vmatpush.msrb.mxu2 %v6363_v3  ;;  %2435 = vmatpush.msrb.mxu3 %v6364_v24  ;;  %v1717_v62 = vadd.f32 %v6390_v55, %v6389_v50 }
 0x691   :  { %2376 = vmatpush.msrb.mxu0 %v6365_v42  ;;  %2396 = vmatpush.msrb.mxu1 %v6366_v22 }
 0x692   :  { %2416 = vmatpush.msrb.mxu2 %v6367_v18  ;;  %2436 = vmatpush.msrb.mxu3 %v6368_v8 }
 0x693   :  { %2377 = vmatpush.msrb.mxu0 %v6369_v29  ;;  %2397 = vmatpush.msrb.mxu1 %v6370_v20 }
 0x694   :  { %2417 = vmatpush.msrb.mxu2 %v6371_v56  ;;  %2437 = vmatpush.msrb.mxu3 %v6372_v2 }
 0x695   :  { %2378 = vmatpush.msrb.mxu0 %v6373_v17  ;;  %2398 = vmatpush.msrb.mxu1 %v6374_v27 }
 0x696   :  { %2418 = vmatpush.msrb.mxu2 %v6375_v61  ;;  %2438 = vmatpush.msrb.mxu3 %v6376_v39 }
 0x697   :  { %2379 = vmatpush.msrb.mxu0 %v6377_v31  ;;  %2399 = vmatpush.msrb.mxu1 %v6378_v33 }
 0x698   :  { %2419 = vmatpush.msrb.mxu2 %v6379_v34  ;;  %2439 = vmatpush.msrb.mxu3 %v6380_v36 }
 0x699   :  { %2380 = vmatpush.msrb.mxu0 %v6381_v53  ;;  %2400 = vmatpush.msrb.mxu1 %v6382_v40 }
 0x69a   :  { %2420 = vmatpush.msrb.mxu2 %v6383_v46  ;;  %2440 = vmatpush.msrb.mxu3 %v6384_v41 }
 0x69b   :  { %2381 = vmatpush.msrb.mxu0 %v6385_v45  ;;  %2401 = vmatpush.msrb.mxu1 %v6386_v47 }
 0x69c   :  { %2421 = vmatpush.msrb.mxu2 %v6387_v58  ;;  %2441 = vmatpush.msrb.mxu3 %v6388_v0 }
 0x6f8   :  { %v2089_v11 = vpop.f32.mrf.mxu0  ;;  %v2109_v12 = vpop.f32.mrf.mxu1 }
 0x6f9   :  { %v2152_v52 = vadd.f32 %v2089_v11, %v1717_v62  ;;  %v2153_v6 = vadd.f32 %v2109_v12, %v1758_v25  ;;  %v5324_v25 = vld [vmem:[#allocation8 + $0x3e8] sm:$0xff]  ;;  %v5327_v11 = vld [vmem:[#allocation8 + $0x3f0] sm:$0xff]  ;;  %v5330_v12 = vld [vmem:[#allocation8 + $0x3f8] sm:$0xff] }
 0x6fb   :  { %v3188_v35 = vmul.f32 -1.442695, %v2152_v52  ;;  %v3189_v32 = vmul.f32 -1.442695, %v2153_v6  ;;  %v5333_v52 = vld [vmem:[#allocation8 + $0x3c0] sm:$0xff]  ;;  %v5336_v6 = vld [vmem:[#allocation8 + $0x3c8] sm:$0xff] }
 0x6fd   :  { %3367 = vpow2.f32 %v3188_v35  ;;  %v5339_v35 = vld [vmem:[#allocation8 + $0x3d0] sm:$0xff] }
 0x6fe   :  { %3369 = vpow2.f32 %v3189_v32  ;;  %v5342_v32 = vld [vmem:[#allocation8 + $0x3d8] sm:$0xff] }
 0x6ff   :  { %v2149_v51 = vpop.f32.mrf.mxu3  ;;  %v2129_v13 = vpop.f32.mrf.mxu2 }
 0x700   :  { %v2155_v5 = vadd.f32 %v2149_v51, %v1840_v57  ;;  %v2154_v10 = vadd.f32 %v2129_v13, %v1799_v60  ;;  %v5348_v57 = vld [vmem:[#allocation8 + $0x3a8] sm:$0xff]  ;;  %v5351_v51 = vld [vmem:[#allocation8 + $0x3b0] sm:$0xff]  ;;  %v5381_v60 = vld [vmem:[#allocation8 + $0x340] sm:$0xff] }
 0x701   :  { %v5372_v13 = vld [vmem:[#allocation8 + $0x368] sm:$0xff] }
 0x702   :  { %v3190_v21 = vmul.f32 -1.442695, %v2155_v5  ;;  %v5354_v5 = vld [vmem:[#allocation8 + $0x3b8] sm:$0xff] }
 0x703   :  { %v3368_v54 = vpop.eup %3367 }
 0x704   :  { %v3370_v23 = vpop.eup %3369  ;;  %v2159_v7 = vadd.f32 1.0, %v3368_v54  ;;  %3371 = vpow2.f32 %v3190_v21  ;;  %v5357_v21 = vld [vmem:[#allocation8 + $0x380] sm:$0xff]  ;;  %v5360_v54 = vld [vmem:[#allocation8 + $0x388] sm:$0xff] }
 0x705   :  { %v2178_v38 = vadd.f32 1.0, %v3370_v23  ;;  %v5363_v23 = vld [vmem:[#allocation8 + $0x390] sm:$0xff] }
 0x706   :  { %3373 = vrcp.f32 %v2159_v7  ;;  %v2171_v63 = vand.u32 2147483648, %v2159_v7  ;;  %v2169_v24 = vand.u32 2147483647, %v2159_v7  ;;  %vm2165_vm14 = vweird.f32 %v2159_v7 }
 0x707   :  { %3375 = vrcp.f32 %v2178_v38  ;;  %v2190_v4 = vand.u32 2147483648, %v2178_v38  ;;  %v2188_v22 = vand.u32 2147483647, %v2178_v38  ;;  %vm2184_vm15 = vweird.f32 %v2178_v38 }
 0x708   :  { %v2172_v29 = vor.u32 1.1754944e-38, %v2171_v63  ;;  %vm2170_vm2 = vcmp.eq.f32.partialorder %v2169_v24, 8.507059e+37  ;;  %v5408_v63 = vld [vmem:[#allocation8 + $0x308] sm:$0xff]  ;;  %v5417_v24 = vld [vmem:[#allocation8 + $0x2e0] sm:$0xff] }
 0x709   :  { %v2191_v2 = vor.u32 1.1754944e-38, %v2190_v4  ;;  %vm2189_vm3 = vcmp.eq.f32.partialorder %v2188_v22, 8.507059e+37  ;;  %v5411_v4 = vld [vmem:[#allocation8 + $0x310] sm:$0xff] }
 0x70a   :  { %v3372_v15 = vpop.eup %3371  ;;  %v5423_v22 = vld [vmem:[#allocation8 + $0x2f0] sm:$0xff] }
 0x70b   :  { %v2198_v30 = vadd.f32 1.0, %v3372_v15  ;;  %v5375_v15 = vld [vmem:[#allocation8 + $0x370] sm:$0xff] }
 0x70c   :  { %v3374_v43 = vpop.eup %3373 }
 0x70d   :  { %v3376_v19 = vpop.eup %3375  ;;  %v2161_v14 = vmul.f32 %v3374_v43, %v2159_v7  ;;  %3377 = vrcp.f32 %v2198_v30  ;;  %vm2166_vm12 = vweird.f32 %v3374_v43  ;;  %v2210_v41 = vand.u32 2147483648, %v2198_v30  ;;  %v5366_v7 = vld [vmem:[#allocation8 + $0x398] sm:$0xff] }
 0x70e   :  { %v2180_v9 = vmul.f32 %v3376_v19, %v2178_v38  ;;  %3379 = vtanh.f32 %v2154_v10  ;;  %vm2185_vm13 = vweird.f32 %v3376_v19  ;;  %vm2167_vm0 = vmor %vm2165_vm14, %vm2166_vm12  ;;  %vm2204_vm5 = vweird.f32 %v2198_v30  ;;  %v5369_v38 = vld [vmem:[#allocation8 + $0x360] sm:$0xff]  ;;  %v5390_v10 = vld [vmem:[#allocation8 + $0x358] sm:$0xff] }
 0x70f   :  { %v2162_v1 = vsub.f32 1.0, %v2161_v14  ;;  %vm2186_vm1 = vmor %vm2184_vm15, %vm2185_vm13  ;;  %v2208_v45 = vand.u32 2147483647, %v2198_v30  ;;  %v2211_v0 = vor.u32 1.1754944e-38, %v2210_v41  ;;  %v5396_v14 = vld [vmem:[#allocation8 + $0x328] sm:$0xff]  ;;  %v5474_v41 = vld [vmem:[#allocation8 + $0x278] sm:$0xff] }
 0x710   :  { %v2181_v37 = vsub.f32 1.0, %v2180_v9  ;;  %v5399_v9 = vld [vmem:[#allocation8 + $0x330] sm:$0xff]  ;;  %6410 = vst [vmem:[#allocation35_spill] sm:$0xff] %v5474_v41 }
 0x711   :  { %v2163_v3 = vmul.f32 %v3374_v43, %v2162_v1  ;;  %vm2209_vm7 = vcmp.eq.f32.partialorder %v2208_v45, 8.507059e+37  ;;  %v5402_v1 = vld [vmem:[#allocation8 + $0x338] sm:$0xff]  ;;  %v5477_v45 = vld [vmem:[#allocation8 + $0x240] sm:$0xff] }
 0x712   :  { %v2182_v42 = vmul.f32 %v3376_v19, %v2181_v37  ;;  %v5405_v37 = vld [vmem:[#allocation8 + $0x300] sm:$0xff]  ;;  %6411 = vst [vmem:[#allocation28_spill] sm:$0xff] %v5477_v45 }
 0x713   :  { %v3378_v18 = vpop.eup %3377  ;;  %v2164_v8 = vadd.f32 %v3374_v43, %v2163_v3  ;;  %v5414_v3 = vld [vmem:[#allocation8 + $0x318] sm:$0xff] }
 0x714   :  { %v2183_v20 = vadd.f32 %v3376_v19, %v2182_v42  ;;  %v2200_v56 = vmul.f32 %v3378_v18, %v2198_v30  ;;  %v3380_v27 = vpop.eup %3379  ;;  %vm2205_vm4 = vweird.f32 %v3378_v18  ;;  %v5384_v30 = vld [vmem:[#allocation8 + $0x348] sm:$0xff] }
 0x715   :  { %v2168_v17 = vsel %vm2167_vm0, %v3374_v43, %v2164_v8  ;;  %vm2206_vm6 = vmor %vm2204_vm5, %vm2205_vm4  ;;  %v5387_v43 = vld [vmem:[#allocation8 + $0x350] sm:$0xff]  ;;  %v5420_v42 = vld [vmem:[#allocation8 + $0x2e8] sm:$0xff] }
 0x716   :  { %v2173_v61 = vsel %vm2170_vm2, %v2172_v29, %v2168_v17  ;;  %v2187_v39 = vsel %vm2186_vm1, %v3376_v19, %v2183_v20  ;;  %v2201_v31 = vsub.f32 1.0, %v2200_v56  ;;  %v5393_v19 = vld [vmem:[#allocation8 + $0x320] sm:$0xff]  ;;  %v5432_v29 = vld [vmem:[#allocation8 + $0x2c8] sm:$0xff]  ;;  %v5435_v20 = vld [vmem:[#allocation8 + $0x2d0] sm:$0xff] }
 0x717   :  { %v2192_v33 = vsel %vm2189_vm3, %v2191_v2, %v2187_v39  ;;  %v2215_v34 = vmul.f32 %v3380_v27, %v2173_v61  ;;  %v5429_v8 = vld [vmem:[#allocation8 + $0x2c0] sm:$0xff]  ;;  %6397 = vst [vmem:[#allocation51_spill] sm:$0xff] %v5435_v20  ;;  %v5438_v56 = vld [vmem:[#allocation8 + $0x2d8] sm:$0xff]  ;;  %v5444_v17 = vld [vmem:[#allocation8 + $0x2a8] sm:$0xff] }
 0x718   :  { %v2214_v36 = vmul.f32 %v2192_v33, %v5242_v26  ;;  %v2202_v53 = vmul.f32 %v3378_v18, %v2201_v31  ;;  %v5321_v26 = vld [vmem:[#allocation8 + $0x3e0] sm:$0xff]  ;;  %6398 = vst [vmem:[#allocation24_spill] sm:$0xff] %v5438_v56  ;;  %v5447_v27 = vld [vmem:[#allocation8 + $0x2b0] sm:$0xff]  ;;  %v5450_v61 = vld [vmem:[#allocation8 + $0x2b8] sm:$0xff] }
 0x719   :  { %v5441_v2 = vld [vmem:[#allocation8 + $0x2a0] sm:$0xff]  ;;  %6400 = vst [vmem:[#allocation54_spill] sm:$0xff] %v5444_v17  ;;  %v5456_v31 = vld [vmem:[#allocation8 + $0x288] sm:$0xff]  ;;  %v5459_v33 = vld [vmem:[#allocation8 + $0x290] sm:$0xff] }
 0x71a   :  { %v5318_v40 = vadd.f32 %v2215_v34, %v2214_v36  ;;  %v2203_v46 = vadd.f32 %v3378_v18, %v2202_v53  ;;  %6399 = vst [vmem:[#allocation52_spill] sm:$0xff] %v5441_v2  ;;  %v5453_v39 = vld [vmem:[#allocation8 + $0x280] sm:$0xff]  ;;  %v5462_v34 = vld [vmem:[#allocation8 + $0x298] sm:$0xff]  ;;  %v5468_v53 = vld [vmem:[#allocation8 + $0x268] sm:$0xff] }
 0x71b   :  { %6401 = vst [vmem:[#allocation53_spill] sm:$0xff] %v5447_v27  ;;  %v5465_v36 = vld [vmem:[#allocation8 + $0x260] sm:$0xff] }
 0x71c   :  { %3381 = vtanh.f32 %v5318_v40  ;;  %v2207_v47 = vsel %vm2206_vm6, %v3378_v18, %v2203_v46  ;;  %v5426_v18 = vld [vmem:[#allocation8 + $0x2f8] sm:$0xff]  ;;  %6402 = vst [vmem:[#allocation27_spill] sm:$0xff] %v5450_v61  ;;  %v5471_v46 = vld [vmem:[#allocation8 + $0x270] sm:$0xff] }
 0x71d   :  { %v2212_v62 = vsel %vm2209_vm7, %v2211_v0, %v2207_v47  ;;  %6403 = vst [vmem:[#allocation55_spill] sm:$0xff] %v5453_v39  ;;  %v5480_v47 = vld [vmem:[#allocation8 + $0x248] sm:$0xff]  ;;  %v5483_v0 = vld [vmem:[#allocation8 + $0x250] sm:$0xff] }
 0x71e   :  { %6404 = vst [vmem:[#allocation56_spill] sm:$0xff] %v5456_v31 }
 0x71f   :  { %6405 = vst [vmem:[#allocation57_spill] sm:$0xff] %v5459_v33 }
 0x720   :  { %6406 = vst [vmem:[#allocation31_spill] sm:$0xff] %v5462_v34 }
 0x721   :  { %6407 = vst [vmem:[#allocation60_spill] sm:$0xff] %v5465_v36 }
 0x722   :  { %v3382_v55 = vpop.eup %3381  ;;  %6408 = vst [vmem:[#allocation26_spill] sm:$0xff] %v5468_v53 }
 0x723   :  { %v2218_v48 = vmul.f32 %v3382_v55, %v2212_v62  ;;  %6409 = vst [vmem:[#allocation25_spill] sm:$0xff] %v5471_v46  ;;  %v5486_v55 = vld [vmem:[#allocation8 + $0x258] sm:$0xff]  ;;  %v5489_v62 = vld [vmem:[#allocation8 + $0x220] sm:$0xff] }
 0x724   :  { %6412 = vst [vmem:[#allocation30_spill] sm:$0xff] %v5480_v47 }
 0x725   :  { %2235 = vmatmul.f32.vlgmr.msra.gmra.mxu0 %v2218_v48  ;;  %2255 = vmatmul.f32.vlgmr.msra.gmra.mxu1 %v2218_v48  ;;  %6413 = vst [vmem:[#allocation29_spill] sm:$0xff] %v5483_v0 }
 0x726   :  { %2275 = vmatmul.f32.vlgmr.msra.gmra.mxu2 %v2218_v48  ;;  %2295 = vmatmul.f32.vlgmr.msra.gmra.mxu3 %v2218_v48  ;;  %6414 = vst [vmem:[#allocation38_spill] sm:$0xff] %v5486_v55  ;;  %v5492_v48 = vld [vmem:[#allocation8 + $0x228] sm:$0xff] }
 0x727   :  { %2513 = vmatpush.msra.mxu0 %v5321_v26  ;;  %2533 = vmatpush.msra.mxu1 %v5324_v25  ;;  %6415 = vst [vmem:[#allocation33_spill] sm:$0xff] %v5489_v62 }
 0x728   :  { %2553 = vmatpush.msra.mxu2 %v5327_v11  ;;  %2573 = vmatpush.msra.mxu3 %v5330_v12  ;;  %6416 = vst [vmem:[#allocation32_spill] sm:$0xff] %v5492_v48 }
 0x729   :  { %2514 = vmatpush.msra.mxu0 %v5333_v52  ;;  %2534 = vmatpush.msra.mxu1 %v5336_v6 }
 0x72a   :  { %2554 = vmatpush.msra.mxu2 %v5339_v35  ;;  %2574 = vmatpush.msra.mxu3 %v5342_v32 }
 0x72b   :  { %2515 = vmatpush.msra.mxu0 %v5345_v44  ;;  %2535 = vmatpush.msra.mxu1 %v5348_v57 }
 0x72c   :  { %2555 = vmatpush.msra.mxu2 %v5351_v51  ;;  %2575 = vmatpush.msra.mxu3 %v5354_v5 }
 0x72d   :  { %2516 = vmatpush.msra.mxu0 %v5357_v21  ;;  %2536 = vmatpush.msra.mxu1 %v5360_v54 }
 0x72e   :  { %2556 = vmatpush.msra.mxu2 %v5363_v23  ;;  %2576 = vmatpush.msra.mxu3 %v5366_v7 }
 0x72f   :  { %2517 = vmatpush.msra.mxu0 %v5369_v38  ;;  %2537 = vmatpush.msra.mxu1 %v5372_v13 }
 0x730   :  { %2557 = vmatpush.msra.mxu2 %v5375_v15  ;;  %2577 = vmatpush.msra.mxu3 %v5378_v28 }
 0x731   :  { %2518 = vmatpush.msra.mxu0 %v5381_v60  ;;  %2538 = vmatpush.msra.mxu1 %v5384_v30 }
 0x732   :  { %2558 = vmatpush.msra.mxu2 %v5387_v43  ;;  %2578 = vmatpush.msra.mxu3 %v5390_v10 }
 0x733   :  { %2519 = vmatpush.msra.mxu0 %v5393_v19  ;;  %2539 = vmatpush.msra.mxu1 %v5396_v14 }
 0x734   :  { %2559 = vmatpush.msra.mxu2 %v5399_v9  ;;  %2579 = vmatpush.msra.mxu3 %v5402_v1 }
 0x735   :  { %2520 = vmatpush.msra.mxu0 %v5405_v37  ;;  %2540 = vmatpush.msra.mxu1 %v5408_v63 }
 0x736   :  { %2560 = vmatpush.msra.mxu2 %v5411_v4  ;;  %2580 = vmatpush.msra.mxu3 %v5414_v3 }
 0x737   :  { %2521 = vmatpush.msra.mxu0 %v5417_v24  ;;  %2541 = vmatpush.msra.mxu1 %v5420_v42 }
 0x738   :  { %2561 = vmatpush.msra.mxu2 %v5423_v22  ;;  %2581 = vmatpush.msra.mxu3 %v5426_v18 }
 0x739   :  { %2522 = vmatpush.msra.mxu0 %v5429_v8  ;;  %2542 = vmatpush.msra.mxu1 %v5432_v29 }
 0x73a   :  { %2562 = vmatpush.msra.mxu2 %v5435_v20  ;;  %2582 = vmatpush.msra.mxu3 %v5438_v56 }
 0x73b   :  { %2523 = vmatpush.msra.mxu0 %v5441_v2  ;;  %2543 = vmatpush.msra.mxu1 %v5444_v17 }
 0x73c   :  { %2563 = vmatpush.msra.mxu2 %v5447_v27  ;;  %2583 = vmatpush.msra.mxu3 %v5450_v61 }
 0x73d   :  { %2524 = vmatpush.msra.mxu0 %v5453_v39  ;;  %2544 = vmatpush.msra.mxu1 %v5456_v31 }
 0x73e   :  { %2564 = vmatpush.msra.mxu2 %v5459_v33  ;;  %2584 = vmatpush.msra.mxu3 %v5462_v34 }
 0x73f   :  { %2525 = vmatpush.msra.mxu0 %v5465_v36  ;;  %2545 = vmatpush.msra.mxu1 %v5468_v53 }
 0x740   :  { %2565 = vmatpush.msra.mxu2 %v5471_v46  ;;  %2585 = vmatpush.msra.mxu3 %v5474_v41  ;;  %v6423_v41 = vld [vmem:[#allocation47_spill] sm:$0xff] }
 0x741   :  { %2526 = vmatpush.msra.mxu0 %v5477_v45  ;;  %2546 = vmatpush.msra.mxu1 %v5480_v47  ;;  %v5495_v45 = vld [vmem:[#allocation8 + $0x230] sm:$0xff]  ;;  %v5498_v47 = vld [vmem:[#allocation8 + $0x238] sm:$0xff] }
 0x742   :  { %2566 = vmatpush.msra.mxu2 %v5483_v0  ;;  %2586 = vmatpush.msra.mxu3 %v5486_v55  ;;  %6417 = vst [vmem:[#allocation34_spill] sm:$0xff] %v5495_v45  ;;  %v5501_v0 = vld [vmem:[#allocation8 + $0x200] sm:$0xff]  ;;  %v5504_v55 = vld [vmem:[#allocation8 + $0x208] sm:$0xff] }
 0x743   :  { %2527 = vmatpush.msra.mxu0 %v5489_v62  ;;  %2547 = vmatpush.msra.mxu1 %v5492_v48  ;;  %6418 = vst [vmem:[#allocation41_spill] sm:$0xff] %v5498_v47  ;;  %v5508_v62 = vld [vmem:[#allocation8 + $0x218] sm:$0xff] }
 0x744   :  { %2567 = vmatpush.msra.mxu2 %v5495_v45  ;;  %2587 = vmatpush.msra.mxu3 %v5498_v47  ;;  %6419 = vst [vmem:[#allocation39_spill] sm:$0xff] %v5501_v0  ;;  %v6422_v45 = vld [vmem:[#allocation45_spill] sm:$0xff]  ;;  %v1761_v47 = vadd.f32 %v6423_v41, %v6391_v49 }
 0x745   :  { %2528 = vmatpush.msra.mxu0 %v5501_v0  ;;  %6420 = vst [vmem:[#allocation36_spill] sm:$0xff] %v5504_v55  ;;  %2548 = vmatpush.msra.mxu1 %v5504_v55  ;;  %v1720_v48 = vadd.f32 %v6422_v45, %v6389_v50  ;;  %v6424_v55 = vld [vmem:[#allocation50_spill] sm:$0xff] }
 0x746   :  { %2568 = vmatpush.msra.mxu2 %v6387_v58  ;;  %6421 = vst [vmem:[#allocation37_spill] sm:$0xff] %v5508_v62  ;;  %2588 = vmatpush.msra.mxu3 %v5508_v62  ;;  %v1843_v58 = vadd.f32 %v6424_v55, %v6393_v16 }
 0x7a2   :  { %v2236_v46 = vpop.f32.mrf.mxu0  ;;  %v2256_v53 = vpop.f32.mrf.mxu1 }
 0x7a3   :  { %v2299_v36 = vadd.f32 %v2236_v46, %v1720_v48  ;;  %v2300_v0 = vadd.f32 %v2256_v53, %v1761_v47 }
 0x7a5   :  { %v3191_v34 = vmul.f32 -1.442695, %v2299_v36  ;;  %v3192_v33 = vmul.f32 -1.442695, %v2300_v0  ;;  %v6425_v36 = vld [vmem:[#allocation69_spill] sm:$0xff] }
 0x7a6   :  { %v1802_v53 = vadd.f32 %v6425_v36, %v6395_v59 }
 0x7a7   :  { %3383 = vpow2.f32 %v3191_v34 }
 0x7a8   :  { %3385 = vpow2.f32 %v3192_v33 }
 0x7a9   :  { %v2296_v31 = vpop.f32.mrf.mxu3  ;;  %v2276_v41 = vpop.f32.mrf.mxu2 }
 0x7aa   :  { %v2302_v39 = vadd.f32 %v2296_v31, %v1843_v58  ;;  %v2301_v0 = vadd.f32 %v2276_v41, %v1802_v53 }
 0x7ac   :  { %v3193_v62 = vmul.f32 -1.442695, %v2302_v39 }
 0x7ad   :  { %v3384_v61 = vpop.eup %3383 }
 0x7ae   :  { %v3386_v27 = vpop.eup %3385  ;;  %v2306_v45 = vadd.f32 1.0, %v3384_v61  ;;  %3387 = vpow2.f32 %v3193_v62 }
 0x7af   :  { %v2325_v50 = vadd.f32 1.0, %v3386_v27 }
 0x7b0   :  { %3389 = vrcp.f32 %v2306_v45  ;;  %v2318_v58 = vand.u32 2147483648, %v2306_v45  ;;  %v2316_v62 = vand.u32 2147483647, %v2306_v45  ;;  %vm2312_vm10 = vweird.f32 %v2306_v45 }
 0x7b1   :  { %3391 = vrcp.f32 %v2325_v50  ;;  %v2337_v61 = vand.u32 2147483648, %v2325_v50  ;;  %v2335_v49 = vand.u32 2147483647, %v2325_v50  ;;  %vm2331_vm11 = vweird.f32 %v2325_v50 }
 0x7b2   :  { %v2319_v41 = vor.u32 1.1754944e-38, %v2318_v58  ;;  %vm2317_vm14 = vcmp.eq.f32.partialorder %v2316_v62, 8.507059e+37 }
 0x7b3   :  { %vm2336_vm15 = vcmp.eq.f32.partialorder %v2335_v49, 8.507059e+37 }
 0x7b4   :  { %v3388_v46 = vpop.eup %3387 }
 0x7b5   :  { %v2345_v34 = vadd.f32 1.0, %v3388_v46 }
 0x7b6   :  { %v3390_v47 = vpop.eup %3389 }
 0x7b7   :  { %v3392_v55 = vpop.eup %3391  ;;  %v2308_v33 = vmul.f32 %v3390_v47, %v2306_v45  ;;  %3393 = vrcp.f32 %v2345_v34  ;;  %vm2313_vm8 = vweird.f32 %v3390_v47  ;;  %vm2351_vm1 = vweird.f32 %v2345_v34 }
 0x7b8   :  { %v2327_v31 = vmul.f32 %v3392_v55, %v2325_v50  ;;  %3395 = vtanh.f32 %v2301_v0  ;;  %vm2332_vm9 = vweird.f32 %v3392_v55  ;;  %vm2314_vm12 = vmor %vm2312_vm10, %vm2313_vm8 }
 0x7b9   :  { %v2309_v39 = vsub.f32 1.0, %v2308_v33  ;;  %vm2333_vm13 = vmor %vm2331_vm11, %vm2332_vm9  ;;  %v2338_v33 = vor.u32 1.1754944e-38, %v2337_v61 }
 0x7ba   :  { %v2328_v48 = vsub.f32 1.0, %v2327_v31 }
 0x7bb   :  { %v2310_v27 = vmul.f32 %v3390_v47, %v2309_v39 }
 0x7bc   :  { %v2329_v16 = vmul.f32 %v3392_v55, %v2328_v48 }
 0x7bd   :  { %v3394_v17 = vpop.eup %3393  ;;  %v2311_v36 = vadd.f32 %v3390_v47, %v2310_v27 }
 0x7be   :  { %v2330_v46 = vadd.f32 %v3392_v55, %v2329_v16  ;;  %v2347_v53 = vmul.f32 %v3394_v17, %v2345_v34  ;;  %v3396_v0 = vpop.eup %3395  ;;  %vm2352_vm0 = vweird.f32 %v3394_v17  ;;  %v2357_v16 = vand.u32 2147483648, %v2345_v34 }
 0x7bf   :  { %v2315_v31 = vsel %vm2314_vm12, %v3390_v47, %v2311_v36  ;;  %v2355_v47 = vand.u32 2147483647, %v2345_v34  ;;  %vm2353_vm2 = vmor %vm2351_vm1, %vm2352_vm0  ;;  %v6432_v34 = vld [vmem:[#allocation55_spill] sm:$0xff]  ;;  %v6433_v36 = vld [vmem:[#allocation56_spill] sm:$0xff] }
 0x7c0   :  { %v2320_v59 = vsel %vm2317_vm14, %v2319_v41, %v2315_v31  ;;  %v2334_v39 = vsel %vm2333_vm13, %v3392_v55, %v2330_v46  ;;  %v2348_v2 = vsub.f32 1.0, %v2347_v53  ;;  %v2358_v61 = vor.u32 1.1754944e-38, %v2357_v16  ;;  %v6434_v41 = vld [vmem:[#allocation57_spill] sm:$0xff]  ;;  %v6435_v46 = vld [vmem:[#allocation31_spill] sm:$0xff]  ;;  %v6436_v53 = vld [vmem:[#allocation60_spill] sm:$0xff] }
 0x7c1   :  { %v2339_v48 = vsel %vm2336_vm15, %v2338_v33, %v2334_v39  ;;  %v2362_v56 = vmul.f32 %v3396_v0, %v2320_v59  ;;  %vm2356_vm3 = vcmp.eq.f32.partialorder %v2355_v47, 8.507059e+37  ;;  %v6426_v59 = vld [vmem:[#allocation51_spill] sm:$0xff]  ;;  %v6437_v33 = vld [vmem:[#allocation26_spill] sm:$0xff]  ;;  %v6438_v31 = vld [vmem:[#allocation25_spill] sm:$0xff] }
 0x7c2   :  { %v2361_v20 = vmul.f32 %v2339_v48, %v5318_v40  ;;  %v2349_v27 = vmul.f32 %v3394_v17, %v2348_v2  ;;  %v6427_v40 = vld [vmem:[#allocation24_spill] sm:$0xff]  ;;  %v6430_v2 = vld [vmem:[#allocation53_spill] sm:$0xff]  ;;  %v6439_v0 = vld [vmem:[#allocation35_spill] sm:$0xff] }
 0x7c3   :  { %v6440_v39 = vld [vmem:[#allocation28_spill] sm:$0xff]  ;;  %v6441_v48 = vld [vmem:[#allocation30_spill] sm:$0xff]  ;;  %v6444_v16 = vld [vmem:[#allocation33_spill] sm:$0xff] }
 0x7c4   :  { %v5520_v45 = vadd.f32 %v2362_v56, %v2361_v20  ;;  %v2350_v50 = vadd.f32 %v3394_v17, %v2349_v27  ;;  %v6428_v20 = vld [vmem:[#allocation52_spill] sm:$0xff]  ;;  %v6429_v56 = vld [vmem:[#allocation54_spill] sm:$0xff]  ;;  %v6442_v27 = vld [vmem:[#allocation29_spill] sm:$0xff] }
 0x7c5   :  { %v6445_v47 = vld [vmem:[#allocation32_spill] sm:$0xff] }
 0x7c6   :  { %3397 = vtanh.f32 %v5520_v45  ;;  %v2354_v58 = vsel %vm2353_vm2, %v3394_v17, %v2350_v50  ;;  %v6431_v17 = vld [vmem:[#allocation27_spill] sm:$0xff]  ;;  %v6443_v50 = vld [vmem:[#allocation38_spill] sm:$0xff] }
 0x7c7   :  { %v2359_v55 = vsel %vm2356_vm3, %v2358_v61, %v2354_v58  ;;  %v6446_v58 = vld [vmem:[#allocation34_spill] sm:$0xff]  ;;  %v6447_v61 = vld [vmem:[#allocation41_spill] sm:$0xff] }
 0x7cc   :  { %v3398_v49 = vpop.eup %3397 }
 0x7cd   :  { %v2365_v62 = vmul.f32 %v3398_v49, %v2359_v55  ;;  %v6448_v49 = vld [vmem:[#allocation39_spill] sm:$0xff]  ;;  %v6449_v55 = vld [vmem:[#allocation36_spill] sm:$0xff] }
 0x7cf   :  { %2382 = vmatmul.f32.vlgmr.msrb.gmra.mxu0 %v2365_v62  ;;  %2402 = vmatmul.f32.vlgmr.msrb.gmra.mxu1 %v2365_v62 }
 0x7d0   :  { %2422 = vmatmul.f32.vlgmr.msrb.gmra.mxu2 %v2365_v62  ;;  %2442 = vmatmul.f32.vlgmr.msrb.gmra.mxu3 %v2365_v62  ;;  %v5585_v62 = vld [vmem:[#allocation8 + $0x210] sm:$0xff] }
 0x7d1   :  { %2660 = vmatpush.msrb.mxu0 %v5321_v26  ;;  %2680 = vmatpush.msrb.mxu1 %v5324_v25  ;;  %6450 = vst [vmem:[#allocation42_spill] sm:$0xff] %v5585_v62 }
 0x7d2   :  { %2700 = vmatpush.msrb.mxu2 %v5327_v11  ;;  %2720 = vmatpush.msrb.mxu3 %v5330_v12 }
 0x7d3   :  { %2661 = vmatpush.msrb.mxu0 %v5333_v52  ;;  %2681 = vmatpush.msrb.mxu1 %v5336_v6 }
 0x7d4   :  { %2701 = vmatpush.msrb.mxu2 %v5339_v35  ;;  %2721 = vmatpush.msrb.mxu3 %v5342_v32 }
 0x7d5   :  { %2662 = vmatpush.msrb.mxu0 %v5345_v44  ;;  %2682 = vmatpush.msrb.mxu1 %v5348_v57 }
 0x7d6   :  { %2702 = vmatpush.msrb.mxu2 %v5351_v51  ;;  %2722 = vmatpush.msrb.mxu3 %v5354_v5 }
 0x7d7   :  { %2663 = vmatpush.msrb.mxu0 %v5357_v21  ;;  %2683 = vmatpush.msrb.mxu1 %v5360_v54 }
 0x7d8   :  { %2703 = vmatpush.msrb.mxu2 %v5363_v23  ;;  %2723 = vmatpush.msrb.mxu3 %v5366_v7 }
 0x7d9   :  { %2664 = vmatpush.msrb.mxu0 %v5369_v38  ;;  %2684 = vmatpush.msrb.mxu1 %v5372_v13 }
 0x7da   :  { %2704 = vmatpush.msrb.mxu2 %v5375_v15  ;;  %2724 = vmatpush.msrb.mxu3 %v5378_v28 }
 0x7db   :  { %2665 = vmatpush.msrb.mxu0 %v5381_v60  ;;  %2685 = vmatpush.msrb.mxu1 %v5384_v30 }
 0x7dc   :  { %2705 = vmatpush.msrb.mxu2 %v5387_v43  ;;  %2725 = vmatpush.msrb.mxu3 %v5390_v10 }
 0x7dd   :  { %2666 = vmatpush.msrb.mxu0 %v5393_v19  ;;  %2686 = vmatpush.msrb.mxu1 %v5396_v14 }
 0x7de   :  { %2706 = vmatpush.msrb.mxu2 %v5399_v9  ;;  %2726 = vmatpush.msrb.mxu3 %v5402_v1 }
 0x7df   :  { %2667 = vmatpush.msrb.mxu0 %v5405_v37  ;;  %2687 = vmatpush.msrb.mxu1 %v5408_v63 }
 0x7e0   :  { %2707 = vmatpush.msrb.mxu2 %v5411_v4  ;;  %2727 = vmatpush.msrb.mxu3 %v5414_v3 }
 0x7e1   :  { %2668 = vmatpush.msrb.mxu0 %v5417_v24  ;;  %2688 = vmatpush.msrb.mxu1 %v5420_v42 }
 0x7e2   :  { %2708 = vmatpush.msrb.mxu2 %v5423_v22  ;;  %2728 = vmatpush.msrb.mxu3 %v5426_v18 }
 0x7e3   :  { %2669 = vmatpush.msrb.mxu0 %v5429_v8  ;;  %2689 = vmatpush.msrb.mxu1 %v5432_v29 }
 0x7e4   :  { %2709 = vmatpush.msrb.mxu2 %v6426_v59  ;;  %2729 = vmatpush.msrb.mxu3 %v6427_v40 }
 0x7e5   :  { %2670 = vmatpush.msrb.mxu0 %v6428_v20  ;;  %2690 = vmatpush.msrb.mxu1 %v6429_v56 }
 0x7e6   :  { %2710 = vmatpush.msrb.mxu2 %v6430_v2  ;;  %2730 = vmatpush.msrb.mxu3 %v6431_v17 }
 0x7e7   :  { %2671 = vmatpush.msrb.mxu0 %v6432_v34  ;;  %2691 = vmatpush.msrb.mxu1 %v6433_v36 }
 0x7e8   :  { %2711 = vmatpush.msrb.mxu2 %v6434_v41  ;;  %2731 = vmatpush.msrb.mxu3 %v6435_v46  ;;  %v6457_v46 = vld [vmem:[#allocation59_spill] sm:$0xff] }
 0x7e9   :  { %2672 = vmatpush.msrb.mxu0 %v6436_v53  ;;  %2692 = vmatpush.msrb.mxu1 %v6437_v33 }
 0x7ea   :  { %2712 = vmatpush.msrb.mxu2 %v6438_v31  ;;  %2732 = vmatpush.msrb.mxu3 %v6439_v0  ;;  %v6455_v0 = vld [vmem:[#allocation58_spill] sm:$0xff] }
 0x7eb   :  { %2673 = vmatpush.msrb.mxu0 %v6440_v39  ;;  %2693 = vmatpush.msrb.mxu1 %v6441_v48  ;;  %v6451_v48 = vld [vmem:[#allocation37_spill] sm:$0xff] }
 0x7ec   :  { %2713 = vmatpush.msrb.mxu2 %v6442_v27  ;;  %2733 = vmatpush.msrb.mxu3 %v6443_v50  ;;  %v6452_v27 = vld [vmem:[#allocation71_spill] sm:$0xff]  ;;  %v6453_v50 = vld [vmem:[#allocation68_spill] sm:$0xff] }
 0x7ed   :  { %2674 = vmatpush.msrb.mxu0 %v6444_v16  ;;  %2694 = vmatpush.msrb.mxu1 %v6445_v47  ;;  %v1723_v39 = vadd.f32 %v6453_v50, %v6452_v27  ;;  %v6454_v16 = vld [vmem:[#allocation73_spill] sm:$0xff] }
 0x7ee   :  { %2714 = vmatpush.msrb.mxu2 %v6446_v58  ;;  %2734 = vmatpush.msrb.mxu3 %v6447_v61  ;;  %v1764_v47 = vadd.f32 %v6455_v0, %v6454_v16 }
 0x7ef   :  { %2675 = vmatpush.msrb.mxu0 %v6448_v49  ;;  %2695 = vmatpush.msrb.mxu1 %v6449_v55  ;;  %v6456_v55 = vld [vmem:[#allocation22_spill] sm:$0xff] }
 0x7f0   :  { %2715 = vmatpush.msrb.mxu2 %v5585_v62  ;;  %2735 = vmatpush.msrb.mxu3 %v6451_v48  ;;  %v1846_v41 = vadd.f32 %v6457_v46, %v6456_v55 }
 0x84c   :  { %v2383_v31 = vpop.f32.mrf.mxu0  ;;  %v2403_v58 = vpop.f32.mrf.mxu1 }
 0x84d   :  { %v2446_v33 = vadd.f32 %v2383_v31, %v1723_v39  ;;  %v2447_v61 = vadd.f32 %v2403_v58, %v1764_v47  ;;  %v6458_v39 = vld [vmem:[#allocation21_spill] sm:$0xff] }
 0x84f   :  { %v3194_v53 = vmul.f32 -1.442695, %v2446_v33  ;;  %v3195_v49 = vmul.f32 -1.442695, %v2447_v61  ;;  %v6459_v33 = vld [vmem:[#allocation74_spill] sm:$0xff] }
 0x850   :  { %v1805_v47 = vadd.f32 %v6459_v33, %v6458_v39 }
 0x851   :  { %3399 = vpow2.f32 %v3194_v53 }
 0x852   :  { %3401 = vpow2.f32 %v3195_v49 }
 0x853   :  { %v2443_v62 = vpop.f32.mrf.mxu3  ;;  %v2423_v0 = vpop.f32.mrf.mxu2 }
 0x854   :  { %v2449_v36 = vadd.f32 %v2443_v62, %v1846_v41  ;;  %v2448_v61 = vadd.f32 %v2423_v0, %v1805_v47 }
 0x856   :  { %v3196_v48 = vmul.f32 -1.442695, %v2449_v36 }
 0x857   :  { %v3400_v34 = vpop.eup %3399 }
 0x858   :  { %v3402_v17 = vpop.eup %3401  ;;  %v2453_v50 = vadd.f32 1.0, %v3400_v34  ;;  %3403 = vpow2.f32 %v3196_v48 }
 0x859   :  { %v2472_v27 = vadd.f32 1.0, %v3402_v17 }
 0x85a   :  { %3405 = vrcp.f32 %v2453_v50  ;;  %v2465_v55 = vand.u32 2147483648, %v2453_v50  ;;  %v2463_v48 = vand.u32 2147483647, %v2453_v50  ;;  %vm2459_vm6 = vweird.f32 %v2453_v50 }
 0x85b   :  { %3407 = vrcp.f32 %v2472_v27  ;;  %v2484_v34 = vand.u32 2147483648, %v2472_v27  ;;  %v2482_v2 = vand.u32 2147483647, %v2472_v27  ;;  %vm2478_vm7 = vweird.f32 %v2472_v27 }
 0x85c   :  { %v2466_v0 = vor.u32 1.1754944e-38, %v2465_v55  ;;  %vm2464_vm10 = vcmp.eq.f32.partialorder %v2463_v48, 8.507059e+37 }
 0x85d   :  { %vm2483_vm11 = vcmp.eq.f32.partialorder %v2482_v2, 8.507059e+37 }
 0x85e   :  { %v3404_v31 = vpop.eup %3403 }
 0x85f   :  { %v2492_v53 = vadd.f32 1.0, %v3404_v31 }
 0x860   :  { %v3406_v58 = vpop.eup %3405 }
 0x861   :  { %v3408_v46 = vpop.eup %3407  ;;  %v2455_v49 = vmul.f32 %v3406_v58, %v2453_v50  ;;  %3409 = vrcp.f32 %v2492_v53  ;;  %vm2460_vm4 = vweird.f32 %v3406_v58  ;;  %vm2498_vm13 = vweird.f32 %v2492_v53 }
 0x862   :  { %v2474_v41 = vmul.f32 %v3408_v46, %v2472_v27  ;;  %3411 = vtanh.f32 %v2448_v61  ;;  %vm2479_vm5 = vweird.f32 %v3408_v46  ;;  %vm2461_vm8 = vmor %vm2459_vm6, %vm2460_vm4  ;;  %v2502_v55 = vand.u32 2147483647, %v2492_v53 }
 0x863   :  { %v2456_v36 = vsub.f32 1.0, %v2455_v49  ;;  %vm2480_vm9 = vmor %vm2478_vm7, %vm2479_vm5  ;;  %v2485_v49 = vor.u32 1.1754944e-38, %v2484_v34 }
 0x864   :  { %v2475_v62 = vsub.f32 1.0, %v2474_v41  ;;  %vm2503_vm15 = vcmp.eq.f32.partialorder %v2502_v55, 8.507059e+37  ;;  %v6479_v55 = vld [vmem:[#allocation32_spill] sm:$0xff] }
 0x865   :  { %v2457_v17 = vmul.f32 %v3406_v58, %v2456_v36 }
 0x866   :  { %v2476_v16 = vmul.f32 %v3408_v46, %v2475_v62 }
 0x867   :  { %v3410_v56 = vpop.eup %3409  ;;  %v2458_v33 = vadd.f32 %v3406_v58, %v2457_v17 }
 0x868   :  { %v2477_v31 = vadd.f32 %v3408_v46, %v2476_v16  ;;  %v2494_v47 = vmul.f32 %v3410_v56, %v2492_v53  ;;  %v3412_v61 = vpop.eup %3411  ;;  %vm2499_vm12 = vweird.f32 %v3410_v56  ;;  %v2504_v16 = vand.u32 2147483648, %v2492_v53  ;;  %v6466_v53 = vld [vmem:[#allocation55_spill] sm:$0xff] }
 0x869   :  { %v2462_v41 = vsel %vm2461_vm8, %v3406_v58, %v2458_v33  ;;  %vm2500_vm14 = vmor %vm2498_vm13, %vm2499_vm12  ;;  %v6467_v33 = vld [vmem:[#allocation56_spill] sm:$0xff] }
 0x86a   :  { %v2467_v39 = vsel %vm2464_vm10, %v2466_v0, %v2462_v41  ;;  %v2481_v36 = vsel %vm2480_vm9, %v3408_v46, %v2477_v31  ;;  %v2495_v20 = vsub.f32 1.0, %v2494_v47  ;;  %v2505_v34 = vor.u32 1.1754944e-38, %v2504_v16  ;;  %v6468_v0 = vld [vmem:[#allocation57_spill] sm:$0xff]  ;;  %v6469_v31 = vld [vmem:[#allocation31_spill] sm:$0xff]  ;;  %v6470_v47 = vld [vmem:[#allocation60_spill] sm:$0xff] }
 0x86b   :  { %v2486_v62 = vsel %vm2483_vm11, %v2485_v49, %v2481_v36  ;;  %v2509_v40 = vmul.f32 %v3412_v61, %v2467_v39  ;;  %v6465_v39 = vld [vmem:[#allocation27_spill] sm:$0xff]  ;;  %v6471_v49 = vld [vmem:[#allocation26_spill] sm:$0xff]  ;;  %v6472_v41 = vld [vmem:[#allocation25_spill] sm:$0xff] }
 0x86c   :  { %v2508_v59 = vmul.f32 %v2486_v62, %v5520_v45  ;;  %v2496_v17 = vmul.f32 %v3410_v56, %v2495_v20  ;;  %v6460_v45 = vld [vmem:[#allocation51_spill] sm:$0xff]  ;;  %v6463_v20 = vld [vmem:[#allocation54_spill] sm:$0xff]  ;;  %v6474_v36 = vld [vmem:[#allocation28_spill] sm:$0xff] }
 0x86d   :  { %v6473_v61 = vld [vmem:[#allocation35_spill] sm:$0xff]  ;;  %v6475_v62 = vld [vmem:[#allocation30_spill] sm:$0xff]  ;;  %v6478_v16 = vld [vmem:[#allocation33_spill] sm:$0xff] }
 0x86e   :  { %v5598_v50 = vadd.f32 %v2509_v40, %v2508_v59  ;;  %v2497_v27 = vadd.f32 %v3410_v56, %v2496_v17  ;;  %v6461_v59 = vld [vmem:[#allocation24_spill] sm:$0xff]  ;;  %v6476_v17 = vld [vmem:[#allocation29_spill] sm:$0xff] }
 0x86f   :  { %v6462_v40 = vld [vmem:[#allocation52_spill] sm:$0xff] }
 0x870   :  { %3413 = vtanh.f32 %v5598_v50  ;;  %v2501_v58 = vsel %vm2500_vm14, %v3410_v56, %v2497_v27  ;;  %v6464_v56 = vld [vmem:[#allocation53_spill] sm:$0xff]  ;;  %v6477_v27 = vld [vmem:[#allocation38_spill] sm:$0xff] }
 0x871   :  { %v2506_v46 = vsel %vm2503_vm15, %v2505_v34, %v2501_v58  ;;  %v6480_v58 = vld [vmem:[#allocation34_spill] sm:$0xff]  ;;  %v6481_v34 = vld [vmem:[#allocation41_spill] sm:$0xff] }
 0x876   :  { %v3414_v2 = vpop.eup %3413 }
 0x877   :  { %v2512_v48 = vmul.f32 %v3414_v2, %v2506_v46  ;;  %v6482_v2 = vld [vmem:[#allocation39_spill] sm:$0xff]  ;;  %v6483_v46 = vld [vmem:[#allocation36_spill] sm:$0xff] }
 0x879   :  { %2529 = vmatmul.f32.vlgmr.msra.gmra.mxu0 %v2512_v48  ;;  %2549 = vmatmul.f32.vlgmr.msra.gmra.mxu1 %v2512_v48 }
 0x87a   :  { %2569 = vmatmul.f32.vlgmr.msra.gmra.mxu2 %v2512_v48  ;;  %2589 = vmatmul.f32.vlgmr.msra.gmra.mxu3 %v2512_v48  ;;  %v6484_v48 = vld [vmem:[#allocation42_spill] sm:$0xff] }
 0x87b   :  { %2807 = vmatpush.msra.mxu0 %v5321_v26  ;;  %2827 = vmatpush.msra.mxu1 %v5324_v25 }
 0x87c   :  { %2847 = vmatpush.msra.mxu2 %v5327_v11  ;;  %2867 = vmatpush.msra.mxu3 %v5330_v12 }
 0x87d   :  { %2808 = vmatpush.msra.mxu0 %v5333_v52  ;;  %2828 = vmatpush.msra.mxu1 %v5336_v6 }
 0x87e   :  { %2848 = vmatpush.msra.mxu2 %v5339_v35  ;;  %2868 = vmatpush.msra.mxu3 %v5342_v32 }
 0x87f   :  { %2809 = vmatpush.msra.mxu0 %v5345_v44  ;;  %2829 = vmatpush.msra.mxu1 %v5348_v57 }
 0x880   :  { %2849 = vmatpush.msra.mxu2 %v5351_v51  ;;  %2869 = vmatpush.msra.mxu3 %v5354_v5 }
 0x881   :  { %2810 = vmatpush.msra.mxu0 %v5357_v21  ;;  %2830 = vmatpush.msra.mxu1 %v5360_v54 }
 0x882   :  { %2850 = vmatpush.msra.mxu2 %v5363_v23  ;;  %2870 = vmatpush.msra.mxu3 %v5366_v7 }
 0x883   :  { %2811 = vmatpush.msra.mxu0 %v5369_v38  ;;  %2831 = vmatpush.msra.mxu1 %v5372_v13 }
 0x884   :  { %2851 = vmatpush.msra.mxu2 %v5375_v15  ;;  %2871 = vmatpush.msra.mxu3 %v5378_v28 }
 0x885   :  { %2812 = vmatpush.msra.mxu0 %v5381_v60  ;;  %2832 = vmatpush.msra.mxu1 %v5384_v30 }
 0x886   :  { %2852 = vmatpush.msra.mxu2 %v5387_v43  ;;  %2872 = vmatpush.msra.mxu3 %v5390_v10 }
 0x887   :  { %2813 = vmatpush.msra.mxu0 %v5393_v19  ;;  %2833 = vmatpush.msra.mxu1 %v5396_v14 }
 0x888   :  { %2853 = vmatpush.msra.mxu2 %v5399_v9  ;;  %2873 = vmatpush.msra.mxu3 %v5402_v1 }
 0x889   :  { %2814 = vmatpush.msra.mxu0 %v5405_v37  ;;  %2834 = vmatpush.msra.mxu1 %v5408_v63 }
 0x88a   :  { %2854 = vmatpush.msra.mxu2 %v5411_v4  ;;  %2874 = vmatpush.msra.mxu3 %v5414_v3 }
 0x88b   :  { %2815 = vmatpush.msra.mxu0 %v5417_v24  ;;  %2835 = vmatpush.msra.mxu1 %v5420_v42 }
 0x88c   :  { %2855 = vmatpush.msra.mxu2 %v5423_v22  ;;  %2875 = vmatpush.msra.mxu3 %v5426_v18 }
 0x88d   :  { %2816 = vmatpush.msra.mxu0 %v5429_v8  ;;  %2836 = vmatpush.msra.mxu1 %v5432_v29 }
 0x88e   :  { %2856 = vmatpush.msra.mxu2 %v6460_v45  ;;  %2876 = vmatpush.msra.mxu3 %v6461_v59 }
 0x88f   :  { %2817 = vmatpush.msra.mxu0 %v6462_v40  ;;  %2837 = vmatpush.msra.mxu1 %v6463_v20 }
 0x890   :  { %2857 = vmatpush.msra.mxu2 %v6464_v56  ;;  %2877 = vmatpush.msra.mxu3 %v6465_v39 }
 0x891   :  { %2818 = vmatpush.msra.mxu0 %v6466_v53  ;;  %2838 = vmatpush.msra.mxu1 %v6467_v33 }
 0x892   :  { %2858 = vmatpush.msra.mxu2 %v6468_v0  ;;  %2878 = vmatpush.msra.mxu3 %v6469_v31  ;;  %v6491_v0 = vld [vmem:[#allocation64_spill] sm:$0xff] }
 0x893   :  { %2819 = vmatpush.msra.mxu0 %v6470_v47  ;;  %2839 = vmatpush.msra.mxu1 %v6471_v49 }
 0x894   :  { %2859 = vmatpush.msra.mxu2 %v6472_v41  ;;  %2879 = vmatpush.msra.mxu3 %v6473_v61  ;;  %v6489_v41 = vld [vmem:[#allocation61_spill] sm:$0xff] }
 0x895   :  { %2820 = vmatpush.msra.mxu0 %v6474_v36  ;;  %2840 = vmatpush.msra.mxu1 %v6475_v62  ;;  %v6485_v36 = vld [vmem:[#allocation37_spill] sm:$0xff]  ;;  %v6486_v62 = vld [vmem:[#allocation71_spill] sm:$0xff] }
 0x896   :  { %2860 = vmatpush.msra.mxu2 %v6476_v17  ;;  %2880 = vmatpush.msra.mxu3 %v6477_v27  ;;  %v6487_v17 = vld [vmem:[#allocation72_spill] sm:$0xff]  ;;  %v6488_v27 = vld [vmem:[#allocation73_spill] sm:$0xff] }
 0x897   :  { %2821 = vmatpush.msra.mxu0 %v6478_v16  ;;  %2841 = vmatpush.msra.mxu1 %v6479_v55  ;;  %v1726_v61 = vadd.f32 %v6487_v17, %v6486_v62  ;;  %v1767_v16 = vadd.f32 %v6489_v41, %v6488_v27 }
 0x898   :  { %2861 = vmatpush.msra.mxu2 %v6480_v58  ;;  %2881 = vmatpush.msra.mxu3 %v6481_v34 }
 0x899   :  { %2822 = vmatpush.msra.mxu0 %v6482_v2  ;;  %2842 = vmatpush.msra.mxu1 %v6483_v46  ;;  %v6490_v2 = vld [vmem:[#allocation22_spill] sm:$0xff] }
 0x89a   :  { %2862 = vmatpush.msra.mxu2 %v6484_v48  ;;  %2882 = vmatpush.msra.mxu3 %v6485_v36  ;;  %v1849_v46 = vadd.f32 %v6491_v0, %v6490_v2 }
 0x8f6   :  { %v2530_v49 = vpop.f32.mrf.mxu0  ;;  %v2550_v55 = vpop.f32.mrf.mxu1 }
 0x8f7   :  { %v2593_v47 = vadd.f32 %v2530_v49, %v1726_v61  ;;  %v2594_v58 = vadd.f32 %v2550_v55, %v1767_v16  ;;  %v6492_v61 = vld [vmem:[#allocation21_spill] sm:$0xff] }
 0x8f9   :  { %v3197_v31 = vmul.f32 -1.442695, %v2593_v47  ;;  %v3198_v34 = vmul.f32 -1.442695, %v2594_v58  ;;  %v6493_v47 = vld [vmem:[#allocation65_spill] sm:$0xff] }
 0x8fa   :  { %v1808_v16 = vadd.f32 %v6493_v47, %v6492_v61 }
 0x8fb   :  { %3415 = vpow2.f32 %v3197_v31 }
 0x8fc   :  { %3417 = vpow2.f32 %v3198_v34 }
 0x8fd   :  { %v2590_v48 = vpop.f32.mrf.mxu3  ;;  %v2570_v41 = vpop.f32.mrf.mxu2 }
 0x8fe   :  { %v2596_v33 = vadd.f32 %v2590_v48, %v1849_v46  ;;  %v2595_v58 = vadd.f32 %v2570_v41, %v1808_v16 }
 0x900   :  { %v3199_v36 = vmul.f32 -1.442695, %v2596_v33 }
 0x901   :  { %v3416_v53 = vpop.eup %3415 }
 0x902   :  { %v3418_v39 = vpop.eup %3417  ;;  %v2600_v17 = vadd.f32 1.0, %v3416_v53  ;;  %3419 = vpow2.f32 %v3199_v36 }
 0x903   :  { %v2619_v62 = vadd.f32 1.0, %v3418_v39 }
 0x904   :  { %3421 = vrcp.f32 %v2600_v17  ;;  %v2612_v2 = vand.u32 2147483648, %v2600_v17  ;;  %v2610_v36 = vand.u32 2147483647, %v2600_v17  ;;  %vm2606_vm2 = vweird.f32 %v2600_v17 }
 0x905   :  { %3423 = vrcp.f32 %v2619_v62  ;;  %v2631_v53 = vand.u32 2147483648, %v2619_v62  ;;  %v2629_v56 = vand.u32 2147483647, %v2619_v62  ;;  %vm2625_vm3 = vweird.f32 %v2619_v62 }
 0x906   :  { %v2613_v41 = vor.u32 1.1754944e-38, %v2612_v2  ;;  %vm2611_vm6 = vcmp.eq.f32.partialorder %v2610_v36, 8.507059e+37 }
 0x907   :  { %vm2630_vm7 = vcmp.eq.f32.partialorder %v2629_v56, 8.507059e+37 }
 0x908   :  { %v3420_v49 = vpop.eup %3419 }
 0x909   :  { %v2639_v31 = vadd.f32 1.0, %v3420_v49 }
 0x90a   :  { %v3422_v55 = vpop.eup %3421 }
 0x90b   :  { %v3424_v0 = vpop.eup %3423  ;;  %v2602_v34 = vmul.f32 %v3422_v55, %v2600_v17  ;;  %3425 = vrcp.f32 %v2639_v31  ;;  %vm2607_vm0 = vweird.f32 %v3422_v55  ;;  %vm2645_vm9 = vweird.f32 %v2639_v31 }
 0x90c   :  { %v2621_v46 = vmul.f32 %v3424_v0, %v2619_v62  ;;  %3427 = vtanh.f32 %v2595_v58  ;;  %vm2626_vm1 = vweird.f32 %v3424_v0  ;;  %vm2608_vm4 = vmor %vm2606_vm2, %vm2607_vm0  ;;  %v2649_v2 = vand.u32 2147483647, %v2639_v31 }
 0x90d   :  { %v2603_v33 = vsub.f32 1.0, %v2602_v34  ;;  %vm2627_vm5 = vmor %vm2625_vm3, %vm2626_vm1  ;;  %v2632_v34 = vor.u32 1.1754944e-38, %v2631_v53 }
 0x90e   :  { %v2622_v48 = vsub.f32 1.0, %v2621_v46  ;;  %vm2650_vm11 = vcmp.eq.f32.partialorder %v2649_v2, 8.507059e+37 }
 0x90f   :  { %v2604_v39 = vmul.f32 %v3422_v55, %v2603_v33 }
 0x910   :  { %v2623_v27 = vmul.f32 %v3424_v0, %v2622_v48 }
 0x911   :  { %v3426_v20 = vpop.eup %3425  ;;  %v2605_v47 = vadd.f32 %v3422_v55, %v2604_v39 }
 0x912   :  { %v2624_v49 = vadd.f32 %v3424_v0, %v2623_v27  ;;  %v2641_v16 = vmul.f32 %v3426_v20, %v2639_v31  ;;  %v3428_v58 = vpop.eup %3427  ;;  %vm2646_vm8 = vweird.f32 %v3426_v20  ;;  %v2651_v27 = vand.u32 2147483648, %v2639_v31 }
 0x913   :  { %v2609_v46 = vsel %vm2608_vm4, %v3422_v55, %v2605_v47  ;;  %vm2647_vm10 = vmor %vm2645_vm9, %vm2646_vm8 }
 0x914   :  { %v2614_v61 = vsel %vm2611_vm6, %v2613_v41, %v2609_v46  ;;  %v2628_v33 = vsel %vm2627_vm5, %v3424_v0, %v2624_v49  ;;  %v2642_v40 = vsub.f32 1.0, %v2641_v16  ;;  %v2652_v53 = vor.u32 1.1754944e-38, %v2651_v27  ;;  %v6526_v46 = vld [vmem:[#allocation21_spill] sm:$0xff] }
 0x915   :  { %v2633_v48 = vsel %vm2630_vm7, %v2632_v34, %v2628_v33  ;;  %v2656_v59 = vmul.f32 %v3428_v58, %v2614_v61  ;;  %v6527_v58 = vld [vmem:[#allocation23_spill] sm:$0xff] }
 0x916   :  { %v2655_v45 = vmul.f32 %v2633_v48, %v5598_v50  ;;  %v2643_v39 = vmul.f32 %v3426_v20, %v2642_v40  ;;  %v6524_v50 = vld [vmem:[#allocation22_spill] sm:$0xff]  ;;  %v1811_v33 = vadd.f32 %v6527_v58, %v6526_v46 }
 0x918   :  { %v5674_v17 = vadd.f32 %v2656_v59, %v2655_v45  ;;  %v2644_v62 = vadd.f32 %v3426_v20, %v2643_v39  ;;  %v6525_v45 = vld [vmem:[#allocation70_spill] sm:$0xff] }
 0x919   :  { %v1852_v59 = vadd.f32 %v6525_v45, %v6524_v50 }
 0x91a   :  { %3429 = vtanh.f32 %v5674_v17  ;;  %v2648_v55 = vsel %vm2647_vm10, %v3426_v20, %v2644_v62 }
 0x91b   :  { %v2653_v0 = vsel %vm2650_vm11, %v2652_v53, %v2648_v55 }
 0x920   :  { %v3430_v56 = vpop.eup %3429 }
 0x921   :  { %v2659_v36 = vmul.f32 %v3430_v56, %v2653_v0 }
 0x923   :  { %2676 = vmatmul.f32.vlgmr.msrb.gmra.mxu0 %v2659_v36  ;;  %2696 = vmatmul.f32.vlgmr.msrb.gmra.mxu1 %v2659_v36 }
 0x924   :  { %2716 = vmatmul.f32.vlgmr.msrb.gmra.mxu2 %v2659_v36  ;;  %2736 = vmatmul.f32.vlgmr.msrb.gmra.mxu3 %v2659_v36 }
 0x925   :  { %2954 = vmatpush.msrb.mxu0 %v5321_v26  ;;  %2974 = vmatpush.msrb.mxu1 %v5324_v25  ;;  %v6494_v26 = vld [vmem:[#allocation51_spill] sm:$0xff]  ;;  %v6495_v25 = vld [vmem:[#allocation24_spill] sm:$0xff] }
 0x926   :  { %2994 = vmatpush.msrb.mxu2 %v5327_v11  ;;  %3014 = vmatpush.msrb.mxu3 %v5330_v12  ;;  %v6496_v11 = vld [vmem:[#allocation52_spill] sm:$0xff]  ;;  %v6497_v12 = vld [vmem:[#allocation54_spill] sm:$0xff] }
 0x927   :  { %2955 = vmatpush.msrb.mxu0 %v5333_v52  ;;  %2975 = vmatpush.msrb.mxu1 %v5336_v6  ;;  %v6498_v52 = vld [vmem:[#allocation53_spill] sm:$0xff]  ;;  %v6499_v6 = vld [vmem:[#allocation27_spill] sm:$0xff] }
 0x928   :  { %2995 = vmatpush.msrb.mxu2 %v5339_v35  ;;  %3015 = vmatpush.msrb.mxu3 %v5342_v32  ;;  %v6500_v35 = vld [vmem:[#allocation55_spill] sm:$0xff]  ;;  %v6501_v32 = vld [vmem:[#allocation56_spill] sm:$0xff] }
 0x929   :  { %2956 = vmatpush.msrb.mxu0 %v5345_v44  ;;  %2976 = vmatpush.msrb.mxu1 %v5348_v57  ;;  %v6502_v44 = vld [vmem:[#allocation57_spill] sm:$0xff]  ;;  %v6503_v57 = vld [vmem:[#allocation31_spill] sm:$0xff] }
 0x92a   :  { %2996 = vmatpush.msrb.mxu2 %v5351_v51  ;;  %3016 = vmatpush.msrb.mxu3 %v5354_v5  ;;  %v6504_v51 = vld [vmem:[#allocation60_spill] sm:$0xff]  ;;  %v6505_v5 = vld [vmem:[#allocation26_spill] sm:$0xff] }
 0x92b   :  { %2957 = vmatpush.msrb.mxu0 %v5357_v21  ;;  %2977 = vmatpush.msrb.mxu1 %v5360_v54  ;;  %v6506_v21 = vld [vmem:[#allocation25_spill] sm:$0xff]  ;;  %v6507_v54 = vld [vmem:[#allocation35_spill] sm:$0xff] }
 0x92c   :  { %2997 = vmatpush.msrb.mxu2 %v5363_v23  ;;  %3017 = vmatpush.msrb.mxu3 %v5366_v7  ;;  %v6508_v23 = vld [vmem:[#allocation28_spill] sm:$0xff]  ;;  %v6509_v7 = vld [vmem:[#allocation30_spill] sm:$0xff] }
 0x92d   :  { %2958 = vmatpush.msrb.mxu0 %v5369_v38  ;;  %2978 = vmatpush.msrb.mxu1 %v5372_v13  ;;  %v6510_v38 = vld [vmem:[#allocation29_spill] sm:$0xff]  ;;  %v6511_v13 = vld [vmem:[#allocation38_spill] sm:$0xff] }
 0x92e   :  { %2998 = vmatpush.msrb.mxu2 %v5375_v15  ;;  %3018 = vmatpush.msrb.mxu3 %v5378_v28  ;;  %v6512_v15 = vld [vmem:[#allocation33_spill] sm:$0xff]  ;;  %v6513_v28 = vld [vmem:[#allocation32_spill] sm:$0xff] }
 0x92f   :  { %2959 = vmatpush.msrb.mxu0 %v5381_v60  ;;  %2979 = vmatpush.msrb.mxu1 %v5384_v30  ;;  %v6514_v60 = vld [vmem:[#allocation34_spill] sm:$0xff]  ;;  %v6515_v30 = vld [vmem:[#allocation41_spill] sm:$0xff] }
 0x930   :  { %2999 = vmatpush.msrb.mxu2 %v5387_v43  ;;  %3019 = vmatpush.msrb.mxu3 %v5390_v10  ;;  %v6516_v43 = vld [vmem:[#allocation39_spill] sm:$0xff]  ;;  %v6517_v10 = vld [vmem:[#allocation36_spill] sm:$0xff] }
 0x931   :  { %2960 = vmatpush.msrb.mxu0 %v5393_v19  ;;  %2980 = vmatpush.msrb.mxu1 %v5396_v14  ;;  %v6518_v19 = vld [vmem:[#allocation42_spill] sm:$0xff]  ;;  %v6519_v14 = vld [vmem:[#allocation37_spill] sm:$0xff] }
 0x932   :  { %3000 = vmatpush.msrb.mxu2 %v5399_v9  ;;  %3020 = vmatpush.msrb.mxu3 %v5402_v1  ;;  %v6520_v9 = vld [vmem:[#allocation71_spill] sm:$0xff]  ;;  %v6521_v1 = vld [vmem:[#allocation62_spill] sm:$0xff] }
 0x933   :  { %2961 = vmatpush.msrb.mxu0 %v5405_v37  ;;  %2981 = vmatpush.msrb.mxu1 %v5408_v63  ;;  %v1729_v37 = vadd.f32 %v6521_v1, %v6520_v9  ;;  %v6522_v63 = vld [vmem:[#allocation73_spill] sm:$0xff] }
 0x934   :  { %3001 = vmatpush.msrb.mxu2 %v5411_v4  ;;  %3021 = vmatpush.msrb.mxu3 %v5414_v3  ;;  %v6523_v4 = vld [vmem:[#allocation63_spill] sm:$0xff] }
 0x935   :  { %2962 = vmatpush.msrb.mxu0 %v5417_v24  ;;  %2982 = vmatpush.msrb.mxu1 %v5420_v42  ;;  %v1770_v3 = vadd.f32 %v6523_v4, %v6522_v63 }
 0x936   :  { %3002 = vmatpush.msrb.mxu2 %v5423_v22  ;;  %3022 = vmatpush.msrb.mxu3 %v5426_v18 }
 0x937   :  { %2963 = vmatpush.msrb.mxu0 %v5429_v8  ;;  %2983 = vmatpush.msrb.mxu1 %v5432_v29 }
 0x938   :  { %3003 = vmatpush.msrb.mxu2 %v6494_v26  ;;  %3023 = vmatpush.msrb.mxu3 %v6495_v25 }
 0x939   :  { %2964 = vmatpush.msrb.mxu0 %v6496_v11  ;;  %2984 = vmatpush.msrb.mxu1 %v6497_v12 }
 0x93a   :  { %3004 = vmatpush.msrb.mxu2 %v6498_v52  ;;  %3024 = vmatpush.msrb.mxu3 %v6499_v6 }
 0x93b   :  { %2965 = vmatpush.msrb.mxu0 %v6500_v35  ;;  %2985 = vmatpush.msrb.mxu1 %v6501_v32 }
 0x93c   :  { %3005 = vmatpush.msrb.mxu2 %v6502_v44  ;;  %3025 = vmatpush.msrb.mxu3 %v6503_v57 }
 0x93d   :  { %2966 = vmatpush.msrb.mxu0 %v6504_v51  ;;  %2986 = vmatpush.msrb.mxu1 %v6505_v5 }
 0x93e   :  { %3006 = vmatpush.msrb.mxu2 %v6506_v21  ;;  %3026 = vmatpush.msrb.mxu3 %v6507_v54 }
 0x93f   :  { %2967 = vmatpush.msrb.mxu0 %v6508_v23  ;;  %2987 = vmatpush.msrb.mxu1 %v6509_v7 }
 0x940   :  { %3007 = vmatpush.msrb.mxu2 %v6510_v38  ;;  %3027 = vmatpush.msrb.mxu3 %v6511_v13 }
 0x941   :  { %2968 = vmatpush.msrb.mxu0 %v6512_v15  ;;  %2988 = vmatpush.msrb.mxu1 %v6513_v28 }
 0x942   :  { %3008 = vmatpush.msrb.mxu2 %v6514_v60  ;;  %3028 = vmatpush.msrb.mxu3 %v6515_v30 }
 0x943   :  { %2969 = vmatpush.msrb.mxu0 %v6516_v43  ;;  %2989 = vmatpush.msrb.mxu1 %v6517_v10 }
 0x944   :  { %3009 = vmatpush.msrb.mxu2 %v6518_v19  ;;  %3029 = vmatpush.msrb.mxu3 %v6519_v14 }
 0x9a0   :  { %v2677_v24 = vpop.f32.mrf.mxu0  ;;  %v2697_v42 = vpop.f32.mrf.mxu1 }
 0x9a1   :  { %v2740_v22 = vadd.f32 %v2677_v24, %v1729_v37  ;;  %v2741_v18 = vadd.f32 %v2697_v42, %v1770_v3  ;;  %v6529_v3 = vld [vmem:[#allocation18_spill] sm:$0xff] }
 0x9a2   :  { %v1773_v24 = vadd.f32 %v6529_v3, %v6522_v63  ;;  %v3115_v3 = vld [vmem:[#allocation11 + $0x70] sm:$0xff] }
 0x9a3   :  { %v3200_v8 = vmul.f32 -1.442695, %v2740_v22  ;;  %v3201_v29 = vmul.f32 -1.442695, %v2741_v18 }
 0x9a5   :  { %3431 = vpow2.f32 %v3200_v8 }
 0x9a6   :  { %3433 = vpow2.f32 %v3201_v29 }
 0x9a7   :  { %v2737_v40 = vpop.f32.mrf.mxu3  ;;  %v2717_v16 = vpop.f32.mrf.mxu2 }
 0x9a8   :  { %v2743_v20 = vadd.f32 %v2737_v40, %v1852_v59  ;;  %v2742_v62 = vadd.f32 %v2717_v16, %v1811_v33  ;;  %v6530_v59 = vld [vmem:[#allocation49_spill] sm:$0xff] }
 0x9a9   :  { %v1855_v40 = vadd.f32 %v6530_v59, %v6524_v50  ;;  %v6531_v33 = vld [vmem:[#allocation17_spill] sm:$0xff]  ;;  %v6532_v59 = vld [vmem:[#allocation66_spill] sm:$0xff] }
 0x9aa   :  { %v3202_v61 = vmul.f32 -1.442695, %v2743_v20 }
 0x9ab   :  { %v3432_v31 = vpop.eup %3431 }
 0x9ac   :  { %v3434_v47 = vpop.eup %3433  ;;  %v2747_v41 = vadd.f32 1.0, %v3432_v31  ;;  %3435 = vpow2.f32 %v3202_v61 }
 0x9ad   :  { %v2766_v49 = vadd.f32 1.0, %v3434_v47 }
 0x9ae   :  { %3437 = vrcp.f32 %v2747_v41  ;;  %v2759_v0 = vand.u32 2147483648, %v2747_v41  ;;  %v2757_v25 = vand.u32 2147483647, %v2747_v41  ;;  %vm2753_vm14 = vweird.f32 %v2747_v41 }
 0x9af   :  { %3439 = vrcp.f32 %v2766_v49  ;;  %v2778_v36 = vand.u32 2147483648, %v2766_v49  ;;  %v2776_v12 = vand.u32 2147483647, %v2766_v49  ;;  %vm2772_vm15 = vweird.f32 %v2766_v49 }
 0x9b0   :  { %v2760_v35 = vor.u32 1.1754944e-38, %v2759_v0  ;;  %vm2758_vm2 = vcmp.eq.f32.partialorder %v2757_v25, 8.507059e+37 }
 0x9b1   :  { %v2779_v57 = vor.u32 1.1754944e-38, %v2778_v36  ;;  %vm2777_vm3 = vcmp.eq.f32.partialorder %v2776_v12, 8.507059e+37 }
 0x9b2   :  { %v3436_v34 = vpop.eup %3435 }
 0x9b3   :  { %v2786_v48 = vadd.f32 1.0, %v3436_v34 }
 0x9b4   :  { %v3438_v39 = vpop.eup %3437 }
 0x9b5   :  { %v3440_v27 = vpop.eup %3439  ;;  %v2749_v2 = vmul.f32 %v3438_v39, %v2747_v41  ;;  %3441 = vrcp.f32 %v2786_v48  ;;  %vm2754_vm12 = vweird.f32 %v3438_v39  ;;  %v2798_v30 = vand.u32 2147483648, %v2786_v48 }
 0x9b6   :  { %v2768_v55 = vmul.f32 %v3440_v27, %v2766_v49  ;;  %3443 = vtanh.f32 %v2742_v62  ;;  %vm2773_vm13 = vweird.f32 %v3440_v27  ;;  %vm2755_vm0 = vmor %vm2753_vm14, %vm2754_vm12  ;;  %vm2792_vm5 = vweird.f32 %v2786_v48 }
 0x9b7   :  { %v2750_v53 = vsub.f32 1.0, %v2749_v2  ;;  %vm2774_vm1 = vmor %vm2772_vm15, %vm2773_vm13  ;;  %v2796_v43 = vand.u32 2147483647, %v2786_v48  ;;  %v2799_v19 = vor.u32 1.1754944e-38, %v2798_v30 }
 0x9b8   :  { %v2769_v56 = vsub.f32 1.0, %v2768_v55 }
 0x9b9   :  { %v2751_v26 = vmul.f32 %v3438_v39, %v2750_v53  ;;  %vm2797_vm7 = vcmp.eq.f32.partialorder %v2796_v43, 8.507059e+37 }
 0x9ba   :  { %v2770_v11 = vmul.f32 %v3440_v27, %v2769_v56 }
 0x9bb   :  { %v3442_v52 = vpop.eup %3441  ;;  %v2752_v6 = vadd.f32 %v3438_v39, %v2751_v26 }
 0x9bc   :  { %v2771_v32 = vadd.f32 %v3440_v27, %v2770_v11  ;;  %v2788_v44 = vmul.f32 %v3442_v52, %v2786_v48  ;;  %v3444_v5 = vpop.eup %3443  ;;  %vm2793_vm4 = vweird.f32 %v3442_v52  ;;  %v1814_v48 = vadd.f32 %v6531_v33, %v6526_v46 }
 0x9bd   :  { %v2756_v51 = vsel %vm2755_vm0, %v3438_v39, %v2752_v6  ;;  %vm2794_vm6 = vmor %vm2792_vm5, %vm2793_vm4 }
 0x9be   :  { %v2761_v21 = vsel %vm2758_vm2, %v2760_v35, %v2756_v51  ;;  %v2775_v54 = vsel %vm2774_vm1, %v3440_v27, %v2771_v32  ;;  %v2789_v23 = vsub.f32 1.0, %v2788_v44 }
 0x9bf   :  { %v2780_v7 = vsel %vm2777_vm3, %v2779_v57, %v2775_v54  ;;  %v2803_v38 = vmul.f32 %v3444_v5, %v2761_v21 }
 0x9c0   :  { %v2802_v13 = vmul.f32 %v2780_v7, %v5674_v17  ;;  %v2790_v15 = vmul.f32 %v3442_v52, %v2789_v23  ;;  %v6528_v17 = vld [vmem:[#allocation75_spill] sm:$0xff] }
 0x9c1   :  { %v1732_v4 = vadd.f32 %v6528_v17, %v6520_v9 }
 0x9c2   :  { %v5750_v28 = vadd.f32 %v2803_v38, %v2802_v13  ;;  %v2791_v60 = vadd.f32 %v3442_v52, %v2790_v15 }
 0x9c4   :  { %3445 = vtanh.f32 %v5750_v28  ;;  %v2795_v10 = vsel %vm2794_vm6, %v3442_v52, %v2791_v60 }
 0x9c5   :  { %v2800_v1 = vsel %vm2797_vm7, %v2799_v19, %v2795_v10 }
 0x9ca   :  { %v3446_v14 = vpop.eup %3445 }
 0x9cb   :  { %v2806_v37 = vmul.f32 %v3446_v14, %v2800_v1 }
 0x9cd   :  { %2823 = vmatmul.f32.vlgmr.msra.gmra.mxu0 %v2806_v37  ;;  %2843 = vmatmul.f32.vlgmr.msra.gmra.mxu1 %v2806_v37 }
 0x9ce   :  { %2863 = vmatmul.f32.vlgmr.msra.gmra.mxu2 %v2806_v37  ;;  %2883 = vmatmul.f32.vlgmr.msra.gmra.mxu3 %v2806_v37 }
 0xa4a   :  { %v2824_v42 = vpop.f32.mrf.mxu0  ;;  %v2844_v22 = vpop.f32.mrf.mxu1 }
 0xa4b   :  { %v2887_v18 = vadd.f32 %v2824_v42, %v1732_v4  ;;  %v2888_v8 = vadd.f32 %v2844_v22, %v1773_v24  ;;  %v3114_v24 = vld [vmem:[#allocation11 + $0x68] sm:$0xff]  ;;  %v3113_v42 = vld [vmem:[#allocation11 + $0x60] sm:$0xff]  ;;  %v3112_v22 = vld [vmem:[#allocation11 + $0x58] sm:$0xff] }
 0xa4d   :  { %v3203_v29 = vmul.f32 -1.442695, %v2887_v18  ;;  %v3204_v45 = vmul.f32 -1.442695, %v2888_v8  ;;  %v3111_v18 = vld [vmem:[#allocation11 + $0x50] sm:$0xff]  ;;  %v3110_v8 = vld [vmem:[#allocation11 + $0x48] sm:$0xff] }
 0xa4f   :  { %3447 = vpow2.f32 %v3203_v29  ;;  %v3109_v29 = vld [vmem:[#allocation11 + $0x40] sm:$0xff] }
 0xa50   :  { %3449 = vpow2.f32 %v3204_v45  ;;  %v3108_v45 = vld [vmem:[#allocation11 + $0x38] sm:$0xff] }
 0xa51   :  { %v2884_v20 = vpop.f32.mrf.mxu3  ;;  %v2864_v34 = vpop.f32.mrf.mxu2 }
 0xa52   :  { %v2890_v61 = vadd.f32 %v2884_v20, %v1855_v40  ;;  %v2889_v27 = vadd.f32 %v2864_v34, %v1814_v48  ;;  %v1735_v40 = vadd.f32 %v6532_v59, %v6520_v9  ;;  %v6533_v20 = vld [vmem:[#allocation67_spill] sm:$0xff]  ;;  %v3106_v34 = vld [vmem:[#allocation11 + $0x28] sm:$0xff]  ;;  %v3105_v48 = vld [vmem:[#allocation11 + $0x20] sm:$0xff] }
 0xa53   :  { %v6534_v9 = vld [vmem:[#allocation19_spill] sm:$0xff] }
 0xa54   :  { %v3205_v31 = vmul.f32 -1.442695, %v2890_v61  ;;  %v1776_v61 = vadd.f32 %v6533_v20, %v6522_v63  ;;  %v3103_v63 = vld [vmem:[#allocation11 + $0x10] sm:$0xff] }
 0xa55   :  { %v3448_v47 = vpop.eup %3447 }
 0xa56   :  { %v3450_v41 = vpop.eup %3449  ;;  %v2894_v49 = vadd.f32 1.0, %v3448_v47  ;;  %3451 = vpow2.f32 %v3205_v31 }
 0xa57   :  { %v2913_v16 = vadd.f32 1.0, %v3450_v41  ;;  %v3107_v41 = vld [vmem:[#allocation11 + $0x30] sm:$0xff] }
 0xa58   :  { %3453 = vrcp.f32 %v2894_v49  ;;  %v2906_v36 = vand.u32 2147483648, %v2894_v49  ;;  %v2904_v11 = vand.u32 2147483647, %v2894_v49  ;;  %vm2900_vm10 = vweird.f32 %v2894_v49 }
 0xa59   :  { %3455 = vrcp.f32 %v2913_v16  ;;  %v2925_v26 = vand.u32 2147483648, %v2913_v16  ;;  %v2923_v52 = vand.u32 2147483647, %v2913_v16  ;;  %vm2919_vm11 = vweird.f32 %v2913_v16 }
 0xa5a   :  { %v2907_v32 = vor.u32 1.1754944e-38, %v2906_v36  ;;  %vm2905_vm14 = vcmp.eq.f32.partialorder %v2904_v11, 8.507059e+37 }
 0xa5b   :  { %v2926_v51 = vor.u32 1.1754944e-38, %v2925_v26  ;;  %vm2924_vm15 = vcmp.eq.f32.partialorder %v2923_v52, 8.507059e+37 }
 0xa5c   :  { %v3452_v58 = vpop.eup %3451 }
 0xa5d   :  { %v2933_v39 = vadd.f32 1.0, %v3452_v58 }
 0xa5e   :  { %v3454_v62 = vpop.eup %3453 }
 0xa5f   :  { %v3456_v2 = vpop.eup %3455  ;;  %v2896_v55 = vmul.f32 %v3454_v62, %v2894_v49  ;;  %3457 = vrcp.f32 %v2933_v39  ;;  %vm2901_vm8 = vweird.f32 %v3454_v62  ;;  %v2945_v10 = vand.u32 2147483648, %v2933_v39 }
 0xa60   :  { %v2915_v53 = vmul.f32 %v3456_v2, %v2913_v16  ;;  %3459 = vtanh.f32 %v2889_v27  ;;  %vm2920_vm9 = vweird.f32 %v3456_v2  ;;  %vm2902_vm12 = vmor %vm2900_vm10, %vm2901_vm8  ;;  %vm2939_vm1 = vweird.f32 %v2933_v39 }
 0xa61   :  { %v2897_v56 = vsub.f32 1.0, %v2896_v55  ;;  %vm2921_vm13 = vmor %vm2919_vm11, %vm2920_vm9  ;;  %v2943_v19 = vand.u32 2147483647, %v2933_v39  ;;  %v2946_v1 = vor.u32 1.1754944e-38, %v2945_v10  ;;  %v3102_v55 = vld [vmem:[#allocation11 + $0x8] sm:$0xff] }
 0xa62   :  { %v2916_v0 = vsub.f32 1.0, %v2915_v53 }
 0xa63   :  { %v2898_v25 = vmul.f32 %v3454_v62, %v2897_v56  ;;  %vm2944_vm3 = vcmp.eq.f32.partialorder %v2943_v19, 8.507059e+37  ;;  %v3101_v56 = vld [vmem:[#allocation11] sm:$0xff] }
 0xa64   :  { %v2917_v12 = vmul.f32 %v3456_v2, %v2916_v0 }
 0xa65   :  { %v3458_v6 = vpop.eup %3457  ;;  %v2899_v35 = vadd.f32 %v3454_v62, %v2898_v25 }
 0xa66   :  { %v2918_v44 = vadd.f32 %v3456_v2, %v2917_v12  ;;  %v2935_v57 = vmul.f32 %v3458_v6, %v2933_v39  ;;  %v3460_v21 = vpop.eup %3459  ;;  %vm2940_vm0 = vweird.f32 %v3458_v6  ;;  %v3104_v39 = vld [vmem:[#allocation11 + $0x18] sm:$0xff]  ;;  %v6535_v12 = vld [vmem:[#allocation20_spill] sm:$0xff] }
 0xa67   :  { %v2903_v5 = vsel %vm2902_vm12, %v3454_v62, %v2899_v35  ;;  %vm2941_vm2 = vmor %vm2939_vm1, %vm2940_vm0  ;;  %v1858_v62 = vadd.f32 %v6534_v9, %v6524_v50  ;;  %v1817_v52 = vadd.f32 %v6535_v12, %v6526_v46 }
 0xa68   :  { %v2908_v54 = vsel %vm2905_vm14, %v2907_v32, %v2903_v5  ;;  %v2922_v23 = vsel %vm2921_vm13, %v3456_v2, %v2918_v44  ;;  %v2936_v7 = vsub.f32 1.0, %v2935_v57 }
 0xa69   :  { %v2927_v38 = vsel %vm2924_vm15, %v2926_v51, %v2922_v23  ;;  %v2950_v13 = vmul.f32 %v3460_v21, %v2908_v54 }
 0xa6a   :  { %v2949_v15 = vmul.f32 %v2927_v38, %v5750_v28  ;;  %v2937_v60 = vmul.f32 %v3458_v6, %v2936_v7  ;;  %v3116_v28 = vld [vmem:[#allocation11 + $0x78] sm:$0xff] }
 0xa6b   :  { %3121 = vmatpush.msra.mxu0 %v3116_v28 }
 0xa6c   :  { %v5762_v30 = vadd.f32 %v2950_v13, %v2949_v15  ;;  %v2938_v43 = vadd.f32 %v3458_v6, %v2937_v60 }
 0xa6d   :  { %3122 = vmatpush.msra.mxu0 %v3115_v3 }
 0xa6e   :  { %3461 = vtanh.f32 %v5762_v30  ;;  %v2942_v14 = vsel %vm2941_vm2, %v3458_v6, %v2938_v43 }
 0xa6f   :  { %v2947_v17 = vsel %vm2944_vm3, %v2946_v1, %v2942_v14  ;;  %3123 = vmatpush.msra.mxu0 %v3114_v24 }
 0xa71   :  { %3124 = vmatpush.msra.mxu0 %v3113_v42 }
 0xa73   :  { %3125 = vmatpush.msra.mxu0 %v3112_v22 }
 0xa74   :  { %v3462_v37 = vpop.eup %3461 }
 0xa75   :  { %v2953_v4 = vmul.f32 %v3462_v37, %v2947_v17  ;;  %3126 = vmatpush.msra.mxu0 %v3111_v18 }
 0xa77   :  { %2970 = vmatmul.f32.vlgmr.msrb.gmra.mxu0 %v2953_v4  ;;  %2990 = vmatmul.f32.vlgmr.msrb.gmra.mxu1 %v2953_v4 }
 0xa78   :  { %3010 = vmatmul.f32.vlgmr.msrb.gmra.mxu2 %v2953_v4  ;;  %3030 = vmatmul.f32.vlgmr.msrb.gmra.mxu3 %v2953_v4 }
 0xa79   :  { %3127 = vmatpush.msra.mxu0 %v3110_v8 }
 0xa7b   :  { %3128 = vmatpush.msra.mxu0 %v3109_v29 }
 0xa7d   :  { %3129 = vmatpush.msra.mxu0 %v3108_v45 }
 0xa7f   :  { %3130 = vmatpush.msra.mxu0 %v3107_v41 }
 0xa81   :  { %3131 = vmatpush.msra.mxu0 %v3106_v34 }
 0xa83   :  { %3132 = vmatpush.msra.mxu0 %v3105_v48 }
 0xa85   :  { %3133 = vmatpush.msra.mxu0 %v3104_v39 }
 0xa87   :  { %3134 = vmatpush.msra.mxu0 %v3103_v63 }
 0xa89   :  { %3135 = vmatpush.msra.mxu0 %v3102_v55 }
 0xa8b   :  { %3136 = vmatpush.msra.mxu0 %v3101_v56 }
 0xaf4   :  { %v2971_v31 = vpop.f32.mrf.mxu0  ;;  %v2991_v47 = vpop.f32.mrf.mxu1 }
 0xaf5   :  { %v3034_v49 = vadd.f32 %v2971_v31, %v1735_v40  ;;  %v3035_v16 = vadd.f32 %v2991_v47, %v1776_v61 }
 0xaf7   :  { %v3206_v58 = vmul.f32 -1.442695, %v3034_v49  ;;  %v3207_v33 = vmul.f32 -1.442695, %v3035_v16 }
 0xaf9   :  { %3463 = vpow2.f32 %v3206_v58 }
 0xafa   :  { %3465 = vpow2.f32 %v3207_v33 }
 0xafb   :  { %v3031_v27 = vpop.f32.mrf.mxu3  ;;  %v3011_v11 = vpop.f32.mrf.mxu2 }
 0xafc   :  { %v3037_v2 = vadd.f32 %v3031_v27, %v1858_v62  ;;  %v3036_v32 = vadd.f32 %v3011_v11, %v1817_v52 }
 0xafe   :  { %v3208_v53 = vmul.f32 -1.442695, %v3037_v2 }
 0xaff   :  { %v3464_v0 = vpop.eup %3463 }
 0xb00   :  { %v3466_v36 = vpop.eup %3465  ;;  %v3041_v26 = vadd.f32 1.0, %v3464_v0  ;;  %3467 = vpow2.f32 %v3208_v53 }
 0xb01   :  { %v3060_v25 = vadd.f32 1.0, %v3466_v36 }
 0xb02   :  { %3469 = vrcp.f32 %v3041_v26  ;;  %v3053_v54 = vand.u32 2147483648, %v3041_v26  ;;  %v3051_v38 = vand.u32 2147483647, %v3041_v26  ;;  %vm3047_vm6 = vweird.f32 %v3041_v26 }
 0xb03   :  { %3471 = vrcp.f32 %v3060_v25  ;;  %v3072_v23 = vand.u32 2147483648, %v3060_v25  ;;  %v3070_v15 = vand.u32 2147483647, %v3060_v25  ;;  %vm3066_vm7 = vweird.f32 %v3060_v25 }
 0xb04   :  { %v3054_v43 = vor.u32 1.1754944e-38, %v3053_v54  ;;  %vm3052_vm10 = vcmp.eq.f32.partialorder %v3051_v38, 8.507059e+37 }
 0xb05   :  { %v3073_v14 = vor.u32 1.1754944e-38, %v3072_v23  ;;  %vm3071_vm11 = vcmp.eq.f32.partialorder %v3070_v15, 8.507059e+37 }
 0xb06   :  { %v3468_v50 = vpop.eup %3467 }
 0xb07   :  { %v3080_v6 = vadd.f32 1.0, %v3468_v50 }
 0xb08   :  { %v3470_v35 = vpop.eup %3469 }
 0xb09   :  { %v3472_v44 = vpop.eup %3471  ;;  %v3043_v57 = vmul.f32 %v3470_v35, %v3041_v26  ;;  %3473 = vrcp.f32 %v3080_v6  ;;  %vm3048_vm4 = vweird.f32 %v3470_v35  ;;  %v3092_v29 = vand.u32 2147483648, %v3080_v6 }
 0xb0a   :  { %v3062_v51 = vmul.f32 %v3472_v44, %v3060_v25  ;;  %3475 = vtanh.f32 %v3036_v32  ;;  %vm3067_vm5 = vweird.f32 %v3472_v44  ;;  %vm3049_vm8 = vmor %vm3047_vm6, %vm3048_vm4  ;;  %vm3086_vm13 = vweird.f32 %v3080_v6 }
 0xb0b   :  { %v3044_v5 = vsub.f32 1.0, %v3043_v57  ;;  %vm3068_vm9 = vmor %vm3066_vm7, %vm3067_vm5  ;;  %v3090_v45 = vand.u32 2147483647, %v3080_v6  ;;  %v3093_v40 = vor.u32 1.1754944e-38, %v3092_v29 }
 0xb0c   :  { %v3063_v21 = vsub.f32 1.0, %v3062_v51 }
 0xb0d   :  { %v3045_v7 = vmul.f32 %v3470_v35, %v3044_v5  ;;  %vm3091_vm15 = vcmp.eq.f32.partialorder %v3090_v45, 8.507059e+37 }
 0xb0e   :  { %v3064_v13 = vmul.f32 %v3472_v44, %v3063_v21 }
 0xb0f   :  { %v3474_v60 = vpop.eup %3473  ;;  %v3046_v46 = vadd.f32 %v3470_v35, %v3045_v7 }
 0xb10   :  { %v3065_v10 = vadd.f32 %v3472_v44, %v3064_v13  ;;  %v3082_v19 = vmul.f32 %v3474_v60, %v3080_v6  ;;  %v3476_v37 = vpop.eup %3475  ;;  %vm3087_vm12 = vweird.f32 %v3474_v60 }
 0xb11   :  { %v3050_v1 = vsel %vm3049_vm8, %v3470_v35, %v3046_v46  ;;  %vm3088_vm14 = vmor %vm3086_vm13, %vm3087_vm12 }
 0xb12   :  { %v3055_v17 = vsel %vm3052_vm10, %v3054_v43, %v3050_v1  ;;  %v3069_v4 = vsel %vm3068_vm9, %v3472_v44, %v3065_v10  ;;  %v3083_v28 = vsub.f32 1.0, %v3082_v19 }
 0xb13   :  { %v3074_v3 = vsel %vm3071_vm11, %v3073_v14, %v3069_v4  ;;  %v3097_v24 = vmul.f32 %v3476_v37, %v3055_v17 }
 0xb14   :  { %v3096_v42 = vmul.f32 %v3074_v3, %v5762_v30  ;;  %v3084_v22 = vmul.f32 %v3474_v60, %v3083_v28  ;;  %v3222_v30 = vld [vmem:[%s5785_s5] ss:$0 sm:$0xff] }
 0xb16   :  { %v3098_v18 = vadd.f32 %v3097_v24, %v3096_v42  ;;  %v3085_v8 = vadd.f32 %v3474_v60, %v3084_v22 }
 0xb18   :  { %3477 = vtanh.f32 %v3098_v18  ;;  %v3089_v59 = vsel %vm3088_vm14, %v3474_v60, %v3085_v8 }
 0xb19   :  { %v3094_v61 = vsel %vm3091_vm15, %v3093_v40, %v3089_v59 }
 0xb1e   :  { %v3478_v20 = vpop.eup %3477 }
 0xb1f   :  { %v3100_v31 = vmul.f32 %v3478_v20, %v3094_v61 }
 0xb21   :  { %3137 = vmatmul.f32.vlgmr.msra.gmra.mxu0 %v3100_v31 }
 0xb9e   :  { %v3138_v47 = vpop.f32.mrf.mxu0 }
 0xb9f   :  { %v3139_v41 = vadd.f32 %v3222_v30, %v3138_v47 }
 0xba1   :  { %3141 = vst [vmem:[#allocation12] sm:$0xff] %v3139_v41 }
 0xba2   :  { %3152 = dma.vmem_to_hbm [thread:$0]  %s3148_s26, 128, %s3150_s29, [#allocation5]  }
 0xba3   :  { %3757 = dma.done.wait [#allocation5], 128  }
 0xba4   :  { %3758 = vsyncadd [#allocation5], 4294967168 }
 0xba5   :  { %3157 = vsyncpa [#allocation4], 1 }
 0xba6   :  { %3158 = vsyncpa [#allocation7], 1 }
 0xba7   :  { %3159 = vsyncpa [#allocation10], 1 }
 0xba8   :  { %3160 = vsyncpa [#allocation5], 1 }

</bundles_post_ra>
